<compile_context>
chip_gen: v7x
topology: tpu7x:2x2x1
jax: 0.10.0
libtpu: 0.0.40
codegen_flags: <defaults>
</compile_context>

<pallas_src>
import functools
import math

import jax
import jax.numpy as jnp
from jax.experimental import pallas as pl
from jax.experimental.pallas import tpu as pltpu


# -----------------------------------------------------------------------------
# Fused GraphAttention kernel
# -----------------------------------------------------------------------------
def _graph_attention_kernel(ap_ref, ah_ref, cxyz_ref, cfeat_ref,
                            gxyz_ref, gfeat_ref, o_ref, *, alpha, pack):
    f32 = jnp.float32
    cx = cxyz_ref[0]                          # (TN, C)     f32
    cf = cfeat_ref[0]                         # (TN, D)     bf16 (compute dtype)
    gx = gxyz_ref[0]                          # (TN, S, C)  f32
    gf = gfeat_ref[0]                         # (TN, S, D)  bf16 (compute dtype)
    a_p = ap_ref[...]                         # (C, Dout)   f32  (VPU path)
    a_h = ah_ref[...]                         # (D, Dout)   bf16 (MXU path)

    TN, S, C = gx.shape
    D = gf.shape[-1]
    Dout = a_h.shape[-1]

    # --- single MXU pass for every a_h projection ----------------------------
    # Stack flattened grouped features (TN*S rows) and centre features (TN
    # rows) and do one (TN*S+TN, D) @ (D, Dout) bf16 dot with f32 accumulation.
    # (For best perf S should be a multiple of 16 so the reshape is a view.)
    gf_flat = gf.reshape(TN * S, D)
    stacked = jnp.concatenate([gf_flat, cf], axis=0)           # (TN*S+TN, D)
    proj = jnp.dot(stacked, a_h, preferred_element_type=f32)   # f32
    gproj = proj[:TN * S].reshape(TN, S, Dout)                 # grouped @ a_h
    cproj = proj[TN * S:]                                      # centre  @ a_h

    # --- xyz contribution (C == 3): VPU FMAs, no degenerate K=3 MXU pass -----
    for c in range(C):
        w = a_p[c:c + 1, :]                                    # (1, Dout) f32, hoisted
        cproj = cproj + cx[:, c:c + 1] * w
        gproj = gproj + gx[:, :, c:c + 1] * w[None]

    # e = LeakyReLU((delta_p ++ delta_h) @ a); linearity removed the concat
    # and the per-sample broadcast of the deltas before the matmul.
    e = cproj[:, None, :] - gproj                              # (TN, S, Dout) f32
    e = jnp.where(e > 0, e, alpha * e)                         # LeakyReLU

    # softmax over nsample (axis 1 here == dim 2 of [B, npoint, nsample, Dout])
    m = jnp.max(e, axis=1, keepdims=True)                      # (TN, 1, Dout)
    ex = jnp.exp(e - m)                                        # (TN, S, Dout)

    # --- epilogue: fold the softmax normalisation into the pooled output and
    #     emit a lane-dense (TN//pack, pack*D) slab (unmasked stores). --------
    tnp = TN // pack
    ex4 = ex.reshape(tnp, pack, S, Dout)                       # leading-dim split
    gf4 = gf.reshape(tnp, pack, S, D)
    pieces = []
    for j in range(pack):
        exj = ex4[:, j]                                        # (tnp, S, Dout)
        gfj = gf4[:, j]                                        # (tnp, S, D) bf16
        num = jnp.sum(exj * gfj, axis=1)                       # (tnp, D) f32
        den = jnp.sum(exj, axis=1)                             # (tnp, Dout) f32
        pieces.append(num * pl.reciprocal(den, approx=True))
    out = pieces[0] if pack == 1 else jnp.concatenate(pieces, axis=-1)
    # TODO(synk): training-mode dropout on the attention weights not applied.
    o_ref[0] = out.astype(o_ref.dtype)


# -----------------------------------------------------------------------------
# Tiling helpers
# -----------------------------------------------------------------------------
def _round_up(x, m):
    return ((x + m - 1) // m) * m


def _vmem_bytes_per_point(S, C, D):
    """Rough per-point VMEM footprint (bytes) of one grid step: double-buffered
    input blocks (lane/sublane padded) + the live f32 intermediates."""
    lane = 128
    s_f32 = _round_up(S, 8)
    s_bf16 = _round_up(S, 16)
    d_pad = _round_up(D, lane)
    return (2 * (s_f32 * lane * 4)           # grouped_xyz f32 block (x2 bufs)
            + 2 * (s_bf16 * d_pad * 2)       # grouped_feature bf16 block
            + 2 * (lane * 4 + d_pad * 2)     # center xyz (f32) + feature (bf16)
            + 4 * (s_f32 * d_pad * 4)        # gproj / e / ex / stacked proj f32
            + 2 * (lane * 4))                # packed output block (x2 bufs)


def _choose_tile_n(N, B, S, C, D, pack, budget_bytes):
    row_mult = 8 * pack
    per_point = _vmem_bytes_per_point(S, C, D)
    cap = max(row_mult, budget_bytes // per_point)
    # Keep >=2 grid steps along the point axis when the batch axis alone is too
    # small to feed both v7x TensorCores and still double-buffer per core.
    min_steps = max(1, -(-4 // B))
    want = -(-N // min_steps)
    tile = min(int(cap), int(want), 512)
    return max(row_mult, (tile // row_mult) * row_mult)


# -----------------------------------------------------------------------------
# Wrapper
# -----------------------------------------------------------------------------
def graph_attention_forward(center_xyz, center_feature, grouped_xyz,
                            grouped_feature, a, *, alpha, dropout=0.0,
                            tile_n=None, compute_dtype=jnp.bfloat16,
                            vmem_budget_bytes=20 * 1024 * 1024):
    """Fused GraphAttention forward.  `dropout` accepted for API parity but is
    identity in eval mode (see TODO in the kernel)."""
    del dropout
    B, N, C = center_xyz.shape
    _, _, S, D = grouped_feature.shape
    assert a.shape[0] == C + D, "a must have all_channel = C + D rows"
    Dout = a.shape[1]
    assert Dout == D, "torch.mul(attention, grouped_feature) needs feature_dim == D"

    # Lane-dense output packing factor (pack consecutive points per 128-lane row).
    if D % 128 == 0:
        pack = 1
    elif 128 % D == 0:
        pack = 128 // D
    else:
        pack = 1          # fallback: masked stores
    row_mult = 8 * pack

    if tile_n is None:
        tile_n = _choose_tile_n(N, B, S, C, D, pack, vmem_budget_bytes)
    else:
        tile_n = max(row_mult, (int(tile_n) // row_mult) * row_mult)

    # Dtypes: feature streams to the MXU in bf16 (ideally already stored as
    # bf16 in HBM by the producer); xyz + all elementwise math stay f32.
    a_p = a[:C, :].astype(jnp.float32)            # (C, D) xyz rows
    a_h = a[C:, :].astype(compute_dtype)          # (D, D) feature rows
    center_xyz = center_xyz.astype(jnp.float32)
    grouped_xyz = grouped_xyz.astype(jnp.float32)
    center_feature = center_feature.astype(compute_dtype)
    grouped_feature = grouped_feature.astype(compute_dtype)

    # Pad awkward N up to a multiple of tile_n (padded rows give 0 output).
    Np = _round_up(N, tile_n)
    if Np != N:
        p = Np - N
        center_xyz = jnp.pad(center_xyz, ((0, 0), (0, p), (0, 0)))
        center_feature = jnp.pad(center_feature, ((0, 0), (0, p), (0, 0)))
        grouped_xyz = jnp.pad(grouped_xyz, ((0, 0), (0, p), (0, 0), (0, 0)))
        grouped_feature = jnp.pad(grouped_feature, ((0, 0), (0, p), (0, 0), (0, 0)))

    est_block_bytes = _vmem_bytes_per_point(S, C, D) * tile_n
    vmem_limit = int(min(48 * 2**20, max(32 * 2**20, 2 * est_block_bytes)))

    grid = (B, Np // tile_n)
    kernel = functools.partial(_graph_attention_kernel,
                               alpha=float(alpha), pack=pack)

    out_packed = pl.pallas_call(
        kernel,
        out_shape=jax.ShapeDtypeStruct((B, Np // pack, pack * D), jnp.float32),
        grid=grid,
        in_specs=[
            pl.BlockSpec((C, Dout), lambda b, i: (0, 0)),
            pl.BlockSpec((D, Dout), lambda b, i: (0, 0)),
            pl.BlockSpec((1, tile_n, C), lambda b, i: (b, i, 0)),
            pl.BlockSpec((1, tile_n, D), lambda b, i: (b, i, 0)),
            pl.BlockSpec((1, tile_n, S, C), lambda b, i: (b, i, 0, 0)),
            pl.BlockSpec((1, tile_n, S, D), lambda b, i: (b, i, 0, 0)),
        ],
        out_specs=pl.BlockSpec((1, tile_n // pack, pack * D),
                               lambda b, i: (b, i, 0)),
        compiler_params=pltpu.CompilerParams(
            dimension_semantics=("parallel", "parallel"),
            vmem_limit_bytes=vmem_limit),
    )(a_p, a_h, center_xyz, center_feature, grouped_xyz, grouped_feature)

    # Free row-major view back to [B, npoint, D]; drop point padding if any.
    out = out_packed.reshape(B, Np, D)
    if Np != N:
        out = out[:, :N, :]
    return out


# -----------------------------------------------------------------------------
# Parameter init (matches nn.init.xavier_uniform_(a, gain=1.414))
# -----------------------------------------------------------------------------
def init_graph_attention_params(key, all_channel, feature_dim, gain=1.414):
    bound = gain * math.sqrt(6.0 / (all_channel + feature_dim))
    return jax.random.uniform(key, (all_channel, feature_dim), jnp.float32,
                              -bound, bound)


# -----------------------------------------------------------------------------
# Pure-JAX reference (direct transcription of the PyTorch forward, f32)
# -----------------------------------------------------------------------------
def graph_attention_reference(center_xyz, center_feature, grouped_xyz,
                              grouped_feature, a, alpha):
    delta_p = center_xyz[:, :, None, :] - grouped_xyz
    delta_h = center_feature[:, :, None, :] - grouped_feature
    dpc = jnp.concatenate([delta_p, delta_h], axis=-1)
    e = jnp.einsum("bnsk,kd->bnsd", dpc, a)
    e = jnp.where(e > 0, e, alpha * e)
    attn = jax.nn.softmax(e, axis=2)
    return jnp.sum(attn * grouped_feature, axis=2)


if __name__ == "__main__":
    B, npoint, nsample = 2, 64, 16
    C, D = 3, 32
    alpha, dropout = 0.2, 0.4   # dropout is identity in eval mode

    key = jax.random.PRNGKey(0)
    k1, k2, k3, k4, ka = jax.random.split(key, 5)
    center_xyz = jax.random.normal(k1, (B, npoint, C), jnp.float32)
    center_feature = jax.random.normal(k2, (B, npoint, D), jnp.float32)
    grouped_xyz = jax.random.normal(k3, (B, npoint, nsample, C), jnp.float32)
    grouped_feature = jax.random.normal(k4, (B, npoint, nsample, D), jnp.float32)
    a = init_graph_attention_params(ka, C + D, D)

    out = graph_attention_forward(center_xyz, center_feature, grouped_xyz,
                                  grouped_feature, a,
                                  alpha=alpha, dropout=dropout)
    out = jax.block_until_ready(out)
    assert out.shape == (B, npoint, D)
    assert bool(jnp.all(jnp.isfinite(out)))

    ref = graph_attention_reference(center_xyz, center_feature, grouped_xyz,
                                    grouped_feature, a, alpha)
    # bf16 feature matmul + approx reciprocal => bf16-level tolerance vs f32 ref
    err = float(jnp.max(jnp.abs(out - ref)))
    assert bool(jnp.allclose(out, ref, atol=7.5e-2, rtol=5e-2)), err

    # ragged npoint -> exercises the zero-padding path (same compiled shapes)
    n2 = 50
    out2 = graph_attention_forward(center_xyz[:, :n2], center_feature[:, :n2],
                                   grouped_xyz[:, :n2], grouped_feature[:, :n2],
                                   a, alpha=alpha)
    out2 = jax.block_until_ready(out2)
    assert out2.shape == (B, n2, D)
    ref2 = graph_attention_reference(center_xyz[:, :n2], center_feature[:, :n2],
                                     grouped_xyz[:, :n2], grouped_feature[:, :n2],
                                     a, alpha)
    assert bool(jnp.allclose(out2, ref2, atol=7.5e-2, rtol=5e-2)), \
        float(jnp.max(jnp.abs(out2 - ref2)))

    print("KERNEL_OK")
</pallas_src>

<mosaic_0001>
module attributes {stable_mosaic.version = 11 : i64} {
  func.func @_graph_attention_kernel(%arg0: i32, %arg1: i32, %arg2: memref<3x32xf32, #tpu.memory_space<vmem>>, %arg3: memref<32x32xbf16, #tpu.memory_space<vmem>>, %arg4: memref<1x32x3xf32, #tpu.memory_space<vmem>>, %arg5: memref<1x32x32xbf16, #tpu.memory_space<vmem>>, %arg6: memref<1x32x16x3xf32, #tpu.memory_space<vmem>>, %arg7: memref<1x32x16x32xbf16, #tpu.memory_space<vmem>>, %arg8: memref<1x8x128xf32, #tpu.memory_space<vmem>>) attributes {dimension_semantics = [#tpu.dimension_semantics<parallel>, #tpu.dimension_semantics<parallel>], iteration_bounds = array<i64: 2, 2>, scalar_prefetch = 0 : i64, scratch_operands = 0 : i64, tpu.core_type = #tpu.core_type<tc>, window_params = [{pipeline_mode = #tpu.pipeline_mode<synchronous>, transform_indices = @transform_0, window_bounds = array<i64: 3, 32>}, {pipeline_mode = #tpu.pipeline_mode<synchronous>, transform_indices = @transform_1, window_bounds = array<i64: 32, 32>}, {transform_indices = @transform_2, window_bounds = array<i64: 1, 32, 3>}, {transform_indices = @transform_3, window_bounds = array<i64: 1, 32, 32>}, {transform_indices = @transform_4, window_bounds = array<i64: 1, 32, 16, 3>}, {transform_indices = @transform_5, window_bounds = array<i64: 1, 32, 16, 32>}, {transform_indices = @transform_6, window_bounds = array<i64: 1, 8, 128>}]} {
    %c0 = arith.constant 0 : index
    %c0_0 = arith.constant 0 : index
    %c0_1 = arith.constant 0 : index
    %0 = vector.load %arg4[%c0, %c0_0, %c0_1] : memref<1x32x3xf32, #tpu.memory_space<vmem>>, vector<1x32x3xf32>
    %1 = vector.shape_cast %0 : vector<1x32x3xf32> to vector<32x3xf32>
    %c0_2 = arith.constant 0 : index
    %c0_3 = arith.constant 0 : index
    %c0_4 = arith.constant 0 : index
    %2 = vector.load %arg5[%c0_2, %c0_3, %c0_4] : memref<1x32x32xbf16, #tpu.memory_space<vmem>>, vector<1x32x32xbf16>
    %3 = vector.shape_cast %2 : vector<1x32x32xbf16> to vector<32x32xbf16>
    %c0_5 = arith.constant 0 : index
    %c0_6 = arith.constant 0 : index
    %c0_7 = arith.constant 0 : index
    %c0_8 = arith.constant 0 : index
    %4 = vector.load %arg6[%c0_5, %c0_6, %c0_7, %c0_8] : memref<1x32x16x3xf32, #tpu.memory_space<vmem>>, vector<1x32x16x3xf32>
    %5 = vector.shape_cast %4 : vector<1x32x16x3xf32> to vector<32x16x3xf32>
    %c0_9 = arith.constant 0 : index
    %c0_10 = arith.constant 0 : index
    %c0_11 = arith.constant 0 : index
    %c0_12 = arith.constant 0 : index
    %6 = vector.load %arg7[%c0_9, %c0_10, %c0_11, %c0_12] : memref<1x32x16x32xbf16, #tpu.memory_space<vmem>>, vector<1x32x16x32xbf16>
    %7 = vector.shape_cast %6 : vector<1x32x16x32xbf16> to vector<32x16x32xbf16>
    %c0_13 = arith.constant 0 : index
    %c0_14 = arith.constant 0 : index
    %8 = vector.load %arg2[%c0_13, %c0_14] : memref<3x32xf32, #tpu.memory_space<vmem>>, vector<3x32xf32>
    %c0_15 = arith.constant 0 : index
    %c0_16 = arith.constant 0 : index
    %9 = vector.load %arg3[%c0_15, %c0_16] : memref<32x32xbf16, #tpu.memory_space<vmem>>, vector<32x32xbf16>
    %10 = vector.shape_cast %7 : vector<32x16x32xbf16> to vector<512x32xbf16>
    %11 = tpu.concatenate %10, %3 in 0 : vector<512x32xbf16>, vector<32x32xbf16> -> vector<544x32xbf16>
    %cst = arith.constant dense<0.000000e+00> : vector<544x32xf32>
    %12 = tpu.matmul %11, %9, %cst {dimension_numbers = #tpu.dot_dimension_numbers<[1], [0], [0], [1], [0, 0, 1, 1], [], []>} : vector<544x32xbf16>, vector<32x32xbf16>, vector<544x32xf32> -> vector<544x32xf32>
    %13 = vector.extract_strided_slice %12 {offsets = [0, 0], sizes = [512, 32], strides = [1, 1]} : vector<544x32xf32> to vector<512x32xf32>
    %14 = vector.shape_cast %13 : vector<512x32xf32> to vector<32x16x32xf32>
    %15 = vector.extract_strided_slice %12 {offsets = [512, 0], sizes = [32, 32], strides = [1, 1]} : vector<544x32xf32> to vector<32x32xf32>
    %16 = vector.extract_strided_slice %8 {offsets = [0, 0], sizes = [1, 32], strides = [1, 1]} : vector<3x32xf32> to vector<1x32xf32>
    %17 = vector.extract_strided_slice %1 {offsets = [0, 0], sizes = [32, 1], strides = [1, 1]} : vector<32x3xf32> to vector<32x1xf32>
    %18 = vector.broadcast %17 : vector<32x1xf32> to vector<32x32xf32>
    %19 = vector.broadcast %16 : vector<1x32xf32> to vector<32x32xf32>
    %20 = arith.mulf %18, %19 : vector<32x32xf32>
    %21 = arith.addf %15, %20 : vector<32x32xf32>
    %22 = vector.extract_strided_slice %5 {offsets = [0, 0, 0], sizes = [32, 16, 1], strides = [1, 1, 1]} : vector<32x16x3xf32> to vector<32x16x1xf32>
    %23 = vector.shape_cast %16 : vector<1x32xf32> to vector<1x1x32xf32>
    %24 = vector.broadcast %22 : vector<32x16x1xf32> to vector<32x16x32xf32>
    %25 = vector.broadcast %23 : vector<1x1x32xf32> to vector<32x16x32xf32>
    %26 = arith.mulf %24, %25 : vector<32x16x32xf32>
    %27 = arith.addf %14, %26 : vector<32x16x32xf32>
    %28 = vector.extract_strided_slice %8 {offsets = [1, 0], sizes = [1, 32], strides = [1, 1]} : vector<3x32xf32> to vector<1x32xf32>
    %29 = vector.extract_strided_slice %1 {offsets = [0, 1], sizes = [32, 1], strides = [1, 1]} : vector<32x3xf32> to vector<32x1xf32>
    %30 = vector.broadcast %29 : vector<32x1xf32> to vector<32x32xf32>
    %31 = vector.broadcast %28 : vector<1x32xf32> to vector<32x32xf32>
    %32 = arith.mulf %30, %31 : vector<32x32xf32>
    %33 = arith.addf %21, %32 : vector<32x32xf32>
    %34 = vector.extract_strided_slice %5 {offsets = [0, 0, 1], sizes = [32, 16, 1], strides = [1, 1, 1]} : vector<32x16x3xf32> to vector<32x16x1xf32>
    %35 = vector.shape_cast %28 : vector<1x32xf32> to vector<1x1x32xf32>
    %36 = vector.broadcast %34 : vector<32x16x1xf32> to vector<32x16x32xf32>
    %37 = vector.broadcast %35 : vector<1x1x32xf32> to vector<32x16x32xf32>
    %38 = arith.mulf %36, %37 : vector<32x16x32xf32>
    %39 = arith.addf %27, %38 : vector<32x16x32xf32>
    %40 = vector.extract_strided_slice %8 {offsets = [2, 0], sizes = [1, 32], strides = [1, 1]} : vector<3x32xf32> to vector<1x32xf32>
    %41 = vector.extract_strided_slice %1 {offsets = [0, 2], sizes = [32, 1], strides = [1, 1]} : vector<32x3xf32> to vector<32x1xf32>
    %42 = vector.broadcast %41 : vector<32x1xf32> to vector<32x32xf32>
    %43 = vector.broadcast %40 : vector<1x32xf32> to vector<32x32xf32>
    %44 = arith.mulf %42, %43 : vector<32x32xf32>
    %45 = arith.addf %33, %44 : vector<32x32xf32>
    %46 = vector.extract_strided_slice %5 {offsets = [0, 0, 2], sizes = [32, 16, 1], strides = [1, 1, 1]} : vector<32x16x3xf32> to vector<32x16x1xf32>
    %47 = vector.shape_cast %40 : vector<1x32xf32> to vector<1x1x32xf32>
    %48 = vector.broadcast %46 : vector<32x16x1xf32> to vector<32x16x32xf32>
    %49 = vector.broadcast %47 : vector<1x1x32xf32> to vector<32x16x32xf32>
    %50 = arith.mulf %48, %49 : vector<32x16x32xf32>
    %51 = arith.addf %39, %50 : vector<32x16x32xf32>
    %52 = vector.shape_cast %45 : vector<32x32xf32> to vector<32x1x32xf32>
    %53 = vector.broadcast %52 : vector<32x1x32xf32> to vector<32x16x32xf32>
    %54 = arith.subf %53, %51 : vector<32x16x32xf32>
    %cst_17 = arith.constant 0.000000e+00 : f32
    %55 = vector.broadcast %cst_17 : f32 to vector<32x16x32xf32>
    %56 = arith.cmpf ogt, %54, %55 : vector<32x16x32xf32>
    %cst_18 = arith.constant 2.000000e-01 : f32
    %57 = vector.broadcast %cst_18 : f32 to vector<32x16x32xf32>
    %58 = arith.mulf %57, %54 : vector<32x16x32xf32>
    %59 = arith.select %56, %54, %58 : vector<32x16x32xi1>, vector<32x16x32xf32>
    %cst_19 = arith.constant dense<0xFF800000> : vector<32x32xf32>
    %60 = vector.multi_reduction <maximumf>, %59, %cst_19 [1] : vector<32x16x32xf32> to vector<32x32xf32>
    %61 = vector.shape_cast %60 : vector<32x32xf32> to vector<32x1x32xf32>
    %62 = vector.broadcast %61 : vector<32x1x32xf32> to vector<32x16x32xf32>
    %63 = arith.subf %59, %62 : vector<32x16x32xf32>
    %64 = math.exp %63 : vector<32x16x32xf32>
    %65 = vector.shape_cast %64 : vector<32x16x32xf32> to vector<8x4x16x32xf32>
    %66 = vector.shape_cast %7 : vector<32x16x32xbf16> to vector<8x4x16x32xbf16>
    %67 = vector.extract_strided_slice %65 {offsets = [0, 0, 0, 0], sizes = [8, 1, 16, 32], strides = [1, 1, 1, 1]} : vector<8x4x16x32xf32> to vector<8x1x16x32xf32>
    %68 = vector.shape_cast %67 : vector<8x1x16x32xf32> to vector<8x16x32xf32>
    %69 = vector.extract_strided_slice %66 {offsets = [0, 0, 0, 0], sizes = [8, 1, 16, 32], strides = [1, 1, 1, 1]} : vector<8x4x16x32xbf16> to vector<8x1x16x32xbf16>
    %70 = vector.shape_cast %69 : vector<8x1x16x32xbf16> to vector<8x16x32xbf16>
    %71 = arith.extf %70 : vector<8x16x32xbf16> to vector<8x16x32xf32>
    %72 = arith.mulf %68, %71 : vector<8x16x32xf32>
    %cst_20 = arith.constant dense<0.000000e+00> : vector<8x32xf32>
    %73 = vector.multi_reduction <add>, %72, %cst_20 [1] : vector<8x16x32xf32> to vector<8x32xf32>
    %cst_21 = arith.constant dense<0.000000e+00> : vector<8x32xf32>
    %74 = vector.multi_reduction <add>, %68, %cst_21 [1] : vector<8x16x32xf32> to vector<8x32xf32>
    %75 = tpu.reciprocal %74 {approx = true} : vector<8x32xf32> -> vector<8x32xf32>
    %76 = arith.mulf %73, %75 : vector<8x32xf32>
    %77 = vector.extract_strided_slice %65 {offsets = [0, 1, 0, 0], sizes = [8, 1, 16, 32], strides = [1, 1, 1, 1]} : vector<8x4x16x32xf32> to vector<8x1x16x32xf32>
    %78 = vector.shape_cast %77 : vector<8x1x16x32xf32> to vector<8x16x32xf32>
    %79 = vector.extract_strided_slice %66 {offsets = [0, 1, 0, 0], sizes = [8, 1, 16, 32], strides = [1, 1, 1, 1]} : vector<8x4x16x32xbf16> to vector<8x1x16x32xbf16>
    %80 = vector.shape_cast %79 : vector<8x1x16x32xbf16> to vector<8x16x32xbf16>
    %81 = arith.extf %80 : vector<8x16x32xbf16> to vector<8x16x32xf32>
    %82 = arith.mulf %78, %81 : vector<8x16x32xf32>
    %cst_22 = arith.constant dense<0.000000e+00> : vector<8x32xf32>
    %83 = vector.multi_reduction <add>, %82, %cst_22 [1] : vector<8x16x32xf32> to vector<8x32xf32>
    %cst_23 = arith.constant dense<0.000000e+00> : vector<8x32xf32>
    %84 = vector.multi_reduction <add>, %78, %cst_23 [1] : vector<8x16x32xf32> to vector<8x32xf32>
    %85 = tpu.reciprocal %84 {approx = true} : vector<8x32xf32> -> vector<8x32xf32>
    %86 = arith.mulf %83, %85 : vector<8x32xf32>
    %87 = vector.extract_strided_slice %65 {offsets = [0, 2, 0, 0], sizes = [8, 1, 16, 32], strides = [1, 1, 1, 1]} : vector<8x4x16x32xf32> to vector<8x1x16x32xf32>
    %88 = vector.shape_cast %87 : vector<8x1x16x32xf32> to vector<8x16x32xf32>
    %89 = vector.extract_strided_slice %66 {offsets = [0, 2, 0, 0], sizes = [8, 1, 16, 32], strides = [1, 1, 1, 1]} : vector<8x4x16x32xbf16> to vector<8x1x16x32xbf16>
    %90 = vector.shape_cast %89 : vector<8x1x16x32xbf16> to vector<8x16x32xbf16>
    %91 = arith.extf %90 : vector<8x16x32xbf16> to vector<8x16x32xf32>
    %92 = arith.mulf %88, %91 : vector<8x16x32xf32>
    %cst_24 = arith.constant dense<0.000000e+00> : vector<8x32xf32>
    %93 = vector.multi_reduction <add>, %92, %cst_24 [1] : vector<8x16x32xf32> to vector<8x32xf32>
    %cst_25 = arith.constant dense<0.000000e+00> : vector<8x32xf32>
    %94 = vector.multi_reduction <add>, %88, %cst_25 [1] : vector<8x16x32xf32> to vector<8x32xf32>
    %95 = tpu.reciprocal %94 {approx = true} : vector<8x32xf32> -> vector<8x32xf32>
    %96 = arith.mulf %93, %95 : vector<8x32xf32>
    %97 = vector.extract_strided_slice %65 {offsets = [0, 3, 0, 0], sizes = [8, 1, 16, 32], strides = [1, 1, 1, 1]} : vector<8x4x16x32xf32> to vector<8x1x16x32xf32>
    %98 = vector.shape_cast %97 : vector<8x1x16x32xf32> to vector<8x16x32xf32>
    %99 = vector.extract_strided_slice %66 {offsets = [0, 3, 0, 0], sizes = [8, 1, 16, 32], strides = [1, 1, 1, 1]} : vector<8x4x16x32xbf16> to vector<8x1x16x32xbf16>
    %100 = vector.shape_cast %99 : vector<8x1x16x32xbf16> to vector<8x16x32xbf16>
    %101 = arith.extf %100 : vector<8x16x32xbf16> to vector<8x16x32xf32>
    %102 = arith.mulf %98, %101 : vector<8x16x32xf32>
    %cst_26 = arith.constant dense<0.000000e+00> : vector<8x32xf32>
    %103 = vector.multi_reduction <add>, %102, %cst_26 [1] : vector<8x16x32xf32> to vector<8x32xf32>
    %cst_27 = arith.constant dense<0.000000e+00> : vector<8x32xf32>
    %104 = vector.multi_reduction <add>, %98, %cst_27 [1] : vector<8x16x32xf32> to vector<8x32xf32>
    %105 = tpu.reciprocal %104 {approx = true} : vector<8x32xf32> -> vector<8x32xf32>
    %106 = arith.mulf %103, %105 : vector<8x32xf32>
    %107 = tpu.concatenate %76, %86, %96, %106 in 1 : vector<8x32xf32>, vector<8x32xf32>, vector<8x32xf32>, vector<8x32xf32> -> vector<8x128xf32>
    %c0_28 = arith.constant 0 : index
    %c0_29 = arith.constant 0 : index
    %c0_30 = arith.constant 0 : index
    %108 = vector.load %arg8[%c0_28, %c0_29, %c0_30] : memref<1x8x128xf32, #tpu.memory_space<vmem>>, vector<1x8x128xf32>
    %109 = vector.shape_cast %108 : vector<1x8x128xf32> to vector<8x128xf32>
    %110 = vector.shape_cast %107 : vector<8x128xf32> to vector<1x8x128xf32>
    tpu.vector_store %arg8[%c0_28, %c0_29, %c0_30], %110 {strides = array<i32>} : memref<1x8x128xf32, #tpu.memory_space<vmem>>, vector<1x8x128xf32>,
    return
  }
  func.func @transform_0(%arg0: i32, %arg1: i32) -> (i32, i32) {
    %c0_i32 = arith.constant 0 : i32
    %c0_i32_0 = arith.constant 0 : i32
    %c0_i32_1 = arith.constant 0 : i32
    return %c0_i32, %c0_i32_0 : i32, i32
  }
  func.func @transform_1(%arg0: i32, %arg1: i32) -> (i32, i32) {
    %c0_i32 = arith.constant 0 : i32
    %c0_i32_0 = arith.constant 0 : i32
    %c0_i32_1 = arith.constant 0 : i32
    return %c0_i32, %c0_i32_0 : i32, i32
  }
  func.func @transform_2(%arg0: i32, %arg1: i32) -> (i32, i32, i32) {
    %c0_i32 = arith.constant 0 : i32
    %c0_i32_0 = arith.constant 0 : i32
    return %arg0, %arg1, %c0_i32 : i32, i32, i32
  }
  func.func @transform_3(%arg0: i32, %arg1: i32) -> (i32, i32, i32) {
    %c0_i32 = arith.constant 0 : i32
    %c0_i32_0 = arith.constant 0 : i32
    return %arg0, %arg1, %c0_i32 : i32, i32, i32
  }
  func.func @transform_4(%arg0: i32, %arg1: i32) -> (i32, i32, i32, i32) {
    %c0_i32 = arith.constant 0 : i32
    %c0_i32_0 = arith.constant 0 : i32
    %c0_i32_1 = arith.constant 0 : i32
    return %arg0, %arg1, %c0_i32, %c0_i32_0 : i32, i32, i32, i32
  }
  func.func @transform_5(%arg0: i32, %arg1: i32) -> (i32, i32, i32, i32) {
    %c0_i32 = arith.constant 0 : i32
    %c0_i32_0 = arith.constant 0 : i32
    %c0_i32_1 = arith.constant 0 : i32
    return %arg0, %arg1, %c0_i32, %c0_i32_0 : i32, i32, i32, i32
  }
  func.func @transform_6(%arg0: i32, %arg1: i32) -> (i32, i32, i32) {
    %c0_i32 = arith.constant 0 : i32
    %c0_i32_0 = arith.constant 0 : i32
    return %arg0, %arg1, %c0_i32 : i32, i32, i32
  }
}

</mosaic_0001>

<bundles_post_ra>
// kernel: tpu_custom_call.1
= control target key start
LH: loop header
LB: loop body
LE: loop exit
PB: predicated region body
PF: predicated region fallthrough
CT: control target
= control target key end

     0   :  { %s8264_s0 = inlined_call_operand.vmem [shape: f32[3,32], index: 0, kind: input, shape index: {}]   ;;  %s8265_s1 = inlined_call_operand.vmem [shape: bf16[32,32], index: 1, kind: input, shape index: {}]   ;;  %s8266_s2 = inlined_call_operand.vmem [shape: f32[2,64,3], index: 2, kind: input, shape index: {}]   ;;  %s8267_s3 = inlined_call_operand.vmem [shape: bf16[2,64,32], index: 3, kind: input, shape index: {}]   ;;  %s8268_s4 = inlined_call_operand.vmem [shape: f32[2,64,16,3], index: 4, kind: input, shape index: {}]   ;;  %s8269_s5 = inlined_call_operand.vmem [shape: bf16[2,64,16,32], index: 5, kind: input, shape index: {}]   ;;  %s8270_s6 = inlined_call_operand.hbm [shape: f32[2,16,128], index: 6, kind: output, shape index: {}]  }
   0x1   :  { %8391 = sst [smem:[#allocation136_spill]] %s8265_s1 }
   0x2   :  { %11 = vsyncpa [#allocation3], 0 }
   0x3   :  { %13 = vsyncpa [#allocation3 + $0x1], 0  ;;  %s5277_s21 = smov 0   ;;  %s5279_s22 = smov 0  }
   0x4   :  { %s5281_s23 = smov 0   ;;  %s5283_s24 = smov 0  }
   0x5   :  { %s5285_s25 = smov 0   ;;  %s5287_s26 = smov 0  }
   0x6   :  { %s5289_s27 = smov 0   ;;  %s5291_s28 = smov 0  }
   0x7 LB: > { %s4531_s29 = sadd.s32 4294967295, %s5232_s28   ;;  %s4532_s30 = sadd.s32 4294967294, %s5232_s28   ;;  %s5232_s28 = sphi %s5291_s28, %s19_s28   ;;  %s5228_s27 = sphi %s5289_s27, %s8988_s27   ;;  %s5224_s26 = sphi %s5287_s26, %s8987_s26   ;;  %s5220_s25 = sphi %s5285_s25, %s8986_s25   ;;  %s5216_s24 = sphi %s5283_s24, %s8985_s24   ;;  %s5212_s23 = sphi %s5281_s23, %s8984_s23   ;;  %s5208_s22 = sphi %s5279_s22, %s8983_s22   ;;  %s5204_s21 = sphi %s5277_s21, %s8982_s21  }
   0x8   : > { %s28_s7 = sadd.s32 1, %s5224_s26  ;;  %s31_s8 = sadd.s32 1, %s5228_s27 }
   0x9   : > { %p29_p0 = scmp.ge.s32.totalorder %s28_s7, 2  ;;  %p204_p1 = scmp.ne.s32.totalorder %s5212_s23, %s5208_s22 }
   0xa   : > { %p205_p2 = scmp.eq.s32.totalorder %s4531_s29, 3  ;;  %p210_p5 = scmp.ne.s32.totalorder %s5208_s22, %s5204_s21 }
   0xb   : > { %s8990_s7 = smov (%p29_p0, %s28_s7), 0  ;;  %s8992_s8 = smov (!%p29_p0, %s31_s8), %s5228_s27 }
   0xc   : > { %8392 = sst [smem:[#allocation5_spill]] %s8990_s7  ;;  %s190_s9 = ssub.s32 %s5224_s26, %s8990_s7 }
   0xd   : > { %p5328_p3 = por %p205_p2, %p204_p1  ;;  %p33_p4 = scmp.ge.s32.totalorder %s8992_s8, 2 }
   0xe   : > { %p211_p6 = scmp.eq.s32.totalorder %s4532_s30, 3  ;;  %p4535_p7 = scmp.ge.s32.totalorder %s5232_s28, 1 }
   0xf   : > { %s8994_s8 = smov (%p33_p4, %s8992_s8), 0  ;;  %p289_p9 = scmp.lt.s32.totalorder %s5232_s28, 5 }
  0x10   : > { %8394 = sst [smem:[#allocation6_spill]] %s8994_s8  ;;  %p5337_p8 = por %p211_p6, %p210_p5 }
  0x11   : > { %s189_s12 = ssub.s32 %s5228_s27, %s8994_s8  ;;  %s194_s13 = sadd.s32 1, %s5212_s23 }
  0x12   : > { %s191_s14 = sor.u32 %s190_s9, %s189_s12  ;;  %p290_p10 = pnand %p4535_p7, %p289_p9 }
  0x13   : > { %p192_p11 = scmp.eq.s32.totalorder %s191_s14, 0 }
  0x14   : > { %293 = sbr.rel (%p290_p10) target bundleno = 1005 (0x3ed), region = 44 }
  0x15   : > { %s5346_s15 = scalar_select %p192_p11, %s5212_s23, %s194_s13  }
  0x1b   : > { %s8396_s1 = sld [smem:[#allocation136_spill]]  ;;  %v5234_v1 = vmov 0   ;;  %s4537_s20 = sshll.u32 %s5216_s24, 2  ;;  %vm718_vm0 = vcmask 261120  }
  0x1c   : > { %4817 = vset.pattern.permute.xlu1 %v5234_v1  ;;  %4816 = vset.pattern.permute.xlu0 %v5234_v1  ;;  %p353_p12 = scmp.lt.s32.totalorder %s5220_s25, 1  ;;  %p355_p13 = scmp.lt.s32.totalorder %s4537_s20, 7 }
  0x1d   : > { %s4543_s29 = sshll.u32 %s5216_s24, 5 }
  0x1e   : > { %s354_s30 = scalar_select %p353_p12, %s5220_s25, 1 }
  0x1f   : > { %s8996_s20 = smov (!%p355_p13, %s4537_s20), 7  ;;  %p375_p0 = scmp.lt.s32.totalorder %s4543_s29, 63 }
  0x20   : > { %s4538_s9 = sshll.u32 %s354_s30, 3  ;;  %s4545_s13 = sshll.u32 %s354_s30, 7 }
  0x21   : > { %v4822_v0 = vld [vmem:[%s8396_s1] sm:$0xff]   ;;  %v4823_v2 = vld [vmem:[%s8396_s1 + $0x8] sm:$0xff]   ;;  %s358_s12 = sadd.s32 %s4538_s9, %s8996_s20  ;;  %s8998_s29 = smov (!%p375_p0, %s4543_s29), 63 }
  0x22   : > { %4662 = vmatprep.subr.bf16.mxu0 %v4822_v0  ;;  %4734 = vmatprep.subr.bf16.mxu1 %v4822_v0  ;;  %s4539_s14 = sshll.u32 %s358_s12, 3  ;;  %s4542_s16 = sshll.u32 %s358_s12, 2 }
  0x23   : > { %4663 = vmatpush3.bf16.msra.mxu0 %v4822_v0  ;;  %4736 = vmatpush3.bf16.msra.mxu1 %v4822_v0  ;;  %s360_s19 = scalar_lea.vmem %s8266_s2, %s4539_s14  ;;  %s5364_s7 = scalar_lea.vmem %s8267_s3, %s4542_s16 }
  0x24   : > { %4664 = vmatprep.subr.bf16.mxu0 %v4823_v2  ;;  %4735 = vmatprep.subr.bf16.mxu1 %v4823_v2  ;;  %v5366_v3 = vld [vmem:[%s360_s19 + $0x10] sm:$0xff]  ;;  %v5368_v4 = vld [vmem:[%s360_s19] sm:$0xff]  ;;  %v5372_v5 = vld [vmem:[%s360_s19 + $0x18] sm:$0xff]  ;;  %s4544_s20 = sshll.u32 %s8998_s29, 1  ;;  %s5241_s29 = smov [#allocation2]  }
  0x25   : > { %1138 = vperm.xlu1 %4817, %v5366_v3   ;;  %1128 = vperm.xlu0 %4816, %v5368_v4   ;;  %v5374_v6 = vld [vmem:[%s360_s19 + $0x8] sm:$0xff]  ;;  %s379_s30 = sadd.s32 %s4545_s13, %s4544_s20  ;;  %v4853_v62 = vld [vmem:[%s5364_s7] sm:$0xff]   ;;  %s5238_s13 = smov 32  }
  0x26   : > { %s4546_s9 = sshll.u32 %s379_s30, 3  ;;  %s4550_s12 = sshll.u32 %s379_s30, 2 }
  0x27   : > { %4665 = vmatpush3.bf16.msra.mxu0 %v4823_v2  ;;  %4737 = vmatpush3.bf16.msra.mxu1 %v4823_v2  ;;  %s5379_s14 = scalar_lea.vmem %s8268_s4, %s4546_s9  ;;  %s5384_s18 = scalar_lea.vmem %s8269_s5, %s4550_s12 }
  0x28   : > { %v467_v7 = vld [vmem:[%s5384_s18] sm:$0xff]   ;;  %v503_v8 = vld [vmem:[%s5384_s18 + $0x90] sm:$0xff]   ;;  %v469_v9 = vld [vmem:[%s5384_s18 + $0x8] sm:$0xff]   ;;  %s5239_s19 = smov 64   ;;  %s5240_s20 = smov 96  }
  0x29   : > { %1143 = vperm.xlu1 %4817, %v5372_v5   ;;  %1133 = vperm.xlu0 %4816, %v5374_v6   ;;  %v505_v10 = vld [vmem:[%s5384_s18 + $0x98] sm:$0xff]   ;;  %v5393_v11 = vld [vmem:[%s5379_s14 + $0x8] sm:$0xff]  ;;  %v5396_v12 = vld [vmem:[%s5379_s14] sm:$0xff]  ;;  %s349_s30 = sand.u32 1, %s5208_s22   ;;  %s4622_s12 = sshll.u32 %s5220_s25, 1 }
  0x2a   : > { %v471_v13 = vld [vmem:[%s5384_s18 + $0x10] sm:$0xff]   ;;  %v507_v14 = vld [vmem:[%s5384_s18 + $0xa0] sm:$0xff]   ;;  %4666 = vmatprep.mubr.msk.bf16.mxu0 %vm718_vm0, %v467_v7  ;;  %4702 = vmatprep.mubr.msk.bf16.mxu1 %vm718_vm0, %v503_v8  ;;  %v473_v15 = vld [vmem:[%s5384_s18 + $0x18] sm:$0xff]   ;;  %s4536_s9 = sshll.u32 %s349_s30, 3  ;;  %s4389_s1 = sadd.s32 %s5216_s24, %s4622_s12 }
  0x2b   : > { %4667 = vmatmul.mubr.msk.bf16.vlgmr.msra.gmra.mrb[0].mxu0 %vm718_vm0, %v469_v9  ;;  %4703 = vmatmul.mubr.msk.bf16.vlgmr.msra.gmra.mrb[0].mxu1 %vm718_vm0, %v505_v10  ;;  %v5408_v16 = vld [vmem:[%s5379_s14 + $0x18] sm:$0xff]  ;;  %v509_v17 = vld [vmem:[%s5384_s18 + $0xa8] sm:$0xff]   ;;  %v5414_v18 = vld [vmem:[%s5379_s14 + $0x10] sm:$0xff]  ;;  %s4623_s8 = sshll.u32 %s4389_s1, 7  ;;  %s4378_s24 = scalar_lea.sflag [#allocation3], %s349_s30 }
  0x2c   : > { %4670 = vmatprep.mubr.msk.bf16.mxu0 %vm718_vm0, %v471_v13  ;;  %4706 = vmatprep.mubr.msk.bf16.mxu1 %vm718_vm0, %v507_v14  ;;  %v475_v19 = vld [vmem:[%s5384_s18 + $0x20] sm:$0xff]   ;;  %v511_v20 = vld [vmem:[%s5384_s18 + $0xb0] sm:$0xff]   ;;  %v5421_v21 = vld [vmem:[%s5379_s14 + $0x28] sm:$0xff] }
  0x2d   : > { %1165 = vperm.xlu1 %4817, %v5393_v11   ;;  %1160 = vperm.xlu0 %4816, %v5396_v12   ;;  %v5424_v22 = vld [vmem:[%s5379_s14 + $0x20] sm:$0xff]  ;;  %v477_v23 = vld [vmem:[%s5384_s18 + $0x28] sm:$0xff]   ;;  %v5432_v24 = vld [vmem:[%s5379_s14 + $0x38] sm:$0xff] }
  0x2e   : > { %v513_v25 = vld [vmem:[%s5384_s18 + $0xb8] sm:$0xff]   ;;  %v5438_v26 = vld [vmem:[%s5379_s14 + $0x30] sm:$0xff]  ;;  %v515_v28 = vld [vmem:[%s5384_s18 + $0xc0] sm:$0xff]  }
  0x2f   : > { %v479_v27 = vld [vmem:[%s5384_s18 + $0x30] sm:$0xff]   ;;  %v5445_v29 = vld [vmem:[%s5379_s14 + $0x48] sm:$0xff]  ;;  %v5448_v30 = vld [vmem:[%s5379_s14 + $0x40] sm:$0xff] }
  0x30   : > { %v481_v31 = vld [vmem:[%s5384_s18 + $0x38] sm:$0xff]   ;;  %v517_v33 = vld [vmem:[%s5384_s18 + $0xc8] sm:$0xff]   ;;  %v5462_v34 = vld [vmem:[%s5379_s14 + $0x50] sm:$0xff] }
  0x31   : > { %1175 = vperm.xlu1 %4817, %v5408_v16   ;;  %1170 = vperm.xlu0 %4816, %v5414_v18   ;;  %v5456_v32 = vld [vmem:[%s5379_s14 + $0x58] sm:$0xff]  ;;  %v483_v35 = vld [vmem:[%s5384_s18 + $0x40] sm:$0xff]   ;;  %v519_v36 = vld [vmem:[%s5384_s18 + $0xd0] sm:$0xff]  }
  0x32   : > { %v5469_v37 = vld [vmem:[%s5379_s14 + $0x68] sm:$0xff]  ;;  %v5472_v38 = vld [vmem:[%s5379_s14 + $0x60] sm:$0xff]  ;;  %v5480_v40 = vld [vmem:[%s5379_s14 + $0x78] sm:$0xff] }
  0x33   : > { %4671 = vmatmul.mubr.msk.bf16.gmra.mrb[4].mxu0 %vm718_vm0, %v473_v15  ;;  %4707 = vmatmul.mubr.msk.bf16.gmra.mrb[4].mxu1 %vm718_vm0, %v509_v17  ;;  %v485_v39 = vld [vmem:[%s5384_s18 + $0x48] sm:$0xff]   ;;  %v521_v41 = vld [vmem:[%s5384_s18 + $0xd8] sm:$0xff]   ;;  %v5486_v42 = vld [vmem:[%s5379_s14 + $0x70] sm:$0xff] }
  0x34   : > { %4674 = vmatprep.mubr.msk.bf16.mxu0 %vm718_vm0, %v475_v19  ;;  %4710 = vmatprep.mubr.msk.bf16.mxu1 %vm718_vm0, %v511_v20  ;;  %v487_v43 = vld [vmem:[%s5384_s18 + $0x50] sm:$0xff]   ;;  %v523_v44 = vld [vmem:[%s5384_s18 + $0xe0] sm:$0xff]   ;;  %v5493_v45 = vld [vmem:[%s5379_s14 + $0x88] sm:$0xff] }
  0x35   : > { %1185 = vperm.xlu1 %4817, %v5421_v21   ;;  %1180 = vperm.xlu0 %4816, %v5424_v22   ;;  %v5496_v46 = vld [vmem:[%s5379_s14 + $0x80] sm:$0xff]  ;;  %v489_v47 = vld [vmem:[%s5384_s18 + $0x58] sm:$0xff]   ;;  %v525_v49 = vld [vmem:[%s5384_s18 + $0xe8] sm:$0xff]  }
  0x36   : > { %v5504_v48 = vld [vmem:[%s5379_s14 + $0x98] sm:$0xff]  ;;  %v5510_v50 = vld [vmem:[%s5379_s14 + $0x90] sm:$0xff]  ;;  %v491_v51 = vld [vmem:[%s5384_s18 + $0x60] sm:$0xff]  }
  0x37   : > { %8397 = vst [vmem:[#allocation7_spill] sm:$0xff] %v5504_v48  ;;  %v527_v52 = vld [vmem:[%s5384_s18 + $0xf0] sm:$0xff]   ;;  %v5517_v53 = vld [vmem:[%s5379_s14 + $0xa8] sm:$0xff]  ;;  %v5520_v54 = vld [vmem:[%s5379_s14 + $0xa0] sm:$0xff] }
  0x38   : > { %8398 = vst [vmem:[#allocation8_spill] sm:$0xff] %v5517_v53  ;;  %v493_v55 = vld [vmem:[%s5384_s18 + $0x68] sm:$0xff]   ;;  %v5528_v56 = vld [vmem:[%s5379_s14 + $0xb8] sm:$0xff]  ;;  %v5534_v58 = vld [vmem:[%s5379_s14 + $0xb0] sm:$0xff] }
  0x39   : > { %1195 = vperm.xlu1 %4817, %v5432_v24   ;;  %1190 = vperm.xlu0 %4816, %v5438_v26   ;;  %8399 = vst [vmem:[#allocation9_spill] sm:$0xff] %v5528_v56  ;;  %v529_v57 = vld [vmem:[%s5384_s18 + $0xf8] sm:$0xff]   ;;  %8400 = vst [vmem:[#allocation10_spill] sm:$0xff] %v5534_v58  ;;  %v495_v59 = vld [vmem:[%s5384_s18 + $0x70] sm:$0xff]  }
  0x3a   : > { %v5540_v60 = vld [vmem:[%s5379_s14 + $0xc8] sm:$0xff]  ;;  %v5543_v61 = vld [vmem:[%s5379_s14 + $0xc0] sm:$0xff]  ;;  %v497_v63 = vld [vmem:[%s5384_s18 + $0x78] sm:$0xff]  }
  0x3b   : > { %4675 = vmatmul.mubr.msk.bf16.gmra.mrb[8].mxu0 %vm718_vm0, %v477_v23  ;;  %4711 = vmatmul.mubr.msk.bf16.gmra.mrb[8].mxu1 %vm718_vm0, %v513_v25  ;;  %v5552_v0 = vld [vmem:[%s5379_s14 + $0xd8] sm:$0xff]  ;;  %v5557_v1 = vld [vmem:[%s5379_s14 + $0xd0] sm:$0xff]  ;;  %v499_v2 = vld [vmem:[%s5384_s18 + $0x80] sm:$0xff]  }
  0x3c   : > { %4678 = vmatprep.mubr.msk.bf16.mxu0 %vm718_vm0, %v479_v27  ;;  %4714 = vmatprep.mubr.msk.bf16.mxu1 %vm718_vm0, %v515_v28  ;;  %8401 = vst [vmem:[#allocation11_spill] sm:$0xff] %v5552_v0  ;;  %8402 = vst [vmem:[#allocation12_spill] sm:$0xff] %v5557_v1  ;;  %v4855_v7 = vld [vmem:[%s5364_s7 + $0x8] sm:$0xff]   ;;  %v5567_v9 = vld [vmem:[%s5379_s14 + $0xe0] sm:$0xff]  ;;  %s8211_s7 = scalar_lea.hbm %s8270_s6, %s4623_s8 }
  0x3d   : > { %1205 = vperm.xlu1 %4817, %v5445_v29   ;;  %1200 = vperm.xlu0 %4816, %v5448_v30   ;;  %v5564_v8 = vld [vmem:[%s5379_s14 + $0xe8] sm:$0xff]  ;;  %8404 = vst [vmem:[#allocation14_spill] sm:$0xff] %v5567_v9  ;;  %v5575_v13 = vld [vmem:[%s5379_s14 + $0xf8] sm:$0xff]  ;;  %v5579_v14 = vld [vmem:[%s5379_s14 + $0xf0] sm:$0xff] }
  0x3e   : > { %8403 = vst [vmem:[#allocation13_spill] sm:$0xff] %v5564_v8  ;;  %v501_v10 = vld [vmem:[%s5384_s18 + $0x88] sm:$0xff]   ;;  %8405 = vst [vmem:[#allocation15_spill] sm:$0xff] %v5575_v13  ;;  %v5587_v17 = vld [vmem:[%s5379_s14 + $0x100] sm:$0xff] }
  0x3f   : > { %8406 = vst [vmem:[#allocation16_spill] sm:$0xff] %v5579_v14  ;;  %v5584_v15 = vld [vmem:[%s5379_s14 + $0x108] sm:$0xff]  ;;  %v5593_v19 = vld [vmem:[%s5379_s14 + $0x118] sm:$0xff]  ;;  %v5596_v20 = vld [vmem:[%s5379_s14 + $0x110] sm:$0xff] }
  0x40   : > { %8407 = vst [vmem:[#allocation17_spill] sm:$0xff] %v5593_v19  ;;  %8408 = vst [vmem:[#allocation18_spill] sm:$0xff] %v5596_v20  ;;  %v5601_v23 = vld [vmem:[%s5379_s14 + $0x128] sm:$0xff]  ;;  %v5604_v25 = vld [vmem:[%s5379_s14 + $0x120] sm:$0xff] }
  0x41   : > { %1215 = vperm.xlu1 %4817, %v5456_v32   ;;  %1210 = vperm.xlu0 %4816, %v5462_v34   ;;  %8409 = vst [vmem:[#allocation19_spill] sm:$0xff] %v5601_v23  ;;  %8410 = vst [vmem:[#allocation20_spill] sm:$0xff] %v5604_v25  ;;  %v5609_v27 = vld [vmem:[%s5379_s14 + $0x138] sm:$0xff]  ;;  %v5612_v28 = vld [vmem:[%s5379_s14 + $0x130] sm:$0xff] }
  0x42   : > { %8411 = vst [vmem:[#allocation21_spill] sm:$0xff] %v5612_v28 }
  0x43   : > { %4679 = vmatmul.mubr.msk.bf16.gmra.mrb[12].mxu0 %vm718_vm0, %v481_v31  ;;  %4715 = vmatmul.mubr.msk.bf16.gmra.mrb[12].mxu1 %vm718_vm0, %v517_v33  ;;  %v5617_v31 = vld [vmem:[%s5379_s14 + $0x148] sm:$0xff]  ;;  %v5620_v33 = vld [vmem:[%s5379_s14 + $0x140] sm:$0xff] }
  0x44   : > { %4682 = vmatprep.mubr.msk.bf16.mxu0 %vm718_vm0, %v483_v35  ;;  %4718 = vmatprep.mubr.msk.bf16.mxu1 %vm718_vm0, %v519_v36  ;;  %v5625_v35 = vld [vmem:[%s5379_s14 + $0x158] sm:$0xff]  ;;  %v5628_v36 = vld [vmem:[%s5379_s14 + $0x150] sm:$0xff] }
  0x45   : > { %1225 = vperm.xlu1 %4817, %v5469_v37   ;;  %1220 = vperm.xlu0 %4816, %v5472_v38   ;;  %8412 = vst [vmem:[#allocation22_spill] sm:$0xff] %v5625_v35  ;;  %8413 = vst [vmem:[#allocation23_spill] sm:$0xff] %v5628_v36 }
  0x49   : > { %1235 = vperm.xlu1 %4817, %v5480_v40   ;;  %1230 = vperm.xlu0 %4816, %v5486_v42  }
  0x4b   : > { %4683 = vmatmul.mubr.msk.bf16.gmra.mrb[16].mxu0 %vm718_vm0, %v485_v39  ;;  %4719 = vmatmul.mubr.msk.bf16.gmra.mrb[16].mxu1 %vm718_vm0, %v521_v41  ;;  %v5633_v39 = vld [vmem:[%s5379_s14 + $0x168] sm:$0xff]  ;;  %v5636_v41 = vld [vmem:[%s5379_s14 + $0x160] sm:$0xff] }
  0x4c   : > { %4686 = vmatprep.mubr.msk.bf16.mxu0 %vm718_vm0, %v487_v43  ;;  %4722 = vmatprep.mubr.msk.bf16.mxu1 %vm718_vm0, %v523_v44  ;;  %8414 = vst [vmem:[#allocation24_spill] sm:$0xff] %v5636_v41  ;;  %v5641_v43 = vld [vmem:[%s5379_s14 + $0x178] sm:$0xff]  ;;  %v5644_v44 = vld [vmem:[%s5379_s14 + $0x170] sm:$0xff] }
  0x4d   : > { %1245 = vperm.xlu1 %4817, %v5493_v45   ;;  %1240 = vperm.xlu0 %4816, %v5496_v46   ;;  %8415 = vst [vmem:[#allocation25_spill] sm:$0xff] %v5644_v44 }
  0x51   : > { %1255 = vperm.xlu1 %4817, %v5504_v48   ;;  %1250 = vperm.xlu0 %4816, %v5510_v50  }
  0x53   : > { %4687 = vmatmul.mubr.msk.bf16.gmra.mrb[20].mxu0 %vm718_vm0, %v489_v47  ;;  %4723 = vmatmul.mubr.msk.bf16.gmra.mrb[20].mxu1 %vm718_vm0, %v525_v49  ;;  %v5649_v47 = vld [vmem:[%s5379_s14 + $0x188] sm:$0xff]  ;;  %v5652_v49 = vld [vmem:[%s5379_s14 + $0x180] sm:$0xff] }
  0x54   : > { %4690 = vmatprep.mubr.msk.bf16.mxu0 %vm718_vm0, %v491_v51  ;;  %4726 = vmatprep.mubr.msk.bf16.mxu1 %vm718_vm0, %v527_v52  ;;  %v5657_v51 = vld [vmem:[%s5379_s14 + $0x198] sm:$0xff]  ;;  %v5660_v52 = vld [vmem:[%s5379_s14 + $0x190] sm:$0xff] }
  0x55   : > { %1265 = vperm.xlu1 %4817, %v5517_v53   ;;  %1260 = vperm.xlu0 %4816, %v5520_v54   ;;  %8416 = vst [vmem:[#allocation26_spill] sm:$0xff] %v5657_v51  ;;  %8417 = vst [vmem:[#allocation27_spill] sm:$0xff] %v5660_v52 }
  0x59   : > { %1275 = vperm.xlu1 %4817, %v5528_v56   ;;  %1270 = vperm.xlu0 %4816, %v5534_v58  }
  0x5b   : > { %4691 = vmatmul.mubr.msk.bf16.gmra.mrb[24].mxu0 %vm718_vm0, %v493_v55  ;;  %4727 = vmatmul.mubr.msk.bf16.gmra.mrb[24].mxu1 %vm718_vm0, %v529_v57  ;;  %v5665_v55 = vld [vmem:[%s5379_s14 + $0x1a8] sm:$0xff]  ;;  %v5668_v57 = vld [vmem:[%s5379_s14 + $0x1a0] sm:$0xff] }
  0x5c   : > { %4694 = vmatprep.mubr.msk.bf16.mxu0 %vm718_vm0, %v495_v59  ;;  %4730 = vmatprep.mubr.msk.bf16.mxu1 %vm718_vm0, %v4853_v62  ;;  %8418 = vst [vmem:[#allocation28_spill] sm:$0xff] %v5665_v55  ;;  %8419 = vst [vmem:[#allocation29_spill] sm:$0xff] %v5668_v57  ;;  %v5673_v59 = vld [vmem:[%s5379_s14 + $0x1b8] sm:$0xff]  ;;  %v5676_v62 = vld [vmem:[%s5379_s14 + $0x1b0] sm:$0xff] }
  0x5d   : > { %1285 = vperm.xlu1 %4817, %v5540_v60   ;;  %1280 = vperm.xlu0 %4816, %v5543_v61   ;;  %8420 = vst [vmem:[#allocation30_spill] sm:$0xff] %v5673_v59  ;;  %8421 = vst [vmem:[#allocation31_spill] sm:$0xff] %v5676_v62 }
  0x61   : > { %1295 = vperm.xlu1 %4817, %v5552_v0   ;;  %1290 = vperm.xlu0 %4816, %v5557_v1  }
  0x63   : > { %4695 = vmatmul.mubr.msk.bf16.gmra.mrb[28].mxu0 %vm718_vm0, %v497_v63  ;;  %4731 = vmatmul.mubr.msk.bf16.gmra.mrb[28].mxu1 %vm718_vm0, %v4855_v7  ;;  %v5681_v63 = vld [vmem:[%s5379_s14 + $0x1c8] sm:$0xff]  ;;  %v5689_v7 = vld [vmem:[%s5379_s14 + $0x1d8] sm:$0xff] }
  0x64   : > { %4698 = vmatprep.mubr.msk.bf16.mxu0 %vm718_vm0, %v499_v2  ;;  %8422 = vst [vmem:[#allocation32_spill] sm:$0xff] %v5681_v63  ;;  %v5684_v2 = vld [vmem:[%s5379_s14 + $0x1c0] sm:$0xff]  ;;  %8424 = vst [vmem:[#allocation34_spill] sm:$0xff] %v5689_v7 }
  0x65   : > { %1305 = vperm.xlu1 %4817, %v5564_v8   ;;  %1300 = vperm.xlu0 %4816, %v5567_v9   ;;  %8423 = vst [vmem:[#allocation33_spill] sm:$0xff] %v5684_v2 }
  0x69   : > { %1315 = vperm.xlu1 %4817, %v5575_v13   ;;  %1310 = vperm.xlu0 %4816, %v5579_v14  }
  0x6b   : > { %4699 = vmatmul.mubr.msk.bf16.gmra.mrb[32].mxu0 %vm718_vm0, %v501_v10  ;;  %v5692_v10 = vld [vmem:[%s5379_s14 + $0x1d0] sm:$0xff] }
  0x6c   : > { %8425 = vst [vmem:[#allocation35_spill] sm:$0xff] %v5692_v10 }
  0x6d   : > { %1325 = vperm.xlu1 %4817, %v5584_v15   ;;  %1320 = vperm.xlu0 %4816, %v5587_v17  }
  0x71   : > { %1335 = vperm.xlu1 %4817, %v5593_v19   ;;  %1330 = vperm.xlu0 %4816, %v5596_v20  }
  0x75   : > { %1345 = vperm.xlu1 %4817, %v5601_v23   ;;  %1340 = vperm.xlu0 %4816, %v5604_v25  }
  0x79   : > { %1355 = vperm.xlu1 %4817, %v5609_v27   ;;  %1350 = vperm.xlu0 %4816, %v5612_v28  }
  0x7d   : > { %1365 = vperm.xlu1 %4817, %v5617_v31   ;;  %1360 = vperm.xlu0 %4816, %v5620_v33  }
  0x81   : > { %1375 = vperm.xlu1 %4817, %v5625_v35   ;;  %1370 = vperm.xlu0 %4816, %v5628_v36  }
  0x85   : > { %1385 = vperm.xlu1 %4817, %v5633_v39   ;;  %1380 = vperm.xlu0 %4816, %v5636_v41  }
  0x89   : > { %1395 = vperm.xlu1 %4817, %v5641_v43   ;;  %1390 = vperm.xlu0 %4816, %v5644_v44  }
  0x8d   : > { %1405 = vperm.xlu1 %4817, %v5649_v47   ;;  %1400 = vperm.xlu0 %4816, %v5652_v49  }
  0x91   : > { %1415 = vperm.xlu1 %4817, %v5657_v51   ;;  %1410 = vperm.xlu0 %4816, %v5660_v52  }
  0x95   : > { %1425 = vperm.xlu1 %4817, %v5665_v55   ;;  %1420 = vperm.xlu0 %4816, %v5668_v57   ;;  %v5704_v57 = vld [vmem:[%s5379_s14 + $0x1e0] sm:$0xff] }
  0x99   : > { %1435 = vperm.xlu1 %4817, %v5673_v59   ;;  %1430 = vperm.xlu0 %4816, %v5676_v62   ;;  %v5697_v59 = vld [vmem:[%s5379_s14 + $0x1e8] sm:$0xff] }
  0x9d   : > { %1445 = vperm.xlu1 %4817, %v5681_v63   ;;  %1440 = vperm.xlu0 %4816, %v5684_v2   ;;  %v5709_v63 = vld [vmem:[%s5379_s14 + $0x1f8] sm:$0xff] }
  0x9e   : > { %8428 = vst [vmem:[#allocation38_spill] sm:$0xff] %v5709_v63 }
  0xa1   : > { %1455 = vperm.xlu1 %4817, %v5689_v7   ;;  %1450 = vperm.xlu0 %4816, %v5692_v10   ;;  %v5716_v7 = vld [vmem:[%s5379_s14 + $0x1f0] sm:$0xff]  ;;  %v5235_v10 = vmov 1  }
  0xa4   : > { %v5699_v62 = vpop.permute.xlu1 %1138  ;;  %v5701_v55 = vpop.permute.xlu0 %1128 }
  0xa5   : > { %8426 = vst [vmem:[#allocation36_spill] sm:$0xff] %v5699_v62  ;;  %8427 = vst [vmem:[#allocation37_spill] sm:$0xff] %v5701_v55  ;;  %1465 = vperm.xlu1 %4817, %v5697_v59   ;;  %1460 = vperm.xlu0 %4816, %v5704_v57  }
  0xa8   : > { %v5711_v2 = vpop.permute.xlu1 %1143  ;;  %v5713_v51 = vpop.permute.xlu0 %1133 }
  0xa9   : > { %8429 = vst [vmem:[#allocation39_spill] sm:$0xff] %v5711_v2  ;;  %8430 = vst [vmem:[#allocation40_spill] sm:$0xff] %v5713_v51  ;;  %1475 = vperm.xlu1 %4817, %v5709_v63   ;;  %1470 = vperm.xlu0 %4816, %v5716_v7  }
  0xac   : > { %v5720_v62 = vpop.permute.xlu1 %1165  ;;  %v5722_v55 = vpop.permute.xlu0 %1160 }
  0xad   : > { %8431 = vst [vmem:[#allocation41_spill] sm:$0xff] %v5720_v62  ;;  %8432 = vst [vmem:[#allocation42_spill] sm:$0xff] %v5722_v55  ;;  %4819 = vset.pattern.permute.xlu1 %v5235_v10  ;;  %4818 = vset.pattern.permute.xlu0 %v5235_v10 }
  0xae   : > { %1611 = vperm.xlu1 %4819, %v5374_v6   ;;  %1607 = vperm.xlu0 %4818, %v5368_v4  }
  0xb0   : > { %v5726_v2 = vpop.permute.xlu1 %1175  ;;  %v5728_v51 = vpop.permute.xlu0 %1170 }
  0xb1   : > { %8433 = vst [vmem:[#allocation43_spill] sm:$0xff] %v5726_v2  ;;  %8434 = vst [vmem:[#allocation44_spill] sm:$0xff] %v5728_v51 }
  0xb2   : > { %1615 = vperm.xlu1 %4819, %v5366_v3   ;;  %1619 = vperm.xlu0 %4818, %v5372_v5  }
  0xb4   : > { %v5732_v63 = vpop.permute.xlu1 %1185  ;;  %v5734_v62 = vpop.permute.xlu0 %1180 }
  0xb5   : > { %8435 = vst [vmem:[#allocation45_spill] sm:$0xff] %v5732_v63  ;;  %8436 = vst [vmem:[#allocation46_spill] sm:$0xff] %v5734_v62 }
  0xb6   : > { %1635 = vperm.xlu1 %4819, %v5396_v12   ;;  %1639 = vperm.xlu0 %4818, %v5393_v11  }
  0xb8   : > { %v5738_v10 = vpop.permute.xlu1 %1195  ;;  %v5740_v55 = vpop.permute.xlu0 %1190 }
  0xb9   : > { %8437 = vst [vmem:[#allocation47_spill] sm:$0xff] %v5738_v10  ;;  %8438 = vst [vmem:[#allocation48_spill] sm:$0xff] %v5740_v55 }
  0xba   : > { %1643 = vperm.xlu1 %4819, %v5414_v18   ;;  %1647 = vperm.xlu0 %4818, %v5408_v16  }
  0xbc   : > { %v5744_v2 = vpop.permute.xlu1 %1205  ;;  %v5746_v51 = vpop.permute.xlu0 %1200 }
  0xbd   : > { %8439 = vst [vmem:[#allocation49_spill] sm:$0xff] %v5744_v2  ;;  %8440 = vst [vmem:[#allocation50_spill] sm:$0xff] %v5746_v51 }
  0xbe   : > { %1651 = vperm.xlu1 %4819, %v5424_v22   ;;  %1655 = vperm.xlu0 %4818, %v5421_v21  }
  0xc0   : > { %v5750_v63 = vpop.permute.xlu1 %1215  ;;  %v5752_v62 = vpop.permute.xlu0 %1210 }
  0xc1   : > { %8441 = vst [vmem:[#allocation51_spill] sm:$0xff] %v5750_v63  ;;  %8442 = vst [vmem:[#allocation52_spill] sm:$0xff] %v5752_v62 }
  0xc2   : > { %1659 = vperm.xlu1 %4819, %v5438_v26   ;;  %1663 = vperm.xlu0 %4818, %v5432_v24  }
  0xc4   : > { %v5756_v10 = vpop.permute.xlu1 %1225  ;;  %v5758_v55 = vpop.permute.xlu0 %1220 }
  0xc5   : > { %8443 = vst [vmem:[#allocation53_spill] sm:$0xff] %v5756_v10  ;;  %8444 = vst [vmem:[#allocation54_spill] sm:$0xff] %v5758_v55 }
  0xc6   : > { %1667 = vperm.xlu1 %4819, %v5448_v30   ;;  %1671 = vperm.xlu0 %4818, %v5445_v29  }
  0xc8   : > { %v5762_v2 = vpop.permute.xlu1 %1235  ;;  %v5764_v51 = vpop.permute.xlu0 %1230 }
  0xc9   : > { %8445 = vst [vmem:[#allocation55_spill] sm:$0xff] %v5762_v2  ;;  %8446 = vst [vmem:[#allocation56_spill] sm:$0xff] %v5764_v51 }
  0xca   : > { %1675 = vperm.xlu1 %4819, %v5462_v34   ;;  %1679 = vperm.xlu0 %4818, %v5456_v32  }
  0xcc   : > { %v5768_v63 = vpop.permute.xlu1 %1245  ;;  %v5770_v62 = vpop.permute.xlu0 %1240 }
  0xcd   : > { %8447 = vst [vmem:[#allocation57_spill] sm:$0xff] %v5768_v63  ;;  %8448 = vst [vmem:[#allocation58_spill] sm:$0xff] %v5770_v62 }
  0xce   : > { %1683 = vperm.xlu1 %4819, %v5472_v38   ;;  %1687 = vperm.xlu0 %4818, %v5469_v37  }
  0xd0   : > { %v5774_v10 = vpop.permute.xlu1 %1255  ;;  %v5776_v55 = vpop.permute.xlu0 %1250 }
  0xd1   : > { %8449 = vst [vmem:[#allocation59_spill] sm:$0xff] %v5774_v10  ;;  %8450 = vst [vmem:[#allocation60_spill] sm:$0xff] %v5776_v55 }
  0xd2   : > { %1691 = vperm.xlu1 %4819, %v5486_v42   ;;  %1695 = vperm.xlu0 %4818, %v5480_v40  }
  0xd4   : > { %v5780_v2 = vpop.permute.xlu1 %1265  ;;  %v5782_v51 = vpop.permute.xlu0 %1260 }
  0xd5   : > { %8451 = vst [vmem:[#allocation61_spill] sm:$0xff] %v5780_v2  ;;  %8452 = vst [vmem:[#allocation62_spill] sm:$0xff] %v5782_v51 }
  0xd6   : > { %1699 = vperm.xlu1 %4819, %v5496_v46   ;;  %1703 = vperm.xlu0 %4818, %v5493_v45  }
  0xd8   : > { %v5786_v63 = vpop.permute.xlu1 %1275  ;;  %v5788_v62 = vpop.permute.xlu0 %1270 }
  0xd9   : > { %8453 = vst [vmem:[#allocation63_spill] sm:$0xff] %v5786_v63  ;;  %8454 = vst [vmem:[#allocation64_spill] sm:$0xff] %v5788_v62 }
  0xda   : > { %1707 = vperm.xlu1 %4819, %v5510_v50   ;;  %1711 = vperm.xlu0 %4818, %v5504_v48  }
  0xdc   : > { %v5792_v10 = vpop.permute.xlu1 %1285  ;;  %v5794_v55 = vpop.permute.xlu0 %1280 }
  0xdd   : > { %8455 = vst [vmem:[#allocation65_spill] sm:$0xff] %v5792_v10  ;;  %8456 = vst [vmem:[#allocation66_spill] sm:$0xff] %v5794_v55 }
  0xde   : > { %1715 = vperm.xlu1 %4819, %v5520_v54   ;;  %1719 = vperm.xlu0 %4818, %v5517_v53   ;;  %v5236_v53 = vmov 2  }
  0xe0   : > { %v5798_v2 = vpop.permute.xlu1 %1295  ;;  %v5800_v46 = vpop.permute.xlu0 %1290 }
  0xe1   : > { %8457 = vst [vmem:[#allocation67_spill] sm:$0xff] %v5798_v2  ;;  %8458 = vst [vmem:[#allocation68_spill] sm:$0xff] %v5800_v46 }
  0xe2   : > { %1723 = vperm.xlu1 %4819, %v5534_v58   ;;  %1727 = vperm.xlu0 %4818, %v5528_v56  }
  0xe4   : > { %v5804_v45 = vpop.permute.xlu1 %1305  ;;  %v5806_v63 = vpop.permute.xlu0 %1300 }
  0xe5   : > { %8459 = vst [vmem:[#allocation69_spill] sm:$0xff] %v5804_v45  ;;  %8460 = vst [vmem:[#allocation70_spill] sm:$0xff] %v5806_v63  ;;  %v8517_v63 = vld [vmem:[#allocation32_spill] sm:$0xff] }
  0xe6   : > { %1731 = vperm.xlu1 %4819, %v5543_v61   ;;  %1735 = vperm.xlu0 %4818, %v5540_v60  }
  0xe8   : > { %v5810_v10 = vpop.permute.xlu1 %1315  ;;  %v5812_v55 = vpop.permute.xlu0 %1310 }
  0xe9   : > { %8461 = vst [vmem:[#allocation71_spill] sm:$0xff] %v5810_v10  ;;  %8462 = vst [vmem:[#allocation72_spill] sm:$0xff] %v5812_v55 }
  0xea   : > { %1739 = vperm.xlu1 %4819, %v5557_v1   ;;  %1743 = vperm.xlu0 %4818, %v5552_v0  }
  0xec   : > { %v5816_v2 = vpop.permute.xlu1 %1325  ;;  %v5818_v46 = vpop.permute.xlu0 %1320 }
  0xed   : > { %8463 = vst [vmem:[#allocation73_spill] sm:$0xff] %v5816_v2  ;;  %8464 = vst [vmem:[#allocation74_spill] sm:$0xff] %v5818_v46 }
  0xee   : > { %1747 = vperm.xlu1 %4819, %v5567_v9   ;;  %1751 = vperm.xlu0 %4818, %v5564_v8  }
  0xf0   : > { %v5822_v45 = vpop.permute.xlu1 %1335  ;;  %v5824_v61 = vpop.permute.xlu0 %1330 }
  0xf1   : > { %8465 = vst [vmem:[#allocation75_spill] sm:$0xff] %v5822_v45  ;;  %8466 = vst [vmem:[#allocation76_spill] sm:$0xff] %v5824_v61 }
  0xf2   : > { %1755 = vperm.xlu1 %4819, %v5579_v14   ;;  %1759 = vperm.xlu0 %4818, %v5575_v13   ;;  %v8509_v14 = vld [vmem:[#allocation31_spill] sm:$0xff] }
  0xf4   : > { %v5828_v60 = vpop.permute.xlu1 %1345  ;;  %v5830_v10 = vpop.permute.xlu0 %1340 }
  0xf5   : > { %8467 = vst [vmem:[#allocation77_spill] sm:$0xff] %v5828_v60  ;;  %8468 = vst [vmem:[#allocation78_spill] sm:$0xff] %v5830_v10 }
  0xf6   : > { %1763 = vperm.xlu1 %4819, %v5587_v17   ;;  %1767 = vperm.xlu0 %4818, %v5584_v15  }
  0xf8   : > { %v5834_v2 = vpop.permute.xlu1 %1355  ;;  %v5836_v46 = vpop.permute.xlu0 %1350 }
  0xf9   : > { %8469 = vst [vmem:[#allocation79_spill] sm:$0xff] %v5834_v2  ;;  %8470 = vst [vmem:[#allocation80_spill] sm:$0xff] %v5836_v46 }
  0xfa   : > { %1771 = vperm.xlu1 %4819, %v5596_v20   ;;  %1775 = vperm.xlu0 %4818, %v5593_v19   ;;  %v8505_v19 = vld [vmem:[#allocation28_spill] sm:$0xff] }
  0xfc   : > { %v5840_v45 = vpop.permute.xlu1 %1365  ;;  %v5842_v61 = vpop.permute.xlu0 %1360 }
  0xfd   : > { %8471 = vst [vmem:[#allocation81_spill] sm:$0xff] %v5840_v45  ;;  %8472 = vst [vmem:[#allocation82_spill] sm:$0xff] %v5842_v61 }
  0xfe   : > { %1779 = vperm.xlu1 %4819, %v5604_v25   ;;  %1783 = vperm.xlu0 %4818, %v5601_v23   ;;  %v5846_v10 = vpop.f32.mrb[0].mxu0  ;;  %v5850_v15 = vpop.f32.mrb[0].mxu1 }
  0xff   : > { %8474 = vst [vmem:[#allocation84_spill] sm:$0xff] %v5850_v15  ;;  %v5852_v2 = vpop.f32.mrb[1].mxu0  ;;  %v5854_v46 = vpop.f32.mrb[1].mxu1 }
 0x100   : > { %v5848_v17 = vpop.permute.xlu1 %1375  ;;  %8475 = vst [vmem:[#allocation85_spill] sm:$0xff] %v5854_v46  ;;  %v5856_v60 = vpop.f32.mrb[2].mxu0 }
 0x101   : > { %8473 = vst [vmem:[#allocation83_spill] sm:$0xff] %v5848_v17  ;;  %v5859_v45 = vpop.f32.mrb[2].mxu1  ;;  %v5861_v61 = vpop.f32.mrb[3].mxu0 }
 0x102   : > { %1787 = vperm.xlu1 %4819, %v5612_v28   ;;  %8476 = vst [vmem:[#allocation86_spill] sm:$0xff] %v5859_v45  ;;  %1791 = vperm.xlu0 %4818, %v5609_v27   ;;  %v5864_v23 = vpop.f32.mrb[3].mxu1  ;;  %v5866_v13 = vpop.permute.xlu0 %1370 }
 0x103   : > { %8477 = vst [vmem:[#allocation87_spill] sm:$0xff] %v5864_v23  ;;  %8478 = vst [vmem:[#allocation88_spill] sm:$0xff] %v5866_v13 }
 0x104   : > { %v5868_v17 = vpop.permute.xlu1 %1385 }
 0x105   : > { %8479 = vst [vmem:[#allocation89_spill] sm:$0xff] %v5868_v17 }
 0x106   : > { %1795 = vperm.xlu1 %4819, %v5620_v33   ;;  %1799 = vperm.xlu0 %4818, %v5617_v31   ;;  %v5872_v46 = vpop.f32.mrb[4].mxu0  ;;  %v5874_v15 = vpop.permute.xlu0 %1380 }
 0x107   : > { %8480 = vst [vmem:[#allocation90_spill] sm:$0xff] %v5874_v15  ;;  %v5876_v28 = vpop.f32.mrb[4].mxu1  ;;  %v5878_v45 = vpop.f32.mrb[5].mxu0 }
 0x108   : > { %8481 = vst [vmem:[#allocation91_spill] sm:$0xff] %v5876_v28  ;;  %v5880_v25 = vpop.f32.mrb[5].mxu1  ;;  %v5882_v27 = vpop.f32.mrb[6].mxu0 }
 0x109   : > { %8482 = vst [vmem:[#allocation92_spill] sm:$0xff] %v5880_v25  ;;  %v5885_v13 = vpop.f32.mrb[6].mxu1  ;;  %v5887_v17 = vpop.f32.mrb[7].mxu0 }
 0x10a   : > { %1803 = vperm.xlu1 %4819, %v5628_v36   ;;  %8483 = vst [vmem:[#allocation93_spill] sm:$0xff] %v5885_v13  ;;  %1807 = vperm.xlu0 %4818, %v5625_v35   ;;  %v5890_v31 = vpop.f32.mrb[7].mxu1  ;;  %v5892_v33 = vpop.permute.xlu1 %1395 }
 0x10b   : > { %8484 = vst [vmem:[#allocation94_spill] sm:$0xff] %v5890_v31  ;;  %8485 = vst [vmem:[#allocation95_spill] sm:$0xff] %v5892_v33  ;;  %v5894_v15 = vpop.permute.xlu0 %1390 }
 0x10c   : > { %8486 = vst [vmem:[#allocation96_spill] sm:$0xff] %v5894_v15 }
 0x10e   : > { %1811 = vperm.xlu1 %4819, %v5636_v41   ;;  %1815 = vperm.xlu0 %4818, %v5633_v39   ;;  %v5898_v28 = vpop.f32.mrb[8].mxu0  ;;  %v5900_v25 = vpop.permute.xlu1 %1405 }
 0x10f   : > { %8487 = vst [vmem:[#allocation97_spill] sm:$0xff] %v5900_v25  ;;  %v5902_v23 = vpop.f32.mrb[8].mxu1  ;;  %v5904_v13 = vpop.permute.xlu0 %1400 }
 0x110   : > { %8488 = vst [vmem:[#allocation98_spill] sm:$0xff] %v5902_v23  ;;  %8489 = vst [vmem:[#allocation99_spill] sm:$0xff] %v5904_v13  ;;  %v5906_v36 = vpop.f32.mrb[9].mxu0  ;;  %v5908_v35 = vpop.f32.mrb[9].mxu1 }
 0x111   : > { %8490 = vst [vmem:[#allocation100_spill] sm:$0xff] %v5908_v35  ;;  %v5911_v33 = vpop.f32.mrb[10].mxu0  ;;  %v5913_v15 = vpop.f32.mrb[10].mxu1 }
 0x112   : > { %1819 = vperm.xlu1 %4819, %v5644_v44   ;;  %8491 = vst [vmem:[#allocation101_spill] sm:$0xff] %v5913_v15  ;;  %1823 = vperm.xlu0 %4818, %v5641_v43   ;;  %v5916_v39 = vpop.f32.mrb[11].mxu0  ;;  %v5918_v31 = vpop.f32.mrb[11].mxu1 }
 0x113   : > { %8492 = vst [vmem:[#allocation102_spill] sm:$0xff] %v5918_v31  ;;  %v5920_v25 = vpop.permute.xlu1 %1415  ;;  %v5922_v23 = vpop.permute.xlu0 %1410 }
 0x114   : > { %8493 = vst [vmem:[#allocation103_spill] sm:$0xff] %v5920_v25  ;;  %8494 = vst [vmem:[#allocation104_spill] sm:$0xff] %v5922_v23  ;;  %v8499_v23 = vld [vmem:[#allocation26_spill] sm:$0xff] }
 0x116   : > { %1827 = vperm.xlu1 %4819, %v5652_v49   ;;  %1831 = vperm.xlu0 %4818, %v5649_v47   ;;  %v5926_v13 = vpop.f32.mrb[12].mxu0  ;;  %v5928_v35 = vpop.f32.mrb[12].mxu1 }
 0x117   : > { %8495 = vst [vmem:[#allocation105_spill] sm:$0xff] %v5928_v35  ;;  %v5930_v44 = vpop.permute.xlu1 %1425  ;;  %v5932_v15 = vpop.permute.xlu0 %1420 }
 0x118   : > { %8496 = vst [vmem:[#allocation106_spill] sm:$0xff] %v5930_v44  ;;  %8497 = vst [vmem:[#allocation107_spill] sm:$0xff] %v5932_v15  ;;  %v5934_v43 = vpop.f32.mrb[13].mxu0  ;;  %v5937_v31 = vpop.f32.mrb[13].mxu1  ;;  %v8504_v15 = vld [vmem:[#allocation29_spill] sm:$0xff] }
 0x119   : > { %8498 = vst [vmem:[#allocation108_spill] sm:$0xff] %v5937_v31  ;;  %v5939_v25 = vpop.f32.mrb[14].mxu0  ;;  %v5942_v49 = vpop.f32.mrb[14].mxu1 }
 0x11a   : > { %1835 = vperm.xlu1 %4819, %v5660_v52   ;;  %1839 = vperm.xlu0 %4818, %v8499_v23   ;;  %8500 = vst [vmem:[#allocation26_spill] sm:$0xff] %v5942_v49  ;;  %v5944_v47 = vpop.f32.mrb[15].mxu0  ;;  %v5946_v41 = vpop.f32.mrb[15].mxu1 }
 0x11b   : > { %8501 = vst [vmem:[#allocation109_spill] sm:$0xff] %v5946_v41  ;;  %v5948_v35 = vpop.permute.xlu1 %1435  ;;  %v5950_v44 = vpop.permute.xlu0 %1430 }
 0x11c   : > { %8502 = vst [vmem:[#allocation110_spill] sm:$0xff] %v5948_v35  ;;  %8503 = vst [vmem:[#allocation111_spill] sm:$0xff] %v5950_v44  ;;  %v8511_v44 = vld [vmem:[#allocation30_spill] sm:$0xff] }
 0x11e   : > { %1843 = vperm.xlu1 %4819, %v8504_v15   ;;  %1847 = vperm.xlu0 %4818, %v8505_v19   ;;  %v5954_v52 = vpop.f32.mrb[16].mxu0  ;;  %v5956_v31 = vpop.f32.mrb[16].mxu1 }
 0x11f   : > { %8506 = vst [vmem:[#allocation28_spill] sm:$0xff] %v5956_v31  ;;  %v5958_v55 = vpop.permute.xlu1 %1445  ;;  %v5960_v23 = vpop.permute.xlu0 %1440 }
 0x120   : > { %8507 = vst [vmem:[#allocation112_spill] sm:$0xff] %v5958_v55  ;;  %8508 = vst [vmem:[#allocation113_spill] sm:$0xff] %v5960_v23  ;;  %v5962_v49 = vpop.f32.mrb[17].mxu0  ;;  %v5965_v41 = vpop.f32.mrb[17].mxu1  ;;  %v8516_v23 = vld [vmem:[#allocation33_spill] sm:$0xff] }
 0x121   : > { %8510 = vst [vmem:[#allocation31_spill] sm:$0xff] %v5965_v41  ;;  %v5967_v35 = vpop.f32.mrb[18].mxu0  ;;  %v5970_v15 = vpop.f32.mrb[18].mxu1 }
 0x122   : > { %1851 = vperm.xlu1 %4819, %v8509_v14   ;;  %1855 = vperm.xlu0 %4818, %v8511_v44   ;;  %8512 = vst [vmem:[#allocation30_spill] sm:$0xff] %v5970_v15  ;;  %v5972_v19 = vpop.f32.mrb[19].mxu0  ;;  %v5974_v8 = vpop.f32.mrb[19].mxu1  ;;  %v1146_v14 = vlaneseq }
 0x123   : > { %8513 = vst [vmem:[#allocation114_spill] sm:$0xff] %v5974_v8  ;;  %v5976_v31 = vpop.permute.xlu1 %1455  ;;  %v5978_v55 = vpop.permute.xlu0 %1450  ;;  %v8523_v8 = vld [vmem:[#allocation35_spill] sm:$0xff] }
 0x124   : > { %8514 = vst [vmem:[#allocation115_spill] sm:$0xff] %v5976_v31  ;;  %8515 = vst [vmem:[#allocation116_spill] sm:$0xff] %v5978_v55 }
 0x126   : > { %1859 = vperm.xlu1 %4819, %v8516_v23   ;;  %1863 = vperm.xlu0 %4818, %v8517_v63   ;;  %v5982_v41 = vpop.f32.mrb[20].mxu0  ;;  %v5984_v20 = vpop.f32.mrb[20].mxu1  ;;  %v8526_v23 = vld [vmem:[#allocation34_spill] sm:$0xff]  ;;  %v5998_v63 = vshrl.u32 %v1146_v14, 7  ;;  %v6020_v14 = vld [vmem:[%s8264_s0] sm:$0x7] }
 0x127   : > { %8518 = vst [vmem:[#allocation33_spill] sm:$0xff] %v5982_v41  ;;  %8519 = vst [vmem:[#allocation32_spill] sm:$0xff] %v5984_v20  ;;  %v5986_v44 = vpop.permute.xlu1 %1465  ;;  %v5988_v15 = vpop.permute.xlu0 %1460 }
 0x128   : > { %8520 = vst [vmem:[#allocation117_spill] sm:$0xff] %v5986_v44  ;;  %8521 = vst [vmem:[#allocation118_spill] sm:$0xff] %v5988_v15  ;;  %v5990_v56 = vpop.f32.mrb[21].mxu0  ;;  %v5993_v31 = vpop.f32.mrb[21].mxu1 }
 0x129   : > { %8522 = vst [vmem:[#allocation119_spill] sm:$0xff] %v5990_v56  ;;  %8524 = vst [vmem:[#allocation120_spill] sm:$0xff] %v5993_v31  ;;  %v5995_v55 = vpop.f32.mrb[22].mxu0  ;;  %v6000_v9 = vpop.f32.mrb[22].mxu1  ;;  %v6013_v31 = vsub.s32 0, %v5998_v63 }
 0x12a   : > { %1867 = vperm.xlu1 %4819, %v8523_v8   ;;  %8525 = vst [vmem:[#allocation121_spill] sm:$0xff] %v5995_v55  ;;  %1871 = vperm.xlu0 %4818, %v8526_v23   ;;  %8527 = vst [vmem:[#allocation34_spill] sm:$0xff] %v5998_v63  ;;  %v6002_v0 = vpop.f32.mrb[23].mxu0  ;;  %v6004_v20 = vpop.f32.mrb[23].mxu1 }
 0x12b   : > { %8528 = vst [vmem:[#allocation122_spill] sm:$0xff] %v6000_v9  ;;  %8529 = vst [vmem:[#allocation123_spill] sm:$0xff] %v6002_v0  ;;  %v6006_v44 = vpop.permute.xlu1 %1475  ;;  %v6008_v15 = vpop.permute.xlu0 %1470  ;;  %v6035_v58 = vrot.slane %v6020_v14, %v6013_v31 }
 0x12c   : > { %8530 = vst [vmem:[#allocation124_spill] sm:$0xff] %v6004_v20  ;;  %8531 = vst [vmem:[#allocation125_spill] sm:$0xff] %v6006_v44 }
 0x12d   : > { %8532 = vst [vmem:[#allocation126_spill] sm:$0xff] %v6008_v15  ;;  %8533 = vst [vmem:[#allocation127_spill] sm:$0xff] %v6013_v31 }
 0x12e   : > { %1875 = vperm.xlu1 %4819, %v5704_v57   ;;  %1879 = vperm.xlu0 %4818, %v5697_v59   ;;  %v6015_v23 = vpop.f32.mrb[24].mxu0  ;;  %8535 = vst [vmem:[#allocation129_spill] sm:$0xff] %v6020_v14  ;;  %v6022_v9 = vpop.f32.mrb[24].mxu1  ;;  %v1624_v57 = vsub.s32 1, %v5998_v63 }
 0x12f   : > { %8534 = vst [vmem:[#allocation128_spill] sm:$0xff] %v6015_v23  ;;  %8536 = vst [vmem:[#allocation130_spill] sm:$0xff] %v6022_v9  ;;  %v6024_v20 = vpop.f32.mrb[25].mxu0  ;;  %v6026_v44 = vpop.f32.mrb[25].mxu1  ;;  %v8540_v23 = vld [vmem:[#allocation38_spill] sm:$0xff] }
 0x130   : > { %8537 = vst [vmem:[#allocation131_spill] sm:$0xff] %v6024_v20  ;;  %8538 = vst [vmem:[#allocation132_spill] sm:$0xff] %v6026_v44  ;;  %v1612_v15 = vpop.permute.xlu1 %1611  ;;  %v1608_v59 = vpop.permute.xlu0 %1607 }
 0x131   : > { %v6030_v8 = vpop.f32.mrb[26].mxu0  ;;  %v6037_v55 = vpop.f32.mrb[26].mxu1 }
 0x132   : > { %1883 = vperm.xlu1 %4819, %v5716_v7   ;;  %8539 = vst [vmem:[#allocation133_spill] sm:$0xff] %v6030_v8  ;;  %1887 = vperm.xlu0 %4818, %v8540_v23   ;;  %8541 = vst [vmem:[#allocation38_spill] sm:$0xff] %v6037_v55  ;;  %v6039_v9 = vpop.f32.mrb[27].mxu0  ;;  %v6041_v20 = vpop.f32.mrb[27].mxu1  ;;  %v6044_v7 = vrot.slane %v6020_v14, %v1624_v57  ;;  %v8544_v23 = vld [vmem:[#allocation36_spill] sm:$0xff]  ;;  %v8546_v55 = vld [vmem:[#allocation37_spill] sm:$0xff] }
 0x133   : > { %8542 = vst [vmem:[#allocation134_spill] sm:$0xff] %v6039_v9  ;;  %8543 = vst [vmem:[#allocation135_spill] sm:$0xff] %v6041_v20  ;;  %v1152_v31 = vmul.f32 %v6035_v58, %v8544_v23  ;;  %v1150_v20 = vmul.f32 %v6035_v58, %v8546_v55  ;;  %v8547_v9 = vld [vmem:[#allocation42_spill] sm:$0xff]  ;;  %v8550_v23 = vld [vmem:[#allocation41_spill] sm:$0xff] }
 0x134   : > { %v1616_v44 = vpop.permute.xlu1 %1615  ;;  %v1620_v63 = vpop.permute.xlu0 %1619  ;;  %v1478_v41 = vmul.f32 %v8547_v9, %v6035_v58  ;;  %v1626_v57 = vmul.f32 %v6044_v7, %v1608_v59  ;;  %v1479_v1 = vmul.f32 %v8550_v23, %v6035_v58 }
 0x135   : > { %v1629_v9 = vmul.f32 %v6044_v7, %v1620_v63 }
 0x136   : > { %4820 = vset.pattern.permute.xlu1 %v5236_v53  ;;  %4821 = vset.pattern.permute.xlu0 %v5236_v53  ;;  %v6049_v8 = vpop.f32.mrb[28].mxu0  ;;  %v4732_v14 = vpop.f32.mrb[28].mxu1  ;;  %v8549_v53 = vld [vmem:[#allocation39_spill] sm:$0xff]  ;;  %v1542_v55 = vadd.f32 %v1478_v41, %v5852_v2 }
 0x137   : > { %2019 = vperm.xlu1 %4820, %v5368_v4   ;;  %8545 = vst [vmem:[#allocation36_spill] sm:$0xff] %v6049_v8  ;;  %2023 = vperm.xlu0 %4821, %v5374_v6   ;;  %v6057_v62 = vpop.f32.mrb[29].mxu0  ;;  %v1153_v4 = vmul.f32 %v6035_v58, %v8549_v53  ;;  %v1628_v8 = vmul.f32 %v6044_v7, %v1616_v44  ;;  %v1111_v0 = vpop.f32.mrb[29].mxu1  ;;  %v8552_v53 = vld [vmem:[#allocation40_spill] sm:$0xff] }
 0x138   : > { %8548 = vst [vmem:[#allocation37_spill] sm:$0xff] %v6057_v62  ;;  %v1156_v6 = vadd.f32 %v4732_v14, %v1152_v31  ;;  %v1636_v48 = vpop.permute.xlu1 %1635  ;;  %v1154_v56 = vadd.f32 %v1150_v20, %v1111_v0  ;;  %v1640_v51 = vpop.permute.xlu0 %1639  ;;  %v1151_v23 = vmul.f32 %v6035_v58, %v8552_v53  ;;  %v1543_v44 = vadd.f32 %v1479_v1, %v5861_v61  ;;  %v8555_v1 = vld [vmem:[#allocation43_spill] sm:$0xff] }
 0x139   : > { %v1890_v59 = vmul.f32 %v1636_v48, %v6044_v7  ;;  %v6067_v62 = vpop.f32.mrb[30].mxu0  ;;  %v1891_v14 = vmul.f32 %v1640_v51, %v6044_v7  ;;  %v4733_v41 = vpop.f32.mrb[30].mxu1  ;;  %v8554_v48 = vld [vmem:[#allocation44_spill] sm:$0xff]  ;;  %v1627_v61 = vmul.f32 %v6044_v7, %v1612_v15 }
 0x13a   : > { %8551 = vst [vmem:[#allocation42_spill] sm:$0xff] %v6067_v62  ;;  %v6073_v31 = vadd.f32 %v1628_v8, %v1156_v6  ;;  %v6076_v2 = vpop.f32.mrb[31].mxu0  ;;  %v1480_v0 = vmul.f32 %v8554_v48, %v6035_v58  ;;  %v6081_v20 = vadd.f32 %v1626_v57, %v1154_v56  ;;  %v1157_v63 = vadd.f32 %v4733_v41, %v1153_v4  ;;  %v1114_v53 = vpop.f32.mrb[31].mxu1 }
 0x13b   : > { %2027 = vperm.xlu1 %4820, %v5366_v3   ;;  %2047 = vperm.xlu0 %4821, %v5396_v12   ;;  %v6083_v3 = vadd.f32 %v1890_v59, %v1542_v55  ;;  %v1481_v8 = vmul.f32 %v8555_v1, %v6035_v58  ;;  %v6088_v51 = vadd.f32 %v1891_v14, %v1543_v44 }
 0x13c   : > { %8553 = vst [vmem:[#allocation39_spill] sm:$0xff] %v6073_v31  ;;  %v1155_v6 = vadd.f32 %v1151_v23, %v1114_v53  ;;  %v1644_v31 = vpop.permute.xlu1 %1643  ;;  %v1544_v12 = vadd.f32 %v5846_v10, %v1480_v0  ;;  %v6091_v62 = vadd.f32 %v1629_v9, %v1157_v63  ;;  %v1648_v57 = vpop.permute.xlu0 %1647  ;;  %v8556_v23 = vld [vmem:[#allocation46_spill] sm:$0xff] }
 0x13d   : > { %v1892_v56 = vmul.f32 %v1644_v31, %v6044_v7  ;;  %v1545_v4 = vadd.f32 %v5856_v60, %v1481_v8  ;;  %v1893_v59 = vmul.f32 %v1648_v57, %v6044_v7  ;;  %v1482_v10 = vmul.f32 %v8556_v23, %v6035_v58  ;;  %v8557_v31 = vld [vmem:[#allocation45_spill] sm:$0xff]  ;;  %v8558_v8 = vld [vmem:[#allocation48_spill] sm:$0xff]  ;;  %v8560_v23 = vld [vmem:[#allocation50_spill] sm:$0xff] }
 0x13e   : > { %v6096_v55 = vadd.f32 %v1627_v61, %v1155_v6  ;;  %v6099_v15 = vpop.f32.mrb[32].mxu0  ;;  %v1484_v61 = vmul.f32 %v8558_v8, %v6035_v58 }
 0x13f   : > { %2031 = vperm.xlu1 %4820, %v5372_v5   ;;  %2055 = vperm.xlu0 %4821, %v5414_v18   ;;  %v6104_v9 = vadd.f32 %v1892_v56, %v1544_v12  ;;  %v6106_v44 = vpop.f32.mrb[33].mxu0  ;;  %v1483_v5 = vmul.f32 %v8557_v31, %v6035_v58  ;;  %v6110_v14 = vadd.f32 %v1893_v59, %v1545_v4 }
 0x140   : > { %v1652_v60 = vpop.permute.xlu1 %1651  ;;  %v6112_v41 = vpop.f32.mrb[34].mxu0  ;;  %v1546_v48 = vadd.f32 %v1482_v10, %v5878_v45  ;;  %v8559_v45 = vld [vmem:[#allocation47_spill] sm:$0xff]  ;;  %v1548_v4 = vadd.f32 %v5872_v46, %v1484_v61  ;;  %v1486_v10 = vmul.f32 %v8560_v23, %v6035_v58 }
 0x141   : > { %v1894_v0 = vmul.f32 %v1652_v60, %v6044_v7  ;;  %v1656_v18 = vpop.permute.xlu0 %1655  ;;  %v6116_v63 = vpop.f32.mrb[35].mxu0  ;;  %v1547_v53 = vadd.f32 %v1483_v5, %v5887_v17  ;;  %v1485_v12 = vmul.f32 %v8559_v45, %v6035_v58  ;;  %v8561_v5 = vld [vmem:[#allocation49_spill] sm:$0xff]  ;;  %v8563_v61 = vld [vmem:[#allocation51_spill] sm:$0xff] }
 0x142   : > { %v1895_v1 = vmul.f32 %v1656_v18, %v6044_v7  ;;  %v1487_v60 = vmul.f32 %v8561_v5, %v6035_v58  ;;  %v1489_v45 = vmul.f32 %v8563_v61, %v6035_v58  ;;  %v8568_v61 = vld [vmem:[#allocation58_spill] sm:$0xff] }
 0x143   : > { %2051 = vperm.xlu1 %4820, %v5393_v11   ;;  %2063 = vperm.xlu0 %4821, %v5424_v22   ;;  %v6124_v6 = vadd.f32 %v1894_v0, %v1546_v48  ;;  %v1549_v22 = vadd.f32 %v5882_v27, %v1485_v12  ;;  %v1550_v0 = vadd.f32 %v1486_v10, %v5906_v36 }
 0x144   : > { %v6128_v56 = vadd.f32 %v1895_v1, %v1547_v53  ;;  %v1660_v57 = vpop.permute.xlu1 %1659  ;;  %v8562_v53 = vld [vmem:[#allocation52_spill] sm:$0xff] }
 0x145   : > { %v1896_v11 = vmul.f32 %v1660_v57, %v6044_v7  ;;  %v1664_v17 = vpop.permute.xlu0 %1663  ;;  %v1488_v1 = vmul.f32 %v8562_v53, %v6035_v58 }
 0x146   : > { %v1897_v59 = vmul.f32 %v1664_v17, %v6044_v7 }
 0x147   : > { %2059 = vperm.xlu1 %4820, %v5408_v16   ;;  %2071 = vperm.xlu0 %4821, %v5438_v26   ;;  %v6138_v31 = vadd.f32 %v1896_v11, %v1548_v4  ;;  %v1551_v26 = vadd.f32 %v1487_v60, %v5916_v39  ;;  %v1552_v57 = vadd.f32 %v5898_v28, %v1488_v1  ;;  %v8564_v11 = vld [vmem:[#allocation54_spill] sm:$0xff] }
 0x148   : > { %v6142_v46 = vadd.f32 %v1897_v59, %v1549_v22  ;;  %v1668_v48 = vpop.permute.xlu1 %1667  ;;  %v1490_v17 = vmul.f32 %v8564_v11, %v6035_v58  ;;  %v8565_v59 = vld [vmem:[#allocation53_spill] sm:$0xff]  ;;  %v8570_v11 = vld [vmem:[#allocation60_spill] sm:$0xff] }
 0x149   : > { %v1898_v16 = vmul.f32 %v1668_v48, %v6044_v7  ;;  %v1672_v27 = vpop.permute.xlu0 %1671  ;;  %v1491_v23 = vmul.f32 %v8565_v59, %v6035_v58  ;;  %v8566_v48 = vld [vmem:[#allocation56_spill] sm:$0xff] }
 0x14a   : > { %v1899_v18 = vmul.f32 %v1672_v27, %v6044_v7  ;;  %v1554_v5 = vadd.f32 %v1490_v17, %v5934_v43  ;;  %v8567_v27 = vld [vmem:[#allocation55_spill] sm:$0xff]  ;;  %v1496_v17 = vmul.f32 %v8570_v11, %v6035_v58 }
 0x14b   : > { %2067 = vperm.xlu1 %4820, %v5421_v21   ;;  %2079 = vperm.xlu0 %4821, %v5448_v30   ;;  %v6152_v8 = vadd.f32 %v1898_v16, %v1550_v0  ;;  %v1553_v30 = vadd.f32 %v5911_v33, %v1489_v45  ;;  %v1492_v0 = vmul.f32 %v8566_v48, %v6035_v58 }
 0x14c   : > { %v6156_v36 = vadd.f32 %v1899_v18, %v1551_v26  ;;  %v1676_v12 = vpop.permute.xlu1 %1675  ;;  %v1493_v26 = vmul.f32 %v8567_v27, %v6035_v58  ;;  %v1494_v45 = vmul.f32 %v8568_v61, %v6035_v58  ;;  %v8580_v61 = vld [vmem:[#allocation64_spill] sm:$0xff] }
 0x14d   : > { %v1900_v21 = vmul.f32 %v1676_v12, %v6044_v7  ;;  %v1680_v39 = vpop.permute.xlu0 %1679  ;;  %v1556_v53 = vadd.f32 %v5926_v13, %v1492_v0  ;;  %v8575_v0 = vld [vmem:[#allocation61_spill] sm:$0xff] }
 0x14e   : > { %v1901_v4 = vmul.f32 %v1680_v39, %v6044_v7  ;;  %v1499_v27 = vmul.f32 %v8575_v0, %v6035_v58 }
 0x14f   : > { %2075 = vperm.xlu1 %4820, %v5432_v24   ;;  %2087 = vperm.xlu0 %4821, %v5462_v34   ;;  %v6166_v22 = vadd.f32 %v1900_v21, %v1552_v57  ;;  %v1555_v34 = vadd.f32 %v1491_v23, %v5944_v47  ;;  %v8569_v57 = vld [vmem:[#allocation57_spill] sm:$0xff]  ;;  %v8572_v23 = vld [vmem:[#allocation59_spill] sm:$0xff] }
 0x150   : > { %v6170_v28 = vadd.f32 %v1901_v4, %v1553_v30  ;;  %v1684_v10 = vpop.permute.xlu1 %1683  ;;  %v1495_v21 = vmul.f32 %v8569_v57, %v6035_v58  ;;  %v1558_v30 = vadd.f32 %v1494_v45, %v5962_v49  ;;  %v1500_v45 = vmul.f32 %v8580_v61, %v6035_v58 }
 0x151   : > { %v1902_v24 = vmul.f32 %v1684_v10, %v6044_v7  ;;  %v1688_v33 = vpop.permute.xlu0 %1687  ;;  %v1497_v10 = vmul.f32 %v8572_v23, %v6035_v58  ;;  %v8584_v23 = vld [vmem:[#allocation121_spill] sm:$0xff] }
 0x152   : > { %v1903_v60 = vmul.f32 %v1688_v33, %v6044_v7 }
 0x153   : > { %2083 = vperm.xlu1 %4820, %v5445_v29   ;;  %2095 = vperm.xlu0 %4821, %v5472_v38   ;;  %v6180_v16 = vadd.f32 %v1902_v24, %v1554_v5  ;;  %v1557_v38 = vadd.f32 %v5939_v25, %v1493_v26  ;;  %v1560_v24 = vadd.f32 %v5954_v52, %v1496_v17  ;;  %v8583_v17 = vld [vmem:[#allocation8_spill] sm:$0xff] }
 0x154   : > { %v6184_v43 = vadd.f32 %v1903_v60, %v1555_v34  ;;  %v1692_v18 = vpop.permute.xlu1 %1691  ;;  %v8574_v34 = vld [vmem:[#allocation62_spill] sm:$0xff] }
 0x155   : > { %v1904_v29 = vmul.f32 %v1692_v18, %v6044_v7  ;;  %v1696_v47 = vpop.permute.xlu0 %1695  ;;  %v1498_v60 = vmul.f32 %v8574_v34, %v6035_v58  ;;  %v8576_v18 = vld [vmem:[#allocation119_spill] sm:$0xff] }
 0x156   : > { %v1905_v1 = vmul.f32 %v1696_v47, %v6044_v7  ;;  %v8578_v47 = vld [vmem:[#allocation123_spill] sm:$0xff] }
 0x157   : > { %2091 = vperm.xlu1 %4820, %v5456_v32   ;;  %2103 = vperm.xlu0 %4821, %v5486_v42   ;;  %v6194_v12 = vadd.f32 %v1904_v29, %v1556_v53  ;;  %v1559_v42 = vadd.f32 %v1495_v21, %v5972_v19  ;;  %v1562_v53 = vadd.f32 %v1498_v60, %v8576_v18  ;;  %v8577_v29 = vld [vmem:[#allocation7_spill] sm:$0xff] }
 0x158   : > { %v6198_v13 = vadd.f32 %v1905_v1, %v1557_v38  ;;  %v1700_v39 = vpop.permute.xlu1 %1699  ;;  %v8579_v1 = vld [vmem:[#allocation12_spill] sm:$0xff]  ;;  %v8581_v21 = vld [vmem:[#allocation63_spill] sm:$0xff] }
 0x159   : > { %v1906_v32 = vmul.f32 %v1700_v39, %v6044_v7  ;;  %v1704_v25 = vpop.permute.xlu0 %1703  ;;  %v1501_v39 = vmul.f32 %v8581_v21, %v6035_v58 }
 0x15a   : > { %v1907_v4 = vmul.f32 %v1704_v25, %v6044_v7  ;;  %v8582_v25 = vld [vmem:[#allocation33_spill] sm:$0xff] }
 0x15b   : > { %2099 = vperm.xlu1 %4820, %v5469_v37   ;;  %2119 = vperm.xlu0 %4821, %v5510_v50   ;;  %v6208_v59 = vadd.f32 %v1906_v32, %v1558_v30  ;;  %v1561_v50 = vadd.f32 %v5967_v35, %v1497_v10  ;;  %v1565_v10 = vadd.f32 %v8584_v23, %v1501_v39  ;;  %v8598_v23 = vld [vmem:[#allocation133_spill] sm:$0xff] }
 0x15c   : > { %v6212_v49 = vadd.f32 %v1907_v4, %v1559_v42  ;;  %v1708_v5 = vpop.permute.xlu1 %1707  ;;  %v1564_v42 = vadd.f32 %v8582_v25, %v1500_v45  ;;  %v8594_v45 = vld [vmem:[#allocation67_spill] sm:$0xff]  ;;  %v8596_v25 = vld [vmem:[#allocation128_spill] sm:$0xff] }
 0x15d   : > { %8571 = vst [vmem:[#allocation41_spill] sm:$0xff] %v6208_v59  ;;  %v1908_v37 = vmul.f32 %v1708_v5, %v6044_v7  ;;  %v1712_v19 = vpop.permute.xlu0 %1711  ;;  %v1505_v21 = vmul.f32 %v8594_v45, %v6035_v58 }
 0x15e   : > { %8573 = vst [vmem:[#allocation40_spill] sm:$0xff] %v6212_v49  ;;  %v1909_v33 = vmul.f32 %v1712_v19, %v6044_v7 }
 0x15f   : > { %2107 = vperm.xlu1 %4820, %v5480_v40   ;;  %2127 = vperm.xlu0 %4821, %v5520_v54   ;;  %v6222_v48 = vadd.f32 %v1908_v37, %v1560_v24  ;;  %v1563_v54 = vadd.f32 %v1499_v27, %v8578_v47  ;;  %v8585_v24 = vld [vmem:[#allocation10_spill] sm:$0xff]  ;;  %v8588_v27 = vld [vmem:[#allocation131_spill] sm:$0xff] }
 0x160   : > { %v6226_v52 = vadd.f32 %v1909_v33, %v1561_v50  ;;  %v1716_v26 = vpop.permute.xlu1 %1715  ;;  %v8586_v37 = vld [vmem:[#allocation66_spill] sm:$0xff]  ;;  %v8587_v33 = vld [vmem:[#allocation65_spill] sm:$0xff] }
 0x161   : > { %v1910_v40 = vmul.f32 %v1716_v26, %v6044_v7  ;;  %v1720_v35 = vpop.permute.xlu0 %1719  ;;  %v1502_v19 = vmul.f32 %v8586_v37, %v6035_v58  ;;  %v1503_v34 = vmul.f32 %v8587_v33, %v6035_v58  ;;  %v8600_v37 = vld [vmem:[#allocation70_spill] sm:$0xff] }
 0x162   : > { %v1911_v38 = vmul.f32 %v1720_v35, %v6044_v7  ;;  %v8590_v35 = vld [vmem:[#allocation134_spill] sm:$0xff] }
 0x163   : > { %2123 = vperm.xlu1 %4820, %v8577_v29   ;;  %2151 = vperm.xlu0 %4821, %v8579_v1   ;;  %v6236_v57 = vadd.f32 %v1910_v40, %v1562_v53  ;;  %v1566_v26 = vadd.f32 %v1502_v19, %v8588_v27  ;;  %v8589_v40 = vld [vmem:[#allocation11_spill] sm:$0xff]  ;;  %v1567_v29 = vadd.f32 %v1503_v34, %v8590_v35  ;;  %v8601_v34 = vld [vmem:[#allocation69_spill] sm:$0xff] }
 0x164   : > { %v6240_v30 = vadd.f32 %v1911_v38, %v1563_v54  ;;  %v1724_v32 = vpop.permute.xlu1 %1723  ;;  %v8591_v54 = vld [vmem:[#allocation14_spill] sm:$0xff]  ;;  %v8592_v38 = vld [vmem:[#allocation68_spill] sm:$0xff]  ;;  %v1506_v19 = vmul.f32 %v8600_v37, %v6035_v58 }
 0x165   : > { %v1912_v4 = vmul.f32 %v1724_v32, %v6044_v7  ;;  %v1728_v11 = vpop.permute.xlu0 %1727  ;;  %v1504_v1 = vmul.f32 %v8592_v38, %v6035_v58  ;;  %v8604_v38 = vld [vmem:[#allocation16_spill] sm:$0xff] }
 0x166   : > { %v1913_v5 = vmul.f32 %v1728_v11, %v6044_v7 }
 0x167   : > { %2131 = vperm.xlu1 %4820, %v8583_v17   ;;  %2135 = vperm.xlu0 %4821, %v8585_v24   ;;  %v6250_v50 = vadd.f32 %v1912_v4, %v1564_v42  ;;  %v1568_v42 = vadd.f32 %v8596_v25, %v1504_v1  ;;  %v8597_v17 = vld [vmem:[#allocation9_spill] sm:$0xff]  ;;  %v8599_v24 = vld [vmem:[#allocation18_spill] sm:$0xff]  ;;  %v8605_v1 = vld [vmem:[#allocation72_spill] sm:$0xff] }
 0x168   : > { %v6254_v60 = vadd.f32 %v1913_v5, %v1565_v10  ;;  %v1732_v0 = vpop.permute.xlu1 %1731  ;;  %v1569_v10 = vadd.f32 %v8598_v23, %v1505_v21  ;;  %v1508_v45 = vmul.f32 %v8605_v1, %v6035_v58 }
 0x169   : > { %v1914_v18 = vmul.f32 %v1732_v0, %v6044_v7  ;;  %v1736_v53 = vpop.permute.xlu0 %1735  ;;  %v1507_v0 = vmul.f32 %v8601_v34, %v6035_v58  ;;  %v8613_v34 = vld [vmem:[#allocation74_spill] sm:$0xff] }
 0x16a   : > { %v1915_v47 = vmul.f32 %v1736_v53, %v6044_v7 }
 0x16b   : > { %2155 = vperm.xlu1 %4820, %v8589_v40   ;;  %2159 = vperm.xlu0 %4821, %v8591_v54   ;;  %v6264_v61 = vadd.f32 %v1914_v18, %v1566_v26  ;;  %v8602_v18 = vld [vmem:[#allocation37_spill] sm:$0xff] }
 0x16c   : > { %v6268_v39 = vadd.f32 %v1915_v47, %v1567_v29  ;;  %v1740_v32 = vpop.permute.xlu1 %1739  ;;  %v1570_v53 = vadd.f32 %v1506_v19, %v8602_v18  ;;  %v8603_v29 = vld [vmem:[#allocation13_spill] sm:$0xff]  ;;  %v1571_v47 = vadd.f32 %v1507_v0, %v6076_v2  ;;  %v8612_v19 = vld [vmem:[#allocation20_spill] sm:$0xff]  ;;  %v1510_v0 = vmul.f32 %v8613_v34, %v6035_v58 }
 0x16d   : > { %8593 = vst [vmem:[#allocation44_spill] sm:$0xff] %v6264_v61  ;;  %v1916_v4 = vmul.f32 %v1740_v32, %v6044_v7  ;;  %v1744_v11 = vpop.permute.xlu0 %1743  ;;  %v8607_v32 = vld [vmem:[#allocation71_spill] sm:$0xff] }
 0x16e   : > { %8595 = vst [vmem:[#allocation43_spill] sm:$0xff] %v6268_v39  ;;  %v1917_v5 = vmul.f32 %v1744_v11, %v6044_v7  ;;  %v1509_v25 = vmul.f32 %v8607_v32, %v6035_v58  ;;  %v8609_v11 = vld [vmem:[#allocation36_spill] sm:$0xff] }
 0x16f   : > { %2139 = vperm.xlu1 %4820, %v8597_v17   ;;  %2183 = vperm.xlu0 %4821, %v8599_v24   ;;  %v6278_v33 = vadd.f32 %v1916_v4, %v1568_v42  ;;  %v1572_v17 = vadd.f32 %v8609_v11, %v1508_v45 }
 0x170   : > { %v6282_v27 = vadd.f32 %v1917_v5, %v1569_v10  ;;  %v1748_v26 = vpop.permute.xlu1 %1747  ;;  %v8610_v10 = vld [vmem:[#allocation17_spill] sm:$0xff]  ;;  %v8611_v5 = vld [vmem:[#allocation42_spill] sm:$0xff] }
 0x171   : > { %v1918_v40 = vmul.f32 %v1748_v26, %v6044_v7  ;;  %v1752_v35 = vpop.permute.xlu0 %1751  ;;  %v1573_v24 = vadd.f32 %v8611_v5, %v1509_v25 }
 0x172   : > { %v1919_v54 = vmul.f32 %v1752_v35, %v6044_v7 }
 0x173   : > { %2163 = vperm.xlu1 %4820, %v8603_v29   ;;  %2167 = vperm.xlu0 %4821, %v8604_v38   ;;  %v6292_v21 = vadd.f32 %v1918_v40, %v1570_v53  ;;  %v1574_v40 = vadd.f32 %v1510_v0, %v6106_v44  ;;  %v8618_v38 = vld [vmem:[#allocation76_spill] sm:$0xff]  ;;  %v8620_v44 = vld [vmem:[#allocation19_spill] sm:$0xff] }
 0x174   : > { %v6296_v42 = vadd.f32 %v1919_v54, %v1571_v47  ;;  %v1756_v4 = vpop.permute.xlu1 %1755  ;;  %v8616_v47 = vld [vmem:[#allocation15_spill] sm:$0xff]  ;;  %v1512_v1 = vmul.f32 %v8618_v38, %v6035_v58  ;;  %v8626_v0 = vld [vmem:[#allocation24_spill] sm:$0xff] }
 0x175   : > { %8606 = vst [vmem:[#allocation46_spill] sm:$0xff] %v6292_v21  ;;  %v1920_v23 = vmul.f32 %v1756_v4, %v6044_v7  ;;  %v1760_v2 = vpop.permute.xlu0 %1759  ;;  %v8617_v54 = vld [vmem:[#allocation23_spill] sm:$0xff] }
 0x176   : > { %8608 = vst [vmem:[#allocation45_spill] sm:$0xff] %v6296_v42  ;;  %v1921_v37 = vmul.f32 %v1760_v2, %v6044_v7  ;;  %v1576_v25 = vadd.f32 %v6099_v15, %v1512_v1  ;;  %v8623_v2 = vld [vmem:[#allocation77_spill] sm:$0xff]  ;;  %v8625_v15 = vld [vmem:[#allocation87_spill] sm:$0xff]  ;;  %v8630_v1 = vld [vmem:[#allocation84_spill] sm:$0xff] }
 0x177   : > { %2187 = vperm.xlu1 %4820, %v8610_v10   ;;  %2191 = vperm.xlu0 %4821, %v8612_v19   ;;  %v6306_v26 = vadd.f32 %v1920_v23, %v1572_v17  ;;  %v8621_v17 = vld [vmem:[#allocation21_spill] sm:$0xff]  ;;  %v1515_v10 = vmul.f32 %v8623_v2, %v6035_v58 }
 0x178   : > { %v6308_v18 = vadd.f32 %v1921_v37, %v1573_v24  ;;  %v1764_v53 = vpop.permute.xlu1 %1763  ;;  %v8624_v37 = vld [vmem:[#allocation22_spill] sm:$0xff] }
 0x179   : > { %8614 = vst [vmem:[#allocation48_spill] sm:$0xff] %v6306_v26  ;;  %v1922_v35 = vmul.f32 %v1764_v53, %v6044_v7  ;;  %v6312_v29 = vpop.permute.xlu0 %1767  ;;  %v1579_v19 = vadd.f32 %v1515_v10, %v8625_v15  ;;  %v8627_v53 = vld [vmem:[#allocation80_spill] sm:$0xff] }
 0x17a   : > { %8615 = vst [vmem:[#allocation47_spill] sm:$0xff] %v6308_v18  ;;  %v6596_v18 = vld [vmem:[%s5384_s18 + $0xd8] sm:$0xff]  }
 0x17b   : > { %2171 = vperm.xlu1 %4820, %v8616_v47   ;;  %2215 = vperm.xlu0 %4821, %v8617_v54   ;;  %v6318_v45 = vadd.f32 %v1922_v35, %v1574_v40  ;;  %v1516_v40 = vmul.f32 %v8627_v53, %v6035_v58  ;;  %v8628_v35 = vld [vmem:[#allocation79_spill] sm:$0xff]  ;;  %8714 = vst [vmem:[#allocation69_spill] sm:$0xff] %v6596_v18 }
 0x17c   : > { %v1772_v32 = vpop.permute.xlu1 %1771  ;;  %v1517_v47 = vmul.f32 %v8628_v35, %v6035_v58  ;;  %v8637_v35 = vld [vmem:[#allocation92_spill] sm:$0xff] }
 0x17d   : > { %8619 = vst [vmem:[#allocation50_spill] sm:$0xff] %v6318_v45  ;;  %v1924_v4 = vmul.f32 %v1772_v32, %v6044_v7  ;;  %v6322_v11 = vpop.permute.xlu0 %1775  ;;  %v1580_v32 = vadd.f32 %v8630_v1, %v1516_v40  ;;  %v8658_v45 = vld [vmem:[#allocation98_spill] sm:$0xff] }
 0x17f   : > { %2195 = vperm.xlu1 %4820, %v8620_v44   ;;  %2199 = vperm.xlu0 %4821, %v8621_v17   ;;  %v6326_v23 = vadd.f32 %v1924_v4, %v1576_v25  ;;  %v5082_v44 = vld [vmem:[%s5379_s14 + $0x138] sm:$0xff]  ;;  %v8631_v17 = vld [vmem:[#allocation86_spill] sm:$0xff] }
 0x180   : > { %v6330_v5 = vpop.permute.xlu1 %1779  ;;  %v1581_v2 = vadd.f32 %v8631_v17, %v1517_v47 }
 0x181   : > { %8622 = vst [vmem:[#allocation49_spill] sm:$0xff] %v6326_v23  ;;  %v1784_v24 = vpop.permute.xlu0 %1783 }
 0x182   : > { %v1927_v34 = vmul.f32 %v1784_v24, %v6044_v7  ;;  %v8632_v24 = vld [vmem:[#allocation27_spill] sm:$0xff] }
 0x183   : > { %2219 = vperm.xlu1 %4820, %v8624_v37   ;;  %2223 = vperm.xlu0 %4821, %v8626_v0   ;;  %v8633_v37 = vld [vmem:[#allocation82_spill] sm:$0xff] }
 0x184   : > { %v6340_v54 = vadd.f32 %v1927_v34, %v1579_v19  ;;  %v1788_v38 = vpop.permute.xlu1 %1787  ;;  %v1518_v15 = vmul.f32 %v8633_v37, %v6035_v58  ;;  %v8635_v34 = vld [vmem:[#allocation81_spill] sm:$0xff] }
 0x185   : > { %v1928_v25 = vmul.f32 %v1788_v38, %v6044_v7  ;;  %v1792_v4 = vpop.permute.xlu0 %1791  ;;  %v1519_v0 = vmul.f32 %v8635_v34, %v6035_v58 }
 0x186   : > { %8629 = vst [vmem:[#allocation52_spill] sm:$0xff] %v6340_v54  ;;  %v1929_v10 = vmul.f32 %v1792_v4, %v6044_v7  ;;  %v1582_v38 = vadd.f32 %v1518_v15, %v8637_v35  ;;  %v5083_v4 = vld [vmem:[%s5379_s14 + $0x168] sm:$0xff]  ;;  %v8644_v35 = vld [vmem:[#allocation91_spill] sm:$0xff]  ;;  %v6563_v54 = vld [vmem:[%s5384_s18 + $0x40] sm:$0xff]  }
 0x187   : > { %2203 = vperm.xlu1 %4820, %v5082_v44   ;;  %2247 = vperm.xlu0 %4821, %v8632_v24   ;;  %v6350_v19 = vadd.f32 %v1928_v25, %v1580_v32  ;;  %v8638_v44 = vld [vmem:[#allocation94_spill] sm:$0xff]  ;;  %v8639_v32 = vld [vmem:[#allocation25_spill] sm:$0xff]  ;;  %v8640_v25 = vld [vmem:[#allocation88_spill] sm:$0xff]  ;;  %8703 = vst [vmem:[#allocation128_spill] sm:$0xff] %v6563_v54 }
 0x188   : > { %v6354_v53 = vadd.f32 %v1929_v10, %v1581_v2  ;;  %v1796_v40 = vpop.permute.xlu1 %1795  ;;  %v1583_v17 = vadd.f32 %v1519_v0, %v8638_v44  ;;  %v1520_v37 = vmul.f32 %v8640_v25, %v6035_v58  ;;  %v8642_v10 = vld [vmem:[#allocation83_spill] sm:$0xff]  ;;  %v8645_v44 = vld [vmem:[#allocation93_spill] sm:$0xff] }
 0x189   : > { %8634 = vst [vmem:[#allocation51_spill] sm:$0xff] %v6350_v19  ;;  %v1930_v47 = vmul.f32 %v1796_v40, %v6044_v7  ;;  %v1800_v1 = vpop.permute.xlu0 %1799  ;;  %v1521_v15 = vmul.f32 %v8642_v10, %v6035_v58 }
 0x18a   : > { %8636 = vst [vmem:[#allocation54_spill] sm:$0xff] %v6354_v53  ;;  %v1931_v24 = vmul.f32 %v1800_v1, %v6044_v7  ;;  %v1584_v39 = vadd.f32 %v8644_v35, %v1520_v37  ;;  %v5084_v1 = vld [vmem:[%s5379_s14 + $0x198] sm:$0xff] }
 0x18b   : > { %2227 = vperm.xlu1 %4820, %v5083_v4   ;;  %2231 = vperm.xlu0 %4821, %v8639_v32   ;;  %v6364_v2 = vadd.f32 %v1930_v47, %v1582_v38  ;;  %v1585_v32 = vadd.f32 %v8645_v44, %v1521_v15  ;;  %v8646_v38 = vld [vmem:[#allocation29_spill] sm:$0xff]  ;;  %v8647_v47 = vld [vmem:[#allocation90_spill] sm:$0xff] }
 0x18c   : > { %v6368_v34 = vadd.f32 %v1931_v24, %v1583_v17  ;;  %v1804_v40 = vpop.permute.xlu1 %1803  ;;  %v1522_v10 = vmul.f32 %v8647_v47, %v6035_v58  ;;  %v8649_v24 = vld [vmem:[#allocation89_spill] sm:$0xff]  ;;  %v8652_v44 = vld [vmem:[#allocation102_spill] sm:$0xff]  ;;  %v8654_v47 = vld [vmem:[#allocation96_spill] sm:$0xff] }
 0x18d   : > { %8641 = vst [vmem:[#allocation53_spill] sm:$0xff] %v6364_v2  ;;  %v1932_v0 = vmul.f32 %v1804_v40, %v6044_v7  ;;  %v1808_v4 = vpop.permute.xlu0 %1807  ;;  %v1523_v37 = vmul.f32 %v8649_v24, %v6035_v58 }
 0x18e   : > { %8643 = vst [vmem:[#allocation56_spill] sm:$0xff] %v6368_v34  ;;  %v1933_v25 = vmul.f32 %v1808_v4, %v6044_v7  ;;  %v8651_v34 = vld [vmem:[#allocation100_spill] sm:$0xff] }
 0x18f   : > { %2251 = vperm.xlu1 %4820, %v5084_v1   ;;  %2255 = vperm.xlu0 %4821, %v8646_v38   ;;  %v6378_v17 = vadd.f32 %v1932_v0, %v1584_v39  ;;  %v1586_v2 = vadd.f32 %v1522_v10, %v8651_v34  ;;  %v5085_v4 = vld [vmem:[%s5379_s14 + $0x178] sm:$0xff]  ;;  %v1587_v38 = vadd.f32 %v1523_v37, %v8652_v44  ;;  %v8653_v0 = vld [vmem:[#allocation35_spill] sm:$0xff]  ;;  %v8659_v44 = vld [vmem:[#allocation101_spill] sm:$0xff] }
 0x190   : > { %v6382_v35 = vadd.f32 %v1933_v25, %v1585_v32  ;;  %v1812_v40 = vpop.permute.xlu1 %1811  ;;  %v1524_v32 = vmul.f32 %v8654_v47, %v6035_v58  ;;  %v8656_v34 = vld [vmem:[#allocation95_spill] sm:$0xff] }
 0x191   : > { %8648 = vst [vmem:[#allocation55_spill] sm:$0xff] %v6378_v17  ;;  %v1934_v15 = vmul.f32 %v1812_v40, %v6044_v7  ;;  %v1816_v1 = vpop.permute.xlu0 %1815  ;;  %v1525_v10 = vmul.f32 %v8656_v34, %v6035_v58  ;;  %v8660_v47 = vld [vmem:[#allocation99_spill] sm:$0xff]  ;;  %v8705_v17 = vld [vmem:[#allocation122_spill] sm:$0xff] }
 0x192   : > { %8650 = vst [vmem:[#allocation58_spill] sm:$0xff] %v6382_v35  ;;  %v1935_v39 = vmul.f32 %v1816_v1, %v6044_v7  ;;  %v5086_v1 = vld [vmem:[%s5379_s14 + $0x1a8] sm:$0xff] }
 0x193   : > { %2235 = vperm.xlu1 %4820, %v5085_v4   ;;  %2279 = vperm.xlu0 %4821, %v8653_v0   ;;  %v6392_v25 = vadd.f32 %v1934_v15, %v1586_v2  ;;  %v1588_v4 = vadd.f32 %v8658_v45, %v1524_v32  ;;  %v1589_v0 = vadd.f32 %v8659_v44, %v1525_v10  ;;  %v5087_v15 = vld [vmem:[%s5379_s14 + $0x1b0] sm:$0xff]  ;;  %v8662_v45 = vld [vmem:[#allocation97_spill] sm:$0xff] }
 0x194   : > { %v6396_v24 = vadd.f32 %v1935_v39, %v1587_v38  ;;  %v1820_v40 = vpop.permute.xlu1 %1819  ;;  %v1526_v38 = vmul.f32 %v8660_v47, %v6035_v58  ;;  %v1527_v32 = vmul.f32 %v8662_v45, %v6035_v58 }
 0x195   : > { %8655 = vst [vmem:[#allocation57_spill] sm:$0xff] %v6392_v25  ;;  %v1936_v49 = vmul.f32 %v1820_v40, %v6044_v7  ;;  %v1824_v37 = vpop.permute.xlu0 %1823 }
 0x196   : > { %8657 = vst [vmem:[#allocation60_spill] sm:$0xff] %v6396_v24  ;;  %v1937_v2 = vmul.f32 %v1824_v37, %v6044_v7  ;;  %v5088_v37 = vld [vmem:[%s5379_s14 + $0x1d8] sm:$0xff] }
 0x197   : > { %2259 = vperm.xlu1 %4820, %v5086_v1   ;;  %2263 = vperm.xlu0 %4821, %v5087_v15   ;;  %v6406_v39 = vadd.f32 %v1936_v49, %v1588_v4  ;;  %v8664_v1 = vld [vmem:[#allocation108_spill] sm:$0xff]  ;;  %v8665_v15 = vld [vmem:[#allocation109_spill] sm:$0xff] }
 0x198   : > { %v6410_v34 = vadd.f32 %v1937_v2, %v1589_v0  ;;  %v1828_v40 = vpop.permute.xlu1 %1827  ;;  %v1590_v61 = vadd.f32 %v1526_v38, %v8664_v1  ;;  %v1591_v59 = vadd.f32 %v1527_v32, %v8665_v15  ;;  %v5089_v4 = vld [vmem:[%s5379_s14 + $0x1e0] sm:$0xff]  ;;  %v8666_v0 = vld [vmem:[#allocation104_spill] sm:$0xff]  ;;  %v8668_v38 = vld [vmem:[#allocation103_spill] sm:$0xff] }
 0x199   : > { %8661 = vst [vmem:[#allocation59_spill] sm:$0xff] %v6406_v39  ;;  %v1938_v10 = vmul.f32 %v1828_v40, %v6044_v7  ;;  %v1832_v44 = vpop.permute.xlu0 %1831  ;;  %v1528_v2 = vmul.f32 %v8666_v0, %v6035_v58  ;;  %v1529_v45 = vmul.f32 %v8668_v38, %v6035_v58  ;;  %v6435_v0 = vld [vmem:[%s5384_s18 + $0x90] sm:$0xff]  }
 0x19a   : > { %8663 = vst [vmem:[#allocation62_spill] sm:$0xff] %v6410_v34  ;;  %v1939_v49 = vmul.f32 %v1832_v44, %v6044_v7  ;;  %v8670_v44 = vld [vmem:[#allocation105_spill] sm:$0xff]  ;;  %8671 = vst [vmem:[#allocation7_spill] sm:$0xff] %v6435_v0  ;;  %v5093_v32 = vld [vmem:[%s5379_s14 + $0x1f0] sm:$0xff] }
 0x19b   : > { %2283 = vperm.xlu1 %4820, %v5088_v37   ;;  %2287 = vperm.xlu0 %4821, %v5089_v4   ;;  %v6420_v47 = vadd.f32 %v1938_v10, %v1590_v61  ;;  %v6427_v37 = vld [vmem:[%s5384_s18] sm:$0xff]   ;;  %v1592_v15 = vadd.f32 %v8670_v44, %v1528_v2  ;;  %v5091_v61 = vld [vmem:[%s5379_s14 + $0x1b8] sm:$0xff]  ;;  %v8680_v44 = vld [vmem:[#allocation114_spill] sm:$0xff] }
 0x19c   : > { %v6424_v40 = vadd.f32 %v1939_v49, %v1591_v59  ;;  %v1836_v1 = vpop.permute.xlu1 %1835  ;;  %v8672_v49 = vld [vmem:[#allocation26_spill] sm:$0xff] }
 0x19d   : > { %8667 = vst [vmem:[#allocation61_spill] sm:$0xff] %v6420_v47  ;;  %v1940_v4 = vmul.f32 %v1836_v1, %v6044_v7  ;;  %v1840_v34 = vpop.permute.xlu0 %1839  ;;  %v1593_v38 = vadd.f32 %v8672_v49, %v1529_v45  ;;  %v6443_v1 = vld [vmem:[%s5384_s18 + $0x8] sm:$0xff]   ;;  %v6452_v49 = vld [vmem:[%s5384_s18 + $0x98] sm:$0xff]  }
 0x19e   : > { %8669 = vst [vmem:[#allocation119_spill] sm:$0xff] %v6424_v40  ;;  %v1941_v40 = vmul.f32 %v1840_v34, %v6044_v7  ;;  %8675 = vst [vmem:[#allocation12_spill] sm:$0xff] %v6452_v49  ;;  %v5097_v34 = vld [vmem:[%s5379_s14 + $0x1e8] sm:$0xff] }
 0x19f   : > { %2267 = vperm.xlu1 %4820, %v5091_v61   ;;  %2295 = vperm.xlu0 %4821, %v5093_v32   ;;  %v8673_v61 = vld [vmem:[#allocation107_spill] sm:$0xff]  ;;  %v6448_v47 = vadd.f32 %v1940_v4, %v1592_v15  ;;  %v8676_v32 = vld [vmem:[#allocation106_spill] sm:$0xff]  ;;  %v5099_v15 = vld [vmem:[%s5379_s14 + $0x80] sm:$0xff] }
 0x1a0   : > { %v1530_v10 = vmul.f32 %v8673_v61, %v6035_v58  ;;  %v1531_v59 = vmul.f32 %v8676_v32, %v6035_v58  ;;  %v6457_v2 = vadd.f32 %v1941_v40, %v1593_v38  ;;  %v1844_v0 = vpop.permute.xlu1 %1843  ;;  %v6461_v61 = vld [vmem:[%s5384_s18 + $0x10] sm:$0xff]   ;;  %v6469_v40 = vld [vmem:[%s5384_s18 + $0xa0] sm:$0xff]  }
 0x1a1   : > { %8674 = vst [vmem:[#allocation123_spill] sm:$0xff] %v6448_v47  ;;  %v8678_v4 = vld [vmem:[#allocation31_spill] sm:$0xff]  ;;  %v1942_v39 = vmul.f32 %v1844_v0, %v6044_v7  ;;  %v1848_v24 = vpop.permute.xlu0 %1847  ;;  %8679 = vst [vmem:[#allocation63_spill] sm:$0xff] %v6469_v40  ;;  %v6477_v0 = vld [vmem:[%s5384_s18 + $0x18] sm:$0xff]  }
 0x1a2   : > { %8677 = vst [vmem:[#allocation64_spill] sm:$0xff] %v6457_v2  ;;  %v1594_v45 = vadd.f32 %v1530_v10, %v8678_v4  ;;  %v1595_v49 = vadd.f32 %v1531_v59, %v8680_v44  ;;  %v1943_v2 = vmul.f32 %v1848_v24, %v6044_v7  ;;  %v8681_v4 = vld [vmem:[#allocation111_spill] sm:$0xff]  ;;  %v6486_v44 = vld [vmem:[%s5384_s18 + $0xa8] sm:$0xff]   ;;  %v5103_v24 = vld [vmem:[%s5379_s14 + $0x1f8] sm:$0xff] }
 0x1a3   : > { %2291 = vperm.xlu1 %4820, %v5097_v34   ;;  %2111 = vperm.xlu0 %4821, %v5099_v15   ;;  %v1532_v32 = vmul.f32 %v8681_v4, %v6035_v58  ;;  %8683 = vst [vmem:[#allocation8_spill] sm:$0xff] %v6486_v44  ;;  %v8684_v15 = vld [vmem:[#allocation110_spill] sm:$0xff]  ;;  %v6495_v4 = vld [vmem:[%s5384_s18 + $0x20] sm:$0xff]  }
 0x1a4   : > { %v6482_v47 = vadd.f32 %v1942_v39, %v1594_v45  ;;  %v1533_v38 = vmul.f32 %v8684_v15, %v6035_v58  ;;  %v6491_v10 = vadd.f32 %v1943_v2, %v1595_v49  ;;  %v1852_v40 = vpop.permute.xlu1 %1851  ;;  %v8686_v45 = vld [vmem:[#allocation28_spill] sm:$0xff]  ;;  %v6503_v2 = vld [vmem:[%s5384_s18 + $0xb0] sm:$0xff]   ;;  %v8688_v34 = vld [vmem:[#allocation30_spill] sm:$0xff] }
 0x1a5   : > { %v1596_v59 = vadd.f32 %v8686_v45, %v1532_v32  ;;  %v1856_v53 = vpop.permute.xlu0 %1855  ;;  %8687 = vst [vmem:[#allocation10_spill] sm:$0xff] %v6503_v2  ;;  %v5105_v39 = vld [vmem:[%s5379_s14 + $0xc0] sm:$0xff] }
 0x1a6   : > { %8682 = vst [vmem:[#allocation33_spill] sm:$0xff] %v6482_v47  ;;  %8685 = vst [vmem:[#allocation121_spill] sm:$0xff] %v6491_v10  ;;  %v1944_v47 = vmul.f32 %v1852_v40, %v6044_v7  ;;  %v1597_v10 = vadd.f32 %v8688_v34, %v1533_v38  ;;  %v1945_v44 = vmul.f32 %v1856_v53, %v6044_v7  ;;  %v6511_v40 = vld [vmem:[%s5384_s18 + $0x28] sm:$0xff]   ;;  %v8689_v45 = vld [vmem:[#allocation113_spill] sm:$0xff] }
 0x1a7   : > { %2299 = vperm.xlu1 %4820, %v5103_v24   ;;  %2143 = vperm.xlu0 %4821, %v5105_v39   ;;  %v1534_v15 = vmul.f32 %v8689_v45, %v6035_v58  ;;  %v6520_v34 = vld [vmem:[%s5384_s18 + $0xb8] sm:$0xff]   ;;  %v6529_v45 = vld [vmem:[%s5384_s18 + $0x30] sm:$0xff]   ;;  %v5109_v53 = vld [vmem:[%s5379_s14 + $0x88] sm:$0xff] }
 0x1a8   : > { %v6516_v25 = vadd.f32 %v1944_v47, %v1596_v59  ;;  %8691 = vst [vmem:[#allocation65_spill] sm:$0xff] %v6520_v34  ;;  %v8692_v39 = vld [vmem:[#allocation112_spill] sm:$0xff]  ;;  %v6525_v32 = vadd.f32 %v1945_v44, %v1597_v10  ;;  %v1860_v2 = vpop.permute.xlu1 %1859  ;;  %v6537_v10 = vld [vmem:[%s5384_s18 + $0xc0] sm:$0xff]  }
 0x1a9   : > { %v1535_v49 = vmul.f32 %v8692_v39, %v6035_v58  ;;  %v8694_v59 = vld [vmem:[#allocation120_spill] sm:$0xff]  ;;  %v1864_v35 = vpop.permute.xlu0 %1863  ;;  %8695 = vst [vmem:[#allocation11_spill] sm:$0xff] %v6537_v10  ;;  %v5111_v47 = vld [vmem:[%s5379_s14 + $0x100] sm:$0xff] }
 0x1aa   : > { %8690 = vst [vmem:[#allocation66_spill] sm:$0xff] %v6516_v25  ;;  %8693 = vst [vmem:[#allocation131_spill] sm:$0xff] %v6525_v32  ;;  %v1598_v38 = vadd.f32 %v1534_v15, %v8694_v59  ;;  %v1946_v25 = vmul.f32 %v1860_v2, %v6044_v7  ;;  %v8696_v24 = vld [vmem:[#allocation124_spill] sm:$0xff]  ;;  %v1947_v32 = vmul.f32 %v1864_v35, %v6044_v7  ;;  %v5115_v35 = vld [vmem:[%s5379_s14 + $0xc8] sm:$0xff] }
 0x1ab   : > { %2115 = vperm.xlu1 %4820, %v5109_v53   ;;  %v1599_v34 = vadd.f32 %v1535_v49, %v8696_v24  ;;  %2175 = vperm.xlu0 %4821, %v5111_v47   ;;  %v6545_v2 = vld [vmem:[%s5384_s18 + $0x38] sm:$0xff]   ;;  %v6554_v49 = vld [vmem:[%s5384_s18 + $0xc8] sm:$0xff]   ;;  %v8701_v24 = vld [vmem:[#allocation115_spill] sm:$0xff] }
 0x1ac   : > { %8697 = vst [vmem:[#allocation134_spill] sm:$0xff] %v6545_v2  ;;  %v8698_v59 = vld [vmem:[#allocation116_spill] sm:$0xff]  ;;  %v6550_v19 = vadd.f32 %v1946_v25, %v1598_v38  ;;  %8700 = vst [vmem:[#allocation68_spill] sm:$0xff] %v6554_v49  ;;  %v1537_v47 = vmul.f32 %v8701_v24, %v6035_v58  ;;  %v1868_v10 = vpop.permute.xlu1 %1867  ;;  %v6574_v53 = vld [vmem:[%s5384_s18 + $0xd0] sm:$0xff]  }
 0x1ad   : > { %v1536_v39 = vmul.f32 %v8698_v59, %v6035_v58  ;;  %v6559_v15 = vadd.f32 %v1947_v32, %v1599_v34  ;;  %v8704_v38 = vld [vmem:[#allocation32_spill] sm:$0xff]  ;;  %v1948_v44 = vmul.f32 %v1868_v10, %v6044_v7  ;;  %8706 = vst [vmem:[#allocation9_spill] sm:$0xff] %v6574_v53  ;;  %v8707_v10 = vld [vmem:[#allocation118_spill] sm:$0xff] }
 0x1ae   : > { %8699 = vst [vmem:[#allocation14_spill] sm:$0xff] %v6550_v19  ;;  %v1872_v19 = vpop.permute.xlu0 %1871  ;;  %v1601_v32 = vadd.f32 %v8705_v17, %v1537_v47  ;;  %v6583_v24 = vld [vmem:[%s5384_s18 + $0x48] sm:$0xff]  }
 0x1af   : > { %8702 = vst [vmem:[#allocation67_spill] sm:$0xff] %v6559_v15  ;;  %v1600_v59 = vadd.f32 %v8704_v38, %v1536_v39  ;;  %2147 = vperm.xlu1 %4820, %v5115_v35   ;;  %v1949_v34 = vmul.f32 %v1872_v19, %v6044_v7  ;;  %v5116_v15 = vld [vmem:[%s5379_s14 + $0x140] sm:$0xff]  ;;  %v1538_v38 = vmul.f32 %v8707_v10, %v6035_v58  ;;  %8709 = vst [vmem:[#allocation18_spill] sm:$0xff] %v6583_v24  ;;  %v8712_v39 = vld [vmem:[#allocation132_spill] sm:$0xff] }
 0x1b0   : > { %2207 = vperm.xlu0 %4821, %v5116_v15   ;;  %v8710_v15 = vld [vmem:[#allocation117_spill] sm:$0xff]  ;;  %v1876_v25 = vpop.permute.xlu1 %1875  ;;  %v8713_v49 = vld [vmem:[#allocation34_spill] sm:$0xff] }
 0x1b1   : > { %v6580_v35 = vadd.f32 %v1948_v44, %v1600_v59  ;;  %v1539_v47 = vmul.f32 %v8710_v15, %v6035_v58  ;;  %v6589_v54 = vadd.f32 %v1949_v34, %v1601_v32  ;;  %v1602_v53 = vadd.f32 %v1538_v38, %v8712_v39  ;;  %v5119_v59 = vld [vmem:[%s5379_s14 + $0x108] sm:$0xff]  ;;  %v8715_v34 = vld [vmem:[#allocation135_spill] sm:$0xff]  ;;  %v5121_v38 = vld [vmem:[%s5379_s14 + $0x180] sm:$0xff] }
 0x1b2   : > { %v1950_v10 = vmul.f32 %v1876_v25, %v6044_v7  ;;  %v1880_v44 = vpop.permute.xlu0 %1879  ;;  %v2036_v17 = vsub.s32 2, %v8713_v49  ;;  %v6604_v25 = vld [vmem:[%s5384_s18 + $0x50] sm:$0xff]   ;;  %v6613_v32 = vld [vmem:[%s5384_s18 + $0xe0] sm:$0xff]   ;;  %v5124_v24 = vld [vmem:[%s5379_s14 + $0x148] sm:$0xff] }
 0x1b3   : > { %8708 = vst [vmem:[#allocation133_spill] sm:$0xff] %v6580_v35  ;;  %8711 = vst [vmem:[#allocation70_spill] sm:$0xff] %v6589_v54  ;;  %2179 = vperm.xlu1 %4820, %v5119_v59   ;;  %v5237_v35 = vmov 1966171168   ;;  %v1603_v54 = vadd.f32 %v1539_v47, %v8715_v34  ;;  %v1951_v39 = vmul.f32 %v1880_v44, %v6044_v7  ;;  %v8720_v34 = vld [vmem:[#allocation125_spill] sm:$0xff]  ;;  %v8722_v59 = vld [vmem:[#allocation130_spill] sm:$0xff] }
 0x1b4   : > { %v2436_v19 = vunpack.c.l.s4 %v5237_v35  ;;  %2239 = vperm.xlu0 %4821, %v5121_v38   ;;  %8716 = vst [vmem:[#allocation37_spill] sm:$0xff] %v6604_v25  ;;  %v8717_v35 = vld [vmem:[#allocation126_spill] sm:$0xff]  ;;  %v6610_v15 = vadd.f32 %v1950_v10, %v1602_v53  ;;  %8719 = vst [vmem:[#allocation16_spill] sm:$0xff] %v6613_v32  ;;  %v1541_v38 = vmul.f32 %v8720_v34, %v6035_v58  ;;  %v1884_v26 = vpop.permute.xlu1 %1883  ;;  %v8723_v10 = vld [vmem:[#allocation129_spill] sm:$0xff] }
 0x1b5   : > { %v1540_v42 = vmul.f32 %v8717_v35, %v6035_v58  ;;  %v6619_v18 = vadd.f32 %v1951_v39, %v1603_v54  ;;  %v1952_v35 = vmul.f32 %v1884_v26, %v6044_v7  ;;  %v6628_v44 = vld [vmem:[%s5384_s18 + $0x58] sm:$0xff]   ;;  %v8725_v34 = vld [vmem:[#allocation38_spill] sm:$0xff]  ;;  %v5126_v26 = vld [vmem:[%s5379_s14 + $0x1c0] sm:$0xff] }
 0x1b6   : > { %8718 = vst [vmem:[#allocation13_spill] sm:$0xff] %v6610_v15  ;;  %v1888_v53 = vpop.permute.xlu0 %1887  ;;  %v6624_v15 = vrot.slane %v8723_v10, %v2036_v17  ;;  %v2437_v47 = vunpack.c.0.s8 %v2436_v19  ;;  %8724 = vst [vmem:[#allocation71_spill] sm:$0xff] %v6628_v44  ;;  %v1605_v32 = vadd.f32 %v8725_v34, %v1541_v38  ;;  %v6648_v34 = vld [vmem:[%s5384_s18 + $0xf0] sm:$0xff]   ;;  %v6655_v54 = vld [vmem:[%s5384_s18 + $0x68] sm:$0xff]  }
 0x1b7   : > { %8721 = vst [vmem:[#allocation72_spill] sm:$0xff] %v6619_v18  ;;  %v1604_v25 = vadd.f32 %v8722_v59, %v1540_v42  ;;  %2211 = vperm.xlu1 %4820, %v5124_v24   ;;  %v1953_v42 = vmul.f32 %v1888_v53, %v6044_v7  ;;  %v6636_v59 = vld [vmem:[%s5384_s18 + $0xe8] sm:$0xff]   ;;  %v6641_v24 = vld [vmem:[%s5384_s18 + $0x60] sm:$0xff]   ;;  %8729 = vst [vmem:[#allocation20_spill] sm:$0xff] %v6648_v34 }
 0x1b8   : > { %2271 = vperm.xlu0 %4821, %v5126_v26   ;;  %8726 = vst [vmem:[#allocation36_spill] sm:$0xff] %v6636_v59  ;;  %8727 = vst [vmem:[#allocation17_spill] sm:$0xff] %v6641_v24  ;;  %v2020_v19 = vpop.permute.xlu1 %2019  ;;  %v5131_v53 = vld [vmem:[%s5379_s14 + $0x188] sm:$0xff]  ;;  %v6670_v34 = vld [vmem:[%s5384_s18 + $0x70] sm:$0xff]  }
 0x1b9   : > { %v6644_v39 = vadd.f32 %v1952_v35, %v1604_v25  ;;  %v6652_v17 = vadd.f32 %v1953_v42, %v1605_v32  ;;  %8731 = vst [vmem:[#allocation15_spill] sm:$0xff] %v6655_v54  ;;  %v6660_v35 = vsub.s32 %v2437_v47, %v8713_v49  ;;  %v2038_v38 = vmul.f32 %v6624_v15, %v2020_v19  ;;  %v6665_v32 = vld [vmem:[%s5384_s18 + $0xf8] sm:$0xff]   ;;  %v6682_v42 = vld [vmem:[%s5384_s18 + $0x80] sm:$0xff]   ;;  %v6687_v25 = vld [vmem:[%s5384_s18 + $0x88] sm:$0xff]  }
 0x1ba   : > { %v2024_v59 = vpop.permute.xlu0 %2023  ;;  %8732 = vst [vmem:[#allocation23_spill] sm:$0xff] %v6665_v32  ;;  %8733 = vst [vmem:[#allocation76_spill] sm:$0xff] %v6670_v34  ;;  %v6676_v10 = vld [vmem:[%s5384_s18 + $0x78] sm:$0xff]   ;;  %v8737_v19 = vld [vmem:[#allocation73_spill] sm:$0xff] }
 0x1bb   : > { %8728 = vst [vmem:[#allocation42_spill] sm:$0xff] %v6644_v39  ;;  %8730 = vst [vmem:[#allocation74_spill] sm:$0xff] %v6652_v17  ;;  %2243 = vperm.xlu1 %4820, %v5131_v53   ;;  %v2039_v49 = vmul.f32 %v6624_v15, %v2024_v59  ;;  %v2042_v24 = vadd.f32 %v2038_v38, %v6081_v20  ;;  %v1511_v53 = vmul.f32 %v8737_v19, %v6035_v58  ;;  %v5137_v26 = vld [vmem:[%s5379_s14 + $0x1c8] sm:$0xff]  ;;  %v8741_v54 = vld [vmem:[#allocation85_spill] sm:$0xff]  ;;  %s351_s14 = scalar_lea.vmem [#allocation2], %s4536_s9 }
 0x1bc   : > { %8734 = vst [vmem:[#allocation19_spill] sm:$0xff] %v6676_v10  ;;  %8735 = vst [vmem:[#allocation21_spill] sm:$0xff] %v6682_v42  ;;  %v2028_v17 = vpop.permute.xlu1 %2027  ;;  %v8738_v32 = vld [vmem:[#allocation78_spill] sm:$0xff]  ;;  %v1923_v59 = vmul.f32 %v6312_v29, %v6044_v7  ;;  %s4393_s16 = sshll.u32 %s351_s14, 4  ;;  %s8213_s16 = int_to_ptr.vmem [resolvable:$true] %s4393_s16 }
 0x1bd   : > { %8736 = vst [vmem:[#allocation77_spill] sm:$0xff] %v6687_v25  ;;  %v2043_v47 = vadd.f32 %v2039_v49, %v6096_v55  ;;  %v2441_v20 = vrot.slane %v2042_v24, %v6660_v35  ;;  %v2040_v38 = vmul.f32 %v6624_v15, %v2028_v17  ;;  %v1514_v42 = vmul.f32 %v8738_v32, %v6035_v58  ;;  %v8739_v25 = vld [vmem:[#allocation39_spill] sm:$0xff]  ;;  %s5138_s25 = scalar_lea.vmem %s8213_s16, 128 }
 0x1be   : > { %v2048_v39 = vpop.permute.xlu0 %2047  ;;  %v2434_v55 = vcombine.high %v2042_v24, %v2042_v24  ;;  %v8740_v17 = vld [vmem:[#allocation75_spill] sm:$0xff]  ;;  %v1925_v32 = vmul.f32 %v6322_v11, %v6044_v7  ;;  %v1575_v24 = vadd.f32 %v1511_v53, %v6116_v63  ;;  %p5139_p1 = scmp.ne.s32.totalorder %s8213_s16, %s5138_s25 }
 0x1bf   : > { %2275 = vperm.xlu1 %4820, %v5137_v26   ;;  %v2302_v49 = vmul.f32 %v2048_v39, %v6624_v15  ;;  %v2449_v18 = vcombine.high %v2441_v20, %v2441_v20  ;;  %v2457_v10 = vrot.slane %v2441_v20, %v6660_v35  ;;  %v2483_v19 = vcombine.high %v2043_v47, %v2043_v47 }
 0x1c0   : > { %v2044_v34 = vadd.f32 %v2040_v38, %v8739_v25  ;;  %v1513_v44 = vmul.f32 %v8740_v17, %v6035_v58  ;;  %v1578_v26 = vadd.f32 %v1514_v42, %v8741_v54  ;;  %v2032_v29 = vpop.permute.xlu1 %2031  ;;  %v1926_v39 = vmul.f32 %v6330_v5, %v6044_v7  ;;  %v8742_v25 = vld [vmem:[#allocation127_spill] sm:$0xff]  ;;  %p5140_p2 = pnand %p5139_p1, %p5328_p3 }
 0x1c1   : > { %v2366_v23 = vadd.f32 %v2302_v49, %v6083_v3  ;;  %v6714_v20 = vrot.slane %v2043_v47, %v6660_v35  ;;  %v2633_v38 = vrot.slane %v2457_v10, %v8742_v25  ;;  %v2041_v42 = vmul.f32 %v6624_v15, %v2032_v29 }
 0x1c2   : > { %v2056_v21 = vpop.permute.xlu0 %2055  ;;  %v1577_v58 = vadd.f32 %v6112_v41, %v1513_v44  ;;  %v2532_v54 = vcombine.high %v2044_v34, %v2044_v34  ;;  %v2471_v11 = vrot.slane %v2449_v18, %v6660_v35  ;;  %v6720_v3 = vadd.f32 %v1923_v59, %v1575_v24  ;;  %p5141_p4 = pneg %p5140_p2 }
 0x1c3   : > { %v6723_v63 = vrot.slane %v2434_v55, %v6660_v35  ;;  %v6726_v7 = vrot.slane %v2483_v19, %v6660_v35  ;;  %v2790_v5 = vsub.f32 %v2633_v38, %v2366_v23  ;;  %v6731_v53 = vadd.f32 %v2041_v42, %v6091_v62 }
 0x1c4   : > { %8743 = vst [vmem:[#allocation22_spill] sm:$0xff] %v6720_v3  ;;  %v6728_v47 = vadd.f32 %v1925_v32, %v1577_v58  ;;  %v2304_v41 = vmul.f32 %v2056_v21, %v6624_v15  ;;  %v2052_v44 = vpop.permute.xlu1 %2051  ;;  %v2479_v49 = vcombine.high %v2457_v10, %v2457_v10  ;;  %v6734_v17 = vadd.f32 %v1926_v39, %v1578_v26 }
 0x1c5   : > { %v6740_v59 = vrot.slane %v6714_v20, %v6660_v35  ;;  %v2637_v23 = vrot.slane %v2471_v11, %v8742_v25  ;;  %v6744_v19 = vrot.slane %v2044_v34, %v6660_v35  ;;  %v6747_v62 = vrot.slane %v2532_v54, %v6660_v35 }
 0x1c6   : > { %8744 = vst [vmem:[#allocation87_spill] sm:$0xff] %v6728_v47  ;;  %8745 = vst [vmem:[#allocation24_spill] sm:$0xff] %v6734_v17  ;;  %v2064_v55 = vpop.permute.xlu0 %2063  ;;  %v2368_v21 = vadd.f32 %v2304_v41, %v6104_v9  ;;  %v2303_v10 = vmul.f32 %v2052_v44, %v6624_v15  ;;  %v2450_v26 = vcombine.high %v6723_v63, %v6723_v63  ;;  %v2918_v29 = vmul.f32 0.2, %v2790_v5 }
 0x1c7   : > { %8746 = vst [vmem:[#allocation80_spill] sm:$0xff] %v6744_v19  ;;  %8747 = vst [vmem:[#allocation79_spill] sm:$0xff] %v6747_v62  ;;  %v2306_v24 = vmul.f32 %v2064_v55, %v6624_v15  ;;  %v6758_v34 = vrot.slane %v6726_v7, %v6660_v35  ;;  %vm2854_vm1 = vcmp.gt.f32.partialorder %v2790_v5, 0.0  ;;  %v2641_v39 = vrot.slane %v2479_v49, %v8742_v25 }
 0x1c8   : > { %v2060_v58 = vpop.permute.xlu1 %2059  ;;  %v2481_v9 = vcombine.high %v2471_v11, %v2471_v11  ;;  %v2792_v54 = vsub.f32 %v2637_v23, %v2368_v21  ;;  %v2367_v42 = vadd.f32 %v2303_v10, %v6088_v51  ;;  %v6770_v3 = vrot.slane %v6744_v19, %v6660_v35 }
 0x1c9   : > { %v2370_v41 = vadd.f32 %v2306_v24, %v6124_v6  ;;  %v2305_v44 = vmul.f32 %v2060_v58, %v6624_v15  ;;  %v6773_v49 = vsel %vm2854_vm1, %v2790_v5, %v2918_v29  ;;  %v6780_v17 = vrot.slane %v6723_v63, %v6660_v35 }
 0x1ca   : > { %v2072_v32 = vpop.permute.xlu0 %2071  ;;  %8748 = vst [vmem:[#allocation84_spill] sm:$0xff] %v6770_v3  ;;  %v2920_v51 = vmul.f32 0.2, %v2792_v54  ;;  %v2791_v21 = vsub.f32 %v2633_v38, %v2367_v42  ;;  %vm2856_vm2 = vcmp.gt.f32.partialorder %v2792_v54, 0.0  ;;  %v2645_v24 = vrot.slane %v2481_v9, %v8742_v25 }
 0x1cb   : > { %v2308_v11 = vmul.f32 %v2072_v32, %v6624_v15  ;;  %v2794_v6 = vsub.f32 %v2641_v39, %v2370_v41  ;;  %v2369_v10 = vadd.f32 %v2305_v44, %v6110_v14  ;;  %v3046_v38 = vsel %vm718_vm0, %v6773_v49, -inf }
 0x1cc   : > { %v2068_v55 = vpop.permute.xlu1 %2067  ;;  %vm2855_vm3 = vcmp.gt.f32.partialorder %v2791_v21, 0.0  ;;  %v2919_v18 = vmul.f32 0.2, %v2791_v21  ;;  %v6784_v14 = vsel %vm2856_vm2, %v2792_v54, %v2920_v51 }
 0x1cd   : > { %v2372_v58 = vadd.f32 %v2308_v11, %v6138_v31  ;;  %vm2858_vm4 = vcmp.gt.f32.partialorder %v2794_v6, 0.0  ;;  %v2922_v32 = vmul.f32 0.2, %v2794_v6  ;;  %v2793_v29 = vsub.f32 %v2637_v23, %v2369_v10 }
 0x1ce   : > { %v2080_v5 = vpop.permute.xlu0 %2079  ;;  %v6786_v9 = vsel %vm2855_vm3, %v2791_v21, %v2919_v18  ;;  %v2307_v31 = vmul.f32 %v2068_v55, %v6624_v15  ;;  %v6796_v23 = vrot.slane %v6747_v62, %v6660_v35  ;;  %v2649_v18 = vrot.slane %v6780_v17, %v8742_v25 }
 0x1cf   : > { %v2796_v42 = vsub.f32 %v2645_v24, %v2372_v58  ;;  %v2310_v41 = vmul.f32 %v2080_v5, %v6624_v15  ;;  %v3047_v44 = vsel %vm718_vm0, %v6786_v9, -inf  ;;  %v6792_v63 = vsel %vm2858_vm4, %v2794_v6, %v2922_v32 }
 0x1d0   : > { %vm2857_vm5 = vcmp.gt.f32.partialorder %v2793_v29, 0.0  ;;  %v2921_v11 = vmul.f32 0.2, %v2793_v29  ;;  %v2076_v3 = vpop.permute.xlu1 %2075  ;;  %8749 = vst [vmem:[#allocation86_spill] sm:$0xff] %v6796_v23  ;;  %v3048_v54 = vmax.f32 %v3046_v38, %v3047_v44  ;;  %v6801_v55 = vrot.slane %v2450_v26, %v6660_v35 }
 0x1d1   : > { %v2371_v21 = vadd.f32 %v2307_v31, %v6128_v56  ;;  %v2374_v6 = vadd.f32 %v2310_v41, %v6152_v8  ;;  %v2309_v10 = vmul.f32 %v2076_v3, %v6624_v15  ;;  %v3055_v5 = vsel %vm718_vm0, %v6784_v14, -inf }
 0x1d2   : > { %v6803_v51 = vsel %vm2857_vm5, %v2793_v29, %v2921_v11  ;;  %v2088_v58 = vpop.permute.xlu0 %2087  ;;  %v3049_v32 = vrot.slane %v3048_v54, 4  ;;  %v3064_v38 = vsel %vm718_vm0, %v6792_v63, -inf  ;;  %vm2860_vm6 = vcmp.gt.f32.partialorder %v2796_v42, 0.0 }
 0x1d3   : > { %v3056_v26 = vsel %vm718_vm0, %v6803_v51, -inf  ;;  %v2795_v29 = vsub.f32 %v2641_v39, %v2371_v21  ;;  %v2798_v11 = vsub.f32 %v2649_v18, %v2374_v6  ;;  %v2373_v8 = vadd.f32 %v2309_v10, %v6142_v46 }
 0x1d4   : > { %v3057_v44 = vmax.f32 %v3055_v5, %v3056_v26  ;;  %v2084_v56 = vpop.permute.xlu1 %2083  ;;  %v3050_v31 = vmax.f32 %v3048_v54, %v3049_v32  ;;  %v2312_v3 = vmul.f32 %v2088_v58, %v6624_v15  ;;  %v2924_v62 = vmul.f32 0.2, %v2796_v42 }
 0x1d5   : > { %v2311_v41 = vmul.f32 %v2084_v56, %v6624_v15  ;;  %vm2859_vm7 = vcmp.gt.f32.partialorder %v2795_v29, 0.0  ;;  %v2923_v47 = vmul.f32 0.2, %v2795_v29  ;;  %v2797_v2 = vsub.f32 %v2645_v24, %v2373_v8 }
 0x1d6   : > { %v3058_v23 = vrot.slane %v3057_v44, 4  ;;  %v3051_v19 = vrot.slane %v3050_v31, 2  ;;  %v6819_v5 = vrot.slane %v6801_v55, %v8742_v25  ;;  %v2376_v39 = vadd.f32 %v2312_v3, %v6166_v22  ;;  %v2096_v8 = vpop.permute.xlu0 %2095 }
 0x1d7   : > { %v6822_v54 = vsel %vm2859_vm7, %v2795_v29, %v2923_v47  ;;  %v2926_v46 = vmul.f32 0.2, %v2798_v11  ;;  %v2375_v6 = vadd.f32 %v2311_v41, %v6156_v36  ;;  %vm2862_vm8 = vcmp.gt.f32.partialorder %v2798_v11, 0.0 }
 0x1d8   : > { %v3059_v21 = vmax.f32 %v3057_v44, %v3058_v23  ;;  %v3052_v10 = vmax.f32 %v3050_v31, %v3051_v19  ;;  %v3065_v58 = vsel %vm718_vm0, %v6822_v54, -inf  ;;  %vm2861_vm9 = vcmp.gt.f32.partialorder %v2797_v2, 0.0 }
 0x1d9   : > { %v6828_v24 = vsel %vm2860_vm6, %v2796_v42, %v2924_v62  ;;  %v3066_v26 = vmax.f32 %v3064_v38, %v3065_v58  ;;  %v2925_v56 = vmul.f32 0.2, %v2797_v2  ;;  %v2800_v47 = vsub.f32 %v6819_v5, %v2376_v39 }
 0x1da   : > { %v3060_v32 = vrot.slane %v3059_v21, 2  ;;  %v3053_v22 = vrot.slane %v3052_v10, 1  ;;  %v2799_v23 = vsub.f32 %v2649_v18, %v2375_v6  ;;  %v2480_v36 = vcombine.high %v6780_v17, %v6780_v17 }
 0x1db   : > { %v3067_v44 = vrot.slane %v3066_v26, 4  ;;  %v6833_v29 = vsel %vm2862_vm8, %v2798_v11, %v2926_v46  ;;  %v6835_v31 = vsel %vm2861_vm9, %v2797_v2, %v2925_v56  ;;  %v3073_v62 = vsel %vm718_vm0, %v6828_v24, -inf }
 0x1dc   : > { %v3061_v19 = vmax.f32 %v3059_v21, %v3060_v32  ;;  %v3054_v3 = vmax.f32 %v3052_v10, %v3053_v22  ;;  %v3074_v42 = vsel %vm718_vm0, %v6835_v31, -inf  ;;  %v2314_v38 = vmul.f32 %v2096_v8, %v6624_v15  ;;  %v2092_v32 = vpop.permute.xlu1 %2091 }
 0x1dd   : > { %v3068_v18 = vmax.f32 %v3066_v26, %v3067_v44  ;;  %v3075_v39 = vmax.f32 %v3073_v62, %v3074_v42  ;;  %vm2863_vm10 = vcmp.gt.f32.partialorder %v2799_v23, 0.0  ;;  %v3082_v2 = vsel %vm718_vm0, %v6833_v29, -inf }
 0x1de   : > { %v3062_v41 = vrot.slane %v3061_v19, 1  ;;  %v3334_v17 = vsub.f32 %v6773_v49, %v3054_v3  ;;  %v3335_v11 = vsub.f32 %v6786_v9, %v3054_v3  ;;  %v2927_v21 = vmul.f32 0.2, %v2799_v23 }
 0x1df   : > { %v3069_v6 = vrot.slane %v3068_v18, 2  ;;  %v3076_v10 = vrot.slane %v3075_v39, 4  ;;  %v6847_v58 = vrot.slane %v2480_v36, %v8742_v25  ;;  %v2378_v22 = vadd.f32 %v2314_v38, %v6180_v16 }
 0x1e0   : > { %v3063_v46 = vmax.f32 %v3061_v19, %v3062_v41  ;;  %v3398_v56 = vmul.f32 1.442695, %v3334_v17  ;;  %v3400_v8 = vmul.f32 1.442695, %v3335_v11  ;;  %v6849_v26 = vsel %vm2863_vm10, %v2799_v23, %v2927_v21  ;;  %v2104_v17 = vpop.permute.xlu0 %2103 }
 0x1e1   : > { %v3070_v44 = vmax.f32 %v3068_v18, %v3069_v6  ;;  %v3077_v3 = vmax.f32 %v3075_v39, %v3076_v10  ;;  %v3083_v19 = vsel %vm718_vm0, %v6849_v26, -inf  ;;  %v6857_v36 = vsub.f32 %v6847_v58, %v2378_v22  ;;  %v2100_v6 = vpop.permute.xlu1 %2099 }
 0x1e2   : > { %v3336_v49 = vsub.f32 %v6784_v14, %v3063_v46  ;;  %v3337_v9 = vsub.f32 %v6803_v51, %v3063_v46  ;;  %4890 = vpow2.f32 %v3398_v56  ;;  %v2313_v62 = vmul.f32 %v2092_v32, %v6624_v15 }
 0x1e3   : > { %4892 = vpow2.f32 %v3400_v8  ;;  %v3071_v41 = vrot.slane %v3070_v44, 1  ;;  %v2581_v16 = vcombine.high %v6731_v53, %v6731_v53  ;;  %v3078_v14 = vrot.slane %v3077_v3, 2 }
 0x1e4   : > { %v3402_v23 = vmul.f32 1.442695, %v3336_v49  ;;  %v3404_v42 = vmul.f32 1.442695, %v3337_v9  ;;  %v2928_v51 = vmul.f32 0.2, %v2800_v47  ;;  %v3084_v38 = vmax.f32 %v3082_v2, %v3083_v19 }
 0x1e5   : > { %v3072_v18 = vmax.f32 %v3070_v44, %v3071_v41  ;;  %vm2864_vm11 = vcmp.gt.f32.partialorder %v2800_v47, 0.0  ;;  %v2377_v39 = vadd.f32 %v2313_v62, %v6170_v28  ;;  %v6865_v11 = vrot.slane %v6731_v53, %v6660_v35 }
 0x1e6   : > { %4894 = vpow2.f32 %v3402_v23  ;;  %v3079_v21 = vmax.f32 %v3077_v3, %v3078_v14  ;;  %v3085_v46 = vrot.slane %v3084_v38, 4  ;;  %v2482_v56 = vcombine.high %v6801_v55, %v6801_v55 }
 0x1e7   : > { %4896 = vpow2.f32 %v3404_v42  ;;  %v3338_v10 = vsub.f32 %v6792_v63, %v3072_v18  ;;  %v3339_v32 = vsub.f32 %v6822_v54, %v3072_v18  ;;  %v2801_v2 = vsub.f32 %v6819_v5, %v2377_v39 }
 0x1e8   : > { %v3080_v8 = vrot.slane %v3079_v21, 1  ;;  %v6872_v28 = vsel %vm2864_vm11, %v2800_v47, %v2928_v51  ;;  %v3086_v22 = vmax.f32 %v3084_v38, %v3085_v46  ;;  %v2316_v49 = vmul.f32 %v2104_v17, %v6624_v15 }
 0x1e9   : > { %v3406_v9 = vmul.f32 1.442695, %v3338_v10  ;;  %v3408_v44 = vmul.f32 1.442695, %v3339_v32  ;;  %vm2865_vm12 = vcmp.gt.f32.partialorder %v2801_v2, 0.0  ;;  %v2315_v3 = vmul.f32 %v2100_v6, %v6624_v15 }
 0x1ea   : > { %v3081_v19 = vmax.f32 %v3079_v21, %v3080_v8  ;;  %v3087_v63 = vrot.slane %v3086_v22, 2  ;;  %v2929_v62 = vmul.f32 0.2, %v2801_v2  ;;  %v2380_v54 = vadd.f32 %v2316_v49, %v6194_v12 }
 0x1eb   : > { %4898 = vpow2.f32 %v3406_v9  ;;  %v3091_v55 = vsel %vm718_vm0, %v6872_v28, -inf  ;;  %v6880_v5 = vrot.slane %v2482_v56, %v8742_v25  ;;  %v6883_v47 = vadd.f32 %v2315_v3, %v6184_v43 }
 0x1ec   : > { %v4891_v23 = vpop.eup %4890  ;;  %4900 = vpow2.f32 %v3408_v44  ;;  %v3340_v42 = vsub.f32 %v6828_v24, %v3081_v19  ;;  %v3341_v41 = vsub.f32 %v6835_v31, %v3081_v19  ;;  %v3088_v14 = vmax.f32 %v3086_v22, %v3087_v63 }
 0x1ed   : > { %v4893_v51 = vpop.eup %4892  ;;  %v8750_v12 = vunpack.c.l.bf16 %v6427_v37  ;;  %v3630_v18 = vsel %vm718_vm0, %v4891_v23, 0.0  ;;  %v6891_v39 = vsel %vm2865_vm12, %v2801_v2, %v2929_v62  ;;  %v6894_v17 = vsub.f32 %v6880_v5, %v2380_v54 }
 0x1ee   : > { %v8751_v43 = vunpack.c.h.bf16 %v6427_v37  ;;  %v3631_v24 = vsel %vm718_vm0, %v4893_v51, 0.0  ;;  %v3410_v46 = vmul.f32 1.442695, %v3340_v42  ;;  %v3412_v31 = vmul.f32 1.442695, %v3341_v41 }
 0x1ef   : > { %v3542_v38 = vmul.f32 %v4891_v23, %v8750_v12  ;;  %v3632_v32 = vadd.f32 %v3631_v24, %v3630_v18  ;;  %v3089_v56 = vrot.slane %v3088_v14, 1  ;;  %v3092_v8 = vsel %vm718_vm0, %v6891_v39, -inf }
 0x1f0   : > { %v3543_v21 = vmul.f32 %v4893_v51, %v8751_v43  ;;  %v4895_v6 = vpop.eup %4894  ;;  %v8752_v49 = vunpack.c.l.bf16 %v6443_v1  ;;  %4902 = vpow2.f32 %v3410_v46  ;;  %v8753_v19 = vunpack.c.h.bf16 %v6443_v1 }
 0x1f1   : > { %v3558_v10 = vsel %vm718_vm0, %v3542_v38, 0.0  ;;  %v4897_v2 = vpop.eup %4896  ;;  %v3822_v37 = vsel %vm718_vm0, %v4895_v6, 0.0  ;;  %v3633_v3 = vrot.slane %v3632_v32, 4  ;;  %4904 = vpow2.f32 %v3412_v31 }
 0x1f2   : > { %v3559_v22 = vsel %vm718_vm0, %v3543_v21, 0.0  ;;  %v3734_v9 = vmul.f32 %v4895_v6, %v8752_v49  ;;  %v3735_v63 = vmul.f32 %v4897_v2, %v8753_v19  ;;  %v3823_v62 = vsel %vm718_vm0, %v4897_v2, 0.0 }
 0x1f3   : > { %v6906_v44 = vadd.f32 %v3559_v22, %v3558_v10  ;;  %v3824_v23 = vadd.f32 %v3823_v62, %v3822_v37  ;;  %v3090_v42 = vmax.f32 %v3088_v14, %v3089_v56  ;;  %v6916_v41 = vrot.slane %v2581_v16, %v6660_v35 }
 0x1f4   : > { %v3750_v54 = vsel %vm718_vm0, %v3734_v9, 0.0  ;;  %v3634_v51 = vadd.f32 %v3633_v3, %v3632_v32  ;;  %v3751_v12 = vsel %vm718_vm0, %v3735_v63, 0.0  ;;  %v3093_v38 = vmax.f32 %v3091_v55, %v3092_v8 }
 0x1f5   : > { %v6919_v18 = vadd.f32 %v3751_v12, %v3750_v54  ;;  %v3825_v1 = vrot.slane %v3824_v23, 4  ;;  %v3342_v43 = vsub.f32 %v6833_v29, %v3090_v42  ;;  %v3343_v21 = vsub.f32 %v6849_v26, %v3090_v42  ;;  %v4899_v24 = vpop.eup %4898 }
 0x1f6   : > { %v3635_v46 = vrot.slane %v3634_v51, 2  ;;  %vm2866_vm13 = vcmp.gt.f32.partialorder %v6857_v36, 0.0  ;;  %v2930_v53 = vmul.f32 0.2, %v6857_v36  ;;  %v4901_v16 = vpop.eup %4900  ;;  %v8754_v55 = vunpack.c.l.bf16 %v6461_v61 }
 0x1f7   : > { %v3826_v31 = vadd.f32 %v3825_v1, %v3824_v23  ;;  %v4014_v10 = vsel %vm718_vm0, %v4899_v24, 0.0  ;;  %v3094_v32 = vrot.slane %v3093_v38, 4  ;;  %v8755_v26 = vunpack.c.h.bf16 %v6461_v61 }
 0x1f8   : > { %v3926_v6 = vmul.f32 %v4899_v24, %v8754_v55  ;;  %v3636_v29 = vadd.f32 %v3635_v46, %v3634_v51  ;;  %v4015_v8 = vsel %vm718_vm0, %v4901_v16, 0.0  ;;  %v3414_v2 = vmul.f32 1.442695, %v3342_v43 }
 0x1f9   : > { %v3927_v56 = vmul.f32 %v4901_v16, %v8755_v26  ;;  %v6935_v22 = vrot.slane %v6865_v11, %v6660_v35  ;;  %v3827_v49 = vrot.slane %v3826_v31, 2  ;;  %v4016_v37 = vadd.f32 %v4015_v8, %v4014_v10  ;;  %v2120_v10 = vpop.permute.xlu0 %2119 }
 0x1fa   : > { %v3942_v9 = vsel %vm718_vm0, %v3926_v6, 0.0  ;;  %4906 = vpow2.f32 %v3414_v2  ;;  %v3416_v19 = vmul.f32 1.442695, %v3343_v21  ;;  %v6942_v61 = vsel %vm2866_vm13, %v6857_v36, %v2930_v53  ;;  %v4903_v63 = vpop.eup %4902 }
 0x1fb   : > { %v3943_v3 = vsel %vm718_vm0, %v3927_v56, 0.0  ;;  %v3828_v62 = vadd.f32 %v3827_v49, %v3826_v31  ;;  %v4017_v23 = vrot.slane %v4016_v37, 4  ;;  %v3095_v42 = vmax.f32 %v3093_v38, %v3094_v32  ;;  %v4905_v24 = vpop.eup %4904 }
 0x1fc   : > { %v6944_v54 = vadd.f32 %v3943_v3, %v3942_v9  ;;  %v3637_v51 = vrot.slane %v3636_v29, 1  ;;  %v8756_v12 = vunpack.c.l.bf16 %v6477_v0  ;;  %v4206_v43 = vsel %vm718_vm0, %v4903_v63, 0.0 }
 0x1fd   : > { %4908 = vpow2.f32 %v3416_v19  ;;  %v6953_v36 = vrot.slane %v6916_v41, %v6660_v35  ;;  %v3829_v46 = vrot.slane %v3828_v62, 1  ;;  %v3096_v53 = vrot.slane %v3095_v42, 2 }
 0x1fe   : > { %v4118_v1 = vmul.f32 %v4903_v63, %v8756_v12  ;;  %v3561_v16 = vrot.slane %v6906_v44, 4  ;;  %v8757_v38 = vunpack.c.h.bf16 %v6477_v0  ;;  %v4207_v6 = vsel %vm718_vm0, %v4905_v24, 0.0 }
 0x1ff   : > { %v4018_v32 = vadd.f32 %v4017_v23, %v4016_v37  ;;  %v4208_v26 = vadd.f32 %v4207_v6, %v4206_v43  ;;  %v3100_v56 = vsel %vm718_vm0, %v6942_v61, -inf  ;;  %v8758_v8 = vcombine.high %v6714_v20, %v6714_v20 }
 0x200   : > { %v4119_v31 = vmul.f32 %v4905_v24, %v8757_v38  ;;  %v4134_v55 = vsel %vm718_vm0, %v4118_v1, 0.0  ;;  %v3638_v49 = vadd.f32 %v3637_v51, %v3636_v29  ;;  %v3097_v9 = vmax.f32 %v3095_v42, %v3096_v53 }
 0x201   : > { %v6966_v2 = vrot.slane %v8758_v8, %v6660_v35  ;;  %v2803_v3 = vsub.f32 %v6847_v58, %v6883_v47  ;;  %v3830_v19 = vadd.f32 %v3829_v46, %v3828_v62  ;;  %v4209_v37 = vrot.slane %v4208_v26, 4 }
 0x202   : > { %v4135_v0 = vsel %vm718_vm0, %v4119_v31, 0.0  ;;  %v2320_v23 = vmul.f32 %v2120_v10, %v6624_v15  ;;  %v6975_v12 = vadd.f32 %v3561_v16, %v6906_v44  ;;  %v3098_v1 = vrot.slane %v3097_v9, 1 }
 0x203   : > { %v6971_v63 = vadd.f32 %v4135_v0, %v4134_v55  ;;  %vm2867_vm14 = vcmp.gt.f32.partialorder %v2803_v3, 0.0  ;;  %v2931_v20 = vmul.f32 0.2, %v2803_v3  ;;  %v3753_v29 = vrot.slane %v6919_v18, 4 }
 0x204   : > { %8759 = vst [vmem:[#allocation27_spill] sm:$0xff] %v6975_v12  ;;  %v3945_v51 = vrot.slane %v6944_v54, 4  ;;  %v4019_v42 = vrot.slane %v4018_v32, 2  ;;  %v4210_v43 = vadd.f32 %v4209_v37, %v4208_v26  ;;  %vm2868_vm15 = vcmp.gt.f32.partialorder %v6894_v17, 0.0  ;;  %v4907_v58 = vpop.eup %4906  ;;  %v2108_v26 = vpop.permute.xlu1 %2107 }
 0x205   : > { %4910 = vrcp.f32 %v3638_v49  ;;  %v3099_v47 = vmax.f32 %v3097_v9, %v3098_v1  ;;  %v2932_v62 = vmul.f32 0.2, %v6894_v17  ;;  %v6981_v24 = vsel %vm2867_vm14, %v2803_v3, %v2931_v20 }
 0x206   : > { %4912 = vrcp.f32 %v3830_v19  ;;  %v4211_v44 = vrot.slane %v4210_v43, 2  ;;  %v8760_v46 = vunpack.c.l.bf16 %v6495_v4  ;;  %v2384_v16 = vadd.f32 %v2320_v23, %v6222_v48 }
 0x207   : > { %v4909_v38 = vpop.eup %4908  ;;  %v3639_v31 = vsel %vm718_vm0, %v4907_v58, 0.0  ;;  %v3344_v55 = vsub.f32 %v6872_v28, %v3099_v47  ;;  %v3345_v6 = vsub.f32 %v6891_v39, %v3099_v47  ;;  %v3101_v10 = vsel %vm718_vm0, %v6981_v24, -inf }
 0x208   : > { %v3544_v53 = vmul.f32 %v4907_v58, %v8760_v46  ;;  %v4020_v8 = vadd.f32 %v4019_v42, %v4018_v32  ;;  %v8761_v49 = vunpack.c.h.bf16 %v6495_v4  ;;  %v2669_v48 = vrot.slane %v6966_v2, %v8742_v25  ;;  %v2128_v42 = vpop.permute.xlu0 %2127 }
 0x209   : > { %v3640_v3 = vsel %vm718_vm0, %v4909_v38, 0.0  ;;  %v3418_v19 = vmul.f32 1.442695, %v3344_v55  ;;  %v3420_v37 = vmul.f32 1.442695, %v3345_v6  ;;  %v3102_v28 = vmax.f32 %v3100_v56, %v3101_v10 }
 0x20a   : > { %v3545_v0 = vmul.f32 %v4909_v38, %v8761_v49  ;;  %v3567_v9 = vsel %vm718_vm0, %v3544_v53, 0.0  ;;  %v4212_v23 = vadd.f32 %v4211_v44, %v4210_v43  ;;  %v3641_v1 = vadd.f32 %v3640_v3, %v3639_v31 }
 0x20b   : > { %v2808_v20 = vsub.f32 %v2669_v48, %v2384_v16  ;;  %4914 = vpow2.f32 %v3418_v19  ;;  %v3103_v4 = vrot.slane %v3102_v28, 4  ;;  %v2317_v32 = vmul.f32 %v2108_v26, %v6624_v15  ;;  %v2124_v16 = vpop.permute.xlu1 %2123 }
 0x20c   : > { %v3568_v39 = vsel %vm718_vm0, %v3545_v0, 0.0  ;;  %v7002_v47 = vadd.f32 %v3753_v29, %v6919_v18  ;;  %v7005_v46 = vadd.f32 %v3945_v51, %v6944_v54  ;;  %v3642_v53 = vrot.slane %v3641_v1, 4 }
 0x20d   : > { %v6998_v58 = vadd.f32 %v3568_v39, %v3567_v9  ;;  %4916 = vpow2.f32 %v3420_v37  ;;  %v3104_v56 = vmax.f32 %v3102_v28, %v3103_v4  ;;  %vm2872_vm1 = vcmp.gt.f32.partialorder %v2808_v20, 0.0  ;;  %v2152_v39 = vpop.permute.xlu0 %2151 }
 0x20e   : > { %8762 = vst [vmem:[#allocation82_spill] sm:$0xff] %v7005_v46  ;;  %v2936_v43 = vmul.f32 0.2, %v2808_v20  ;;  %v2381_v44 = vadd.f32 %v2317_v32, %v6198_v13  ;;  %v4021_v38 = vrot.slane %v4020_v8, 1  ;;  %v4137_v31 = vrot.slane %v6971_v63, 4 }
 0x20f   : > { %v2528_v55 = vcombine.high %v6740_v59, %v6740_v59  ;;  %v2322_v18 = vmul.f32 %v2128_v42, %v6624_v15  ;;  %v7012_v29 = vpop.eup %4910  ;;  %v4213_v54 = vrot.slane %v4212_v23, 1  ;;  %v7017_v51 = vsel %vm2868_vm15, %v6894_v17, %v2932_v62  ;;  %v2132_v32 = vpop.permute.xlu1 %2131 }
 0x210   : > { %8763 = vst [vmem:[#allocation81_spill] sm:$0xff] %v7012_v29  ;;  %v3105_v6 = vrot.slane %v3104_v56, 2  ;;  %v2805_v13 = vsub.f32 %v6880_v5, %v2381_v44  ;;  %v7020_v10 = vpop.eup %4912  ;;  %v3643_v26 = vadd.f32 %v3642_v53, %v3641_v1  ;;  %v7022_v49 = vsel %vm2872_vm1, %v2808_v20, %v2936_v43 }
 0x211   : > { %v2673_v0 = vrot.slane %v2528_v55, %v8742_v25  ;;  %v2386_v9 = vadd.f32 %v2322_v18, %v6236_v57  ;;  %v2321_v37 = vmul.f32 %v2124_v16, %v6624_v15  ;;  %v4022_v28 = vadd.f32 %v4021_v38, %v4020_v8 }
 0x212   : > { %v3106_v3 = vmax.f32 %v3104_v56, %v3105_v6  ;;  %vm2869_vm2 = vcmp.gt.f32.partialorder %v2805_v13, 0.0  ;;  %v2933_v19 = vmul.f32 0.2, %v2805_v13  ;;  %v7028_v17 = vadd.f32 %v4137_v31, %v6971_v63 }
 0x213   : > { %v3109_v5 = vsel %vm718_vm0, %v7017_v51, -inf  ;;  %v2810_v62 = vsub.f32 %v2673_v0, %v2386_v9  ;;  %v4214_v1 = vadd.f32 %v4213_v54, %v4212_v23  ;;  %v2385_v57 = vadd.f32 %v2321_v37, %v6226_v52 }
 0x214   : > { %8764 = vst [vmem:[#allocation92_spill] sm:$0xff] %v7028_v17  ;;  %v3107_v20 = vrot.slane %v3106_v3, 1  ;;  %v7032_v4 = vsel %vm2869_vm2, %v2805_v13, %v2933_v19  ;;  %v3644_v42 = vrot.slane %v3643_v26, 2  ;;  %v3127_v53 = vsel %vm718_vm0, %v7022_v49, -inf  ;;  %v8825_v17 = vld [vmem:[#allocation19_spill] sm:$0xff] }
 0x215   : > { %v3110_v63 = vsel %vm718_vm0, %v7032_v4, -inf  ;;  %v8765_v8 = vcombine.high %v6726_v7, %v6726_v7  ;;  %v4915_v23 = vpop.eup %4914  ;;  %v2809_v16 = vsub.f32 %v2669_v48, %v2385_v57  ;;  %v2328_v52 = vmul.f32 %v2152_v39, %v6624_v15 }
 0x216   : > { %v3108_v43 = vmax.f32 %v3106_v3, %v3107_v20  ;;  %v3111_v44 = vmax.f32 %v3109_v5, %v3110_v63  ;;  %v8766_v31 = vunpack.c.l.bf16 %v6511_v40  ;;  %v3831_v18 = vsel %vm718_vm0, %v4915_v23, 0.0 }
 0x217   : > { %v7043_v56 = vrot.slane %v8765_v8, %v6660_v35  ;;  %v4917_v38 = vpop.eup %4916  ;;  %vm2874_vm3 = vcmp.gt.f32.partialorder %v2810_v62, 0.0  ;;  %v2323_v54 = vmul.f32 %v2132_v32, %v6624_v15  ;;  %v8767_v6 = vunpack.c.h.bf16 %v6511_v40 }
 0x218   : > { %v3736_v55 = vmul.f32 %v4915_v23, %v8766_v31  ;;  %v3832_v13 = vsel %vm718_vm0, %v4917_v38, 0.0  ;;  %v3346_v9 = vsub.f32 %v6942_v61, %v3108_v43  ;;  %v3347_v48 = vsub.f32 %v6981_v24, %v3108_v43 }
 0x219   : > { %v3737_v7 = vmul.f32 %v4917_v38, %v8767_v6  ;;  %v3833_v19 = vadd.f32 %v3832_v13, %v3831_v18  ;;  %v3112_v37 = vrot.slane %v3111_v44, 4  ;;  %v2938_v5 = vmul.f32 0.2, %v2810_v62 }
 0x21a   : > { %v3759_v3 = vsel %vm718_vm0, %v3736_v55, 0.0  ;;  %v3422_v20 = vmul.f32 1.442695, %v3346_v9  ;;  %v3424_v57 = vmul.f32 1.442695, %v3347_v48  ;;  %v2685_v32 = vrot.slane %v7043_v56, %v8742_v25 }
 0x21b   : > { %v3760_v39 = vsel %vm718_vm0, %v3737_v7, 0.0  ;;  %v3834_v63 = vrot.slane %v3833_v19, 4  ;;  %v3113_v8 = vmax.f32 %v3111_v44, %v3112_v37  ;;  %vm2873_vm4 = vcmp.gt.f32.partialorder %v2809_v16, 0.0 }
 0x21c   : > { %v7059_v40 = vadd.f32 %v3760_v39, %v3759_v3  ;;  %4918 = vpow2.f32 %v3422_v20  ;;  %v2937_v61 = vmul.f32 0.2, %v2809_v16  ;;  %v2392_v24 = vadd.f32 %v2328_v52, %v6278_v33 }
 0x21d   : > { %v2387_v23 = vadd.f32 %v2323_v54, %v6240_v30  ;;  %v3645_v43 = vadd.f32 %v3644_v42, %v3643_v26  ;;  %v3835_v38 = vadd.f32 %v3834_v63, %v3833_v19  ;;  %4920 = vpow2.f32 %v3424_v57  ;;  %v2136_v30 = vpop.permute.xlu0 %2135  ;;  %v2156_v26 = vpop.permute.xlu1 %2155 }
 0x21e   : > { %v3114_v31 = vrot.slane %v3113_v8, 2  ;;  %v7064_v55 = vsel %vm2874_vm3, %v2810_v62, %v2938_v5  ;;  %v7066_v18 = vsel %vm2873_vm4, %v2809_v16, %v2937_v61  ;;  %v2816_v6 = vsub.f32 %v2685_v32, %v2392_v24 }
 0x21f   : > { %v2811_v7 = vsub.f32 %v2673_v0, %v2387_v23  ;;  %v3836_v13 = vrot.slane %v3835_v38, 2  ;;  %v3128_v9 = vsel %vm718_vm0, %v7066_v18, -inf  ;;  %v2530_v33 = vcombine.high %v6966_v2, %v6966_v2 }
 0x220   : > { %v3115_v44 = vmax.f32 %v3113_v8, %v3114_v31  ;;  %4922 = vrcp.f32 %v4022_v28  ;;  %v3570_v42 = vrot.slane %v6998_v58, 4  ;;  %v3129_v52 = vmax.f32 %v3127_v53, %v3128_v9 }
 0x221   : > { %vm2875_vm5 = vcmp.gt.f32.partialorder %v2811_v7, 0.0  ;;  %4924 = vrcp.f32 %v4214_v1  ;;  %v3646_v62 = vrot.slane %v3645_v43, 1  ;;  %v2939_v54 = vmul.f32 0.2, %v2811_v7 }
 0x222   : > { %v3116_v16 = vrot.slane %v3115_v44, 1  ;;  %v3136_v0 = vsel %vm718_vm0, %v7064_v55, -inf  ;;  %v3130_v48 = vrot.slane %v3129_v52, 4  ;;  %v2324_v3 = vmul.f32 %v2136_v30, %v6624_v15 }
 0x223   : > { %v2329_v19 = vmul.f32 %v2156_v26, %v6624_v15  ;;  %v3837_v2 = vadd.f32 %v3836_v13, %v3835_v38  ;;  %v7077_v5 = vsel %vm2875_vm5, %v2811_v7, %v2939_v54  ;;  %v7080_v28 = vrot.slane %v2530_v33, %v8742_v25 }
 0x224   : > { %v3117_v37 = vmax.f32 %v3115_v44, %v3116_v16  ;;  %v3131_v53 = vmax.f32 %v3129_v52, %v3130_v48  ;;  %v3137_v1 = vsel %vm718_vm0, %v7077_v5, -inf  ;;  %v2388_v39 = vadd.f32 %v2324_v3, %v6250_v50 }
 0x225   : > { %v2393_v20 = vadd.f32 %v2329_v19, %v6282_v27  ;;  %vm2880_vm6 = vcmp.gt.f32.partialorder %v2816_v6, 0.0  ;;  %v3138_v8 = vmax.f32 %v3136_v0, %v3137_v1  ;;  %v2944_v23 = vmul.f32 0.2, %v2816_v6 }
 0x226   : > { %v3348_v57 = vsub.f32 %v7017_v51, %v3117_v37  ;;  %v3349_v63 = vsub.f32 %v7032_v4, %v3117_v37  ;;  %v4919_v61 = vpop.eup %4918  ;;  %v3132_v24 = vrot.slane %v3131_v53, 2  ;;  %v7089_v38 = vsub.f32 %v7080_v28, %v2388_v39 }
 0x227   : > { %v2817_v31 = vsub.f32 %v2685_v32, %v2393_v20  ;;  %v4921_v7 = vpop.eup %4920  ;;  %v3838_v13 = vrot.slane %v3837_v2, 1  ;;  %v8768_v44 = vunpack.c.l.bf16 %v6529_v45  ;;  %v4023_v27 = vsel %vm718_vm0, %v4919_v61, 0.0 }
 0x228   : > { %v3426_v9 = vmul.f32 1.442695, %v3348_v57  ;;  %v8769_v51 = vunpack.c.h.bf16 %v6529_v45  ;;  %v4024_v33 = vsel %vm718_vm0, %v4921_v7, 0.0  ;;  %v3428_v30 = vmul.f32 1.442695, %v3349_v63 }
 0x229   : > { %v3928_v50 = vmul.f32 %v4919_v61, %v8768_v44  ;;  %v3133_v26 = vmax.f32 %v3131_v53, %v3132_v24  ;;  %v4025_v16 = vadd.f32 %v4024_v33, %v4023_v27  ;;  %v3139_v32 = vrot.slane %v3138_v8, 4 }
 0x22a   : > { %v3929_v4 = vmul.f32 %v4921_v7, %v8769_v51  ;;  %4926 = vpow2.f32 %v3426_v9  ;;  %v7098_v54 = vpop.eup %4922  ;;  %v3647_v0 = vadd.f32 %v3646_v62, %v3645_v43  ;;  %v3762_v45 = vrot.slane %v7059_v40, 4 }
 0x22b   : > { %v3951_v52 = vsel %vm718_vm0, %v3928_v50, 0.0  ;;  %8770 = vst [vmem:[#allocation94_spill] sm:$0xff] %v7098_v54  ;;  %4928 = vpow2.f32 %v3428_v30  ;;  %v3134_v3 = vrot.slane %v3133_v26, 1  ;;  %v7101_v19 = vpop.eup %4924  ;;  %v4026_v1 = vrot.slane %v4025_v16, 4  ;;  %v2140_v50 = vpop.permute.xlu1 %2139 }
 0x22c   : > { %v3952_v48 = vsel %vm718_vm0, %v3929_v4, 0.0  ;;  %8771 = vst [vmem:[#allocation25_spill] sm:$0xff] %v7101_v19  ;;  %v3140_v53 = vmax.f32 %v3138_v8, %v3139_v32  ;;  %v7107_v20 = vsel %vm2880_vm6, %v2816_v6, %v2944_v23  ;;  %vm2881_vm7 = vcmp.gt.f32.partialorder %v2817_v31, 0.0  ;;  %v2160_v8 = vpop.permute.xlu0 %2159  ;;  %v8773_v32 = vld [vmem:[#allocation134_spill] sm:$0xff] }
 0x22d   : > { %v7104_v37 = vadd.f32 %v3952_v48, %v3951_v52  ;;  %v3135_v39 = vmax.f32 %v3133_v26, %v3134_v3  ;;  %v2945_v57 = vmul.f32 0.2, %v2817_v31  ;;  %v7110_v43 = vadd.f32 %v3570_v42, %v6998_v58 }
 0x22e   : > { %v3839_v62 = vadd.f32 %v3838_v13, %v3837_v2  ;;  %v4027_v63 = vadd.f32 %v4026_v1, %v4025_v16  ;;  %v3141_v61 = vrot.slane %v3140_v53, 2  ;;  %4930 = vrcp.f32 %v3647_v0 }
 0x22f   : > { %8772 = vst [vmem:[#allocation88_spill] sm:$0xff] %v7110_v43  ;;  %v3352_v24 = vsub.f32 %v7022_v49, %v3135_v39  ;;  %v3353_v7 = vsub.f32 %v7066_v18, %v3135_v39  ;;  %v7114_v44 = vsel %vm2881_vm7, %v2817_v31, %v2945_v57  ;;  %v7117_v6 = vadd.f32 %v3762_v45, %v7059_v40 }
 0x230   : > { %v3163_v23 = vsel %vm718_vm0, %v7107_v20, -inf  ;;  %v3142_v58 = vmax.f32 %v3140_v53, %v3141_v61  ;;  %v3164_v42 = vsel %vm718_vm0, %v7114_v44, -inf  ;;  %v4028_v2 = vrot.slane %v4027_v63, 2  ;;  %v2184_v1 = vpop.permute.xlu0 %2183  ;;  %v8776_v61 = vld [vmem:[#allocation80_spill] sm:$0xff] }
 0x231   : > { %v3434_v13 = vmul.f32 1.442695, %v3352_v24  ;;  %v3436_v27 = vmul.f32 1.442695, %v3353_v7  ;;  %v3165_v49 = vmax.f32 %v3163_v23, %v3164_v42  ;;  %4932 = vrcp.f32 %v3839_v62  ;;  %v8778_v42 = vld [vmem:[#allocation46_spill] sm:$0xff] }
 0x232   : > { %v3143_v18 = vrot.slane %v3142_v58, 1  ;;  %v2529_v31 = vcombine.high %v6758_v34, %v6758_v34  ;;  %v2325_v9 = vmul.f32 %v2140_v50, %v6624_v15  ;;  %vm2876_vm8 = vcmp.gt.f32.partialorder %v7089_v38, 0.0 }
 0x233   : > { %4934 = vpow2.f32 %v3434_v13  ;;  %v2940_v40 = vmul.f32 0.2, %v7089_v38  ;;  %v3166_v51 = vrot.slane %v3165_v49, 4  ;;  %v2330_v30 = vmul.f32 %v2160_v8, %v6624_v15 }
 0x234   : > { %v4927_v4 = vpop.eup %4926  ;;  %4936 = vpow2.f32 %v3436_v27  ;;  %v3144_v33 = vmax.f32 %v3142_v58, %v3143_v18  ;;  %v2389_v26 = vadd.f32 %v2325_v9, %v6254_v60  ;;  %v4029_v16 = vadd.f32 %v4028_v2, %v4027_v63 }
 0x235   : > { %v4929_v52 = vpop.eup %4928  ;;  %v8774_v0 = vunpack.c.l.bf16 %v8773_v32  ;;  %v4215_v3 = vsel %vm718_vm0, %v4927_v4, 0.0  ;;  %v3167_v45 = vmax.f32 %v3165_v49, %v3166_v51  ;;  %v8775_v53 = vunpack.c.h.bf16 %v8773_v32 }
 0x236   : > { %v4216_v57 = vsel %vm718_vm0, %v4929_v52, 0.0  ;;  %v3354_v62 = vsub.f32 %v7064_v55, %v3144_v33  ;;  %v8777_v60 = vcombine.high %v8776_v61, %v8776_v61  ;;  %v3355_v8 = vsub.f32 %v7077_v5, %v3144_v33 }
 0x237   : > { %v4120_v48 = vmul.f32 %v4927_v4, %v8774_v0  ;;  %v4121_v39 = vmul.f32 %v4929_v52, %v8775_v53  ;;  %v4217_v7 = vadd.f32 %v4216_v57, %v4215_v3  ;;  %v3168_v50 = vrot.slane %v3167_v45, 2  ;;  %v8781_v53 = vld [vmem:[#allocation18_spill] sm:$0xff] }
 0x238   : > { %v7141_v24 = vrot.slane %v8777_v60, %v6660_v35  ;;  %v3438_v58 = vmul.f32 1.442695, %v3354_v62  ;;  %v2394_v2 = vadd.f32 %v2330_v30, %v8778_v42  ;;  %v2336_v13 = vmul.f32 %v2184_v1, %v6624_v15  ;;  %v7148_v55 = vpop.eup %4930 }
 0x239   : > { %v4143_v63 = vsel %vm718_vm0, %v4120_v48, 0.0  ;;  %v4144_v23 = vsel %vm718_vm0, %v4121_v39, 0.0  ;;  %8779 = vst [vmem:[#allocation83_spill] sm:$0xff] %v7148_v55  ;;  %v4218_v49 = vrot.slane %v4217_v7, 4  ;;  %v3440_v18 = vmul.f32 1.442695, %v3355_v8 }
 0x23a   : > { %v7150_v27 = vadd.f32 %v4144_v23, %v4143_v63  ;;  %v3169_v9 = vmax.f32 %v3167_v45, %v3168_v50  ;;  %4938 = vpow2.f32 %v3438_v58  ;;  %v7155_v5 = vsel %vm2876_vm8, %v7089_v38, %v2940_v40  ;;  %v8780_v38 = vld [vmem:[#allocation49_spill] sm:$0xff] }
 0x23b   : > { %v7158_v51 = vrot.slane %v2529_v31, %v8742_v25  ;;  %v2813_v4 = vsub.f32 %v7080_v28, %v2389_v26  ;;  %v3954_v33 = vrot.slane %v7104_v37, 4  ;;  %v4219_v30 = vadd.f32 %v4218_v49, %v4217_v7  ;;  %v7162_v32 = vpop.eup %4932 }
 0x23c   : > { %4940 = vpow2.f32 %v3440_v18  ;;  %v3170_v52 = vrot.slane %v3169_v9, 1  ;;  %v7166_v48 = vrot.slane %v7141_v24, %v8742_v25  ;;  %v2400_v40 = vadd.f32 %v2336_v13, %v8780_v38 }
 0x23d   : > { %vm2877_vm9 = vcmp.gt.f32.partialorder %v2813_v4, 0.0  ;;  %v2941_v0 = vmul.f32 0.2, %v2813_v4  ;;  %v4935_v3 = vpop.eup %4934  ;;  %v4030_v31 = vrot.slane %v4029_v16, 1  ;;  %v3145_v28 = vsel %vm718_vm0, %v7155_v5, -inf }
 0x23e   : > { %v3171_v26 = vmax.f32 %v3169_v9, %v3170_v52  ;;  %v2818_v45 = vsub.f32 %v7158_v51, %v2394_v2  ;;  %v4937_v1 = vpop.eup %4936  ;;  %v8782_v39 = vunpack.c.l.bf16 %v8781_v53  ;;  %v3840_v62 = vsel %vm718_vm0, %v4935_v3, 0.0  ;;  %v2164_v52 = vpop.permute.xlu1 %2163 }
 0x23f   : > { %v7175_v61 = vsel %vm2877_vm9, %v2813_v4, %v2941_v0  ;;  %v7178_v60 = vsub.f32 %v7166_v48, %v2400_v40  ;;  %v4220_v63 = vrot.slane %v4219_v30, 2  ;;  %v8783_v7 = vunpack.c.h.bf16 %v8781_v53 }
 0x240   : > { %v3738_v57 = vmul.f32 %v4935_v3, %v8782_v39  ;;  %v3841_v50 = vsel %vm718_vm0, %v4937_v1, 0.0  ;;  %v3360_v23 = vsub.f32 %v7107_v20, %v3171_v26  ;;  %v3361_v2 = vsub.f32 %v7114_v44, %v3171_v26 }
 0x241   : > { %v3739_v8 = vmul.f32 %v4937_v1, %v8783_v7  ;;  %v3842_v42 = vadd.f32 %v3841_v50, %v3840_v62  ;;  %v3146_v13 = vsel %vm718_vm0, %v7175_v61, -inf  ;;  %v4031_v49 = vadd.f32 %v4030_v31, %v4029_v16  ;;  %v2168_v50 = vpop.permute.xlu0 %2167 }
 0x242   : > { %v3768_v58 = vsel %vm718_vm0, %v3738_v57, 0.0  ;;  %v3450_v9 = vmul.f32 1.442695, %v3360_v23  ;;  %v3147_v4 = vmax.f32 %v3145_v28, %v3146_v13  ;;  %v3452_v40 = vmul.f32 1.442695, %v3361_v2  ;;  %v8785_v28 = vld [vmem:[#allocation37_spill] sm:$0xff]  ;;  %v2188_v13 = vpop.permute.xlu1 %2187 }
 0x243   : > { %v3769_v18 = vsel %vm718_vm0, %v3739_v8, 0.0  ;;  %v3843_v38 = vrot.slane %v3842_v42, 4  ;;  %v2946_v3 = vmul.f32 0.2, %v2818_v45  ;;  %v4221_v20 = vadd.f32 %v4220_v63, %v4219_v30 }
 0x244   : > { %v7189_v0 = vadd.f32 %v3769_v18, %v3768_v58  ;;  %4942 = vpow2.f32 %v3450_v9  ;;  %vm2882_vm10 = vcmp.gt.f32.partialorder %v2818_v45, 0.0  ;;  %v3148_v1 = vrot.slane %v3147_v4, 4  ;;  %v4939_v53 = vpop.eup %4938  ;;  %v8788_v9 = vld [vmem:[#allocation45_spill] sm:$0xff] }
 0x245   : > { %v7192_v44 = vadd.f32 %v3954_v33, %v7104_v37  ;;  %v3844_v26 = vadd.f32 %v3843_v38, %v3842_v42  ;;  %4944 = vpow2.f32 %v3452_v40  ;;  %v2331_v16 = vmul.f32 %v2164_v52, %v6624_v15 }
 0x246   : > { %v4941_v31 = vpop.eup %4940  ;;  %4946 = vrcp.f32 %v4031_v49  ;;  %v8786_v39 = vunpack.c.l.bf16 %v8785_v28  ;;  %v4032_v62 = vsel %vm718_vm0, %v4939_v53, 0.0  ;;  %v3149_v7 = vmax.f32 %v3147_v4, %v3148_v1 }
 0x247   : > { %8784 = vst [vmem:[#allocation91_spill] sm:$0xff] %v7192_v44  ;;  %v4146_v30 = vrot.slane %v7150_v27, 4  ;;  %v8787_v63 = vunpack.c.h.bf16 %v8785_v28  ;;  %v4033_v37 = vsel %vm718_vm0, %v4941_v31, 0.0  ;;  %v7202_v33 = vsel %vm2882_vm10, %v2818_v45, %v2946_v3 }
 0x248   : > { %v3930_v57 = vmul.f32 %v4939_v53, %v8786_v39  ;;  %v4222_v23 = vrot.slane %v4221_v20, 1  ;;  %v4034_v42 = vadd.f32 %v4033_v37, %v4032_v62  ;;  %v3150_v2 = vrot.slane %v3149_v7, 2 }
 0x249   : > { %v3931_v8 = vmul.f32 %v4941_v31, %v8787_v63  ;;  %v3845_v49 = vrot.slane %v3844_v26, 2  ;;  %v2395_v4 = vadd.f32 %v2331_v16, %v8788_v9  ;;  %v2531_v52 = vcombine.high %v7043_v56, %v7043_v56 }
 0x24a   : > { %v3960_v58 = vsel %vm718_vm0, %v3930_v57, 0.0  ;;  %v4035_v40 = vrot.slane %v4034_v42, 4  ;;  %v3151_v45 = vmax.f32 %v3149_v7, %v3150_v2  ;;  %v2332_v3 = vmul.f32 %v2168_v50, %v6624_v15  ;;  %v8791_v57 = vld [vmem:[#allocation48_spill] sm:$0xff] }
 0x24b   : > { %v3961_v18 = vsel %vm718_vm0, %v3931_v8, 0.0  ;;  %v7213_v1 = vadd.f32 %v4146_v30, %v7150_v27  ;;  %v3172_v53 = vsel %vm718_vm0, %v7202_v33, -inf  ;;  %v2819_v31 = vsub.f32 %v7158_v51, %v2395_v4  ;;  %v2192_v4 = vpop.permute.xlu0 %2191 }
 0x24c   : > { %v7209_v38 = vadd.f32 %v3961_v18, %v3960_v58  ;;  %v2337_v28 = vmul.f32 %v2188_v13, %v6624_v15  ;;  %v3152_v16 = vrot.slane %v3151_v45, 1  ;;  %v2952_v39 = vmul.f32 0.2, %v7178_v60  ;;  %v8792_v58 = vld [vmem:[#allocation15_spill] sm:$0xff] }
 0x24d   : > { %8790 = vst [vmem:[#allocation29_spill] sm:$0xff] %v7213_v1  ;;  %v7221_v56 = vrot.slane %v2531_v52, %v8742_v25  ;;  %v2396_v62 = vadd.f32 %v2332_v3, %v8791_v57  ;;  %v3846_v7 = vadd.f32 %v3845_v49, %v3844_v26  ;;  %vm2888_vm11 = vcmp.gt.f32.partialorder %v7178_v60, 0.0  ;;  %v8794_v26 = vld [vmem:[#allocation87_spill] sm:$0xff]  ;;  %v2172_v3 = vpop.permute.xlu1 %2171 }
 0x24e   : > { %8789 = vst [vmem:[#allocation93_spill] sm:$0xff] %v7209_v38  ;;  %vm2883_vm12 = vcmp.gt.f32.partialorder %v2819_v31, 0.0  ;;  %v2947_v27 = vmul.f32 0.2, %v2819_v31  ;;  %v4943_v30 = vpop.eup %4942  ;;  %v4223_v63 = vadd.f32 %v4222_v23, %v4221_v20  ;;  %v4036_v8 = vadd.f32 %v4035_v40, %v4034_v42 }
 0x24f   : > { %v3153_v37 = vmax.f32 %v3151_v45, %v3152_v16  ;;  %v2820_v51 = vsub.f32 %v7221_v56, %v2396_v62  ;;  %v4945_v50 = vpop.eup %4944  ;;  %v8793_v2 = vunpack.c.l.bf16 %v8792_v58  ;;  %v3849_v18 = vsel %vm718_vm0, %v4943_v30, 0.0 }
 0x250   : > { %v7231_v9 = vsel %vm2883_vm12, %v2819_v31, %v2947_v27  ;;  %v2401_v49 = vadd.f32 %v2337_v28, %v8794_v26  ;;  %v7234_v52 = vpop.eup %4946  ;;  %v8796_v20 = vunpack.c.h.bf16 %v8792_v58  ;;  %v3850_v42 = vsel %vm718_vm0, %v4945_v50, 0.0  ;;  %v8797_v58 = vld [vmem:[#allocation84_spill] sm:$0xff] }
 0x251   : > { %v7228_v13 = vmul.f32 %v4943_v30, %v8793_v2  ;;  %8795 = vst [vmem:[#allocation90_spill] sm:$0xff] %v7234_v52  ;;  %v3356_v40 = vsub.f32 %v7155_v5, %v3153_v37  ;;  %v7245_v45 = vsel %vm2888_vm11, %v7178_v60, %v2952_v39  ;;  %v3847_v31 = vrot.slane %v3846_v7, 1  ;;  %v2196_v5 = vpop.permute.xlu1 %2195 }
 0x252   : > { %v7238_v23 = vmul.f32 %v4945_v50, %v8796_v20  ;;  %v3851_v16 = vadd.f32 %v3850_v42, %v3849_v18  ;;  %v3357_v28 = vsub.f32 %v7175_v61, %v3153_v37  ;;  %v3173_v57 = vsel %vm718_vm0, %v7231_v9, -inf }
 0x253   : > { %v4037_v62 = vrot.slane %v4036_v8, 2  ;;  %v3442_v27 = vmul.f32 1.442695, %v3356_v40  ;;  %v3174_v30 = vmax.f32 %v3172_v53, %v3173_v57  ;;  %v2577_v50 = vcombine.high %v8797_v58, %v8797_v58  ;;  %v2216_v53 = vpop.permute.xlu0 %2215 }
 0x254   : > { %v3852_v2 = vrot.slane %v3851_v16, 4  ;;  %v3444_v26 = vmul.f32 1.442695, %v3357_v28  ;;  %v2825_v60 = vsub.f32 %v7166_v48, %v2401_v49  ;;  %v3199_v39 = vsel %vm718_vm0, %v7245_v45, -inf }
 0x255   : > { %4948 = vpow2.f32 %v3442_v27  ;;  %v3175_v61 = vrot.slane %v3174_v30, 4  ;;  %v2948_v37 = vmul.f32 0.2, %v2820_v51  ;;  %v3848_v18 = vadd.f32 %v3847_v31, %v3846_v7  ;;  %v8798_v27 = vld [vmem:[#allocation79_spill] sm:$0xff] }
 0x256   : > { %4950 = vpow2.f32 %v3444_v26  ;;  %vm2884_vm13 = vcmp.gt.f32.partialorder %v2820_v51, 0.0  ;;  %vm2889_vm14 = vcmp.gt.f32.partialorder %v2825_v60, 0.0  ;;  %v4038_v20 = vadd.f32 %v4037_v62, %v4036_v8 }
 0x257   : > { %v3176_v42 = vmax.f32 %v3174_v30, %v3175_v61  ;;  %v2953_v40 = vmul.f32 0.2, %v2825_v60  ;;  %v2705_v57 = vrot.slane %v2577_v50, %v8742_v25  ;;  %v7257_v28 = vadd.f32 %v3852_v2, %v3851_v16  ;;  %v8800_v30 = vld [vmem:[#allocation24_spill] sm:$0xff]  ;;  %v8801_v50 = vld [vmem:[#allocation47_spill] sm:$0xff] }
 0x258   : > { %v2338_v48 = vmul.f32 %v2192_v4, %v6624_v15  ;;  %v2333_v49 = vmul.f32 %v2172_v3, %v6624_v15  ;;  %v8799_v7 = vcombine.high %v8798_v27, %v8798_v27  ;;  %v7267_v21 = vsel %vm2884_vm13, %v2820_v51, %v2948_v37  ;;  %v8802_v51 = vld [vmem:[#allocation55_spill] sm:$0xff] }
 0x259   : > { %v3177_v26 = vrot.slane %v3176_v42, 2  ;;  %v7269_v8 = vsel %vm2889_vm14, %v2825_v60, %v2953_v40  ;;  %v2344_v62 = vmul.f32 %v2216_v53, %v6624_v15  ;;  %v2339_v2 = vmul.f32 %v2196_v5, %v6624_v15 }
 0x25a   : > { %v7265_v31 = vrot.slane %v8799_v7, %v6660_v35  ;;  %v3200_v16 = vsel %vm718_vm0, %v7269_v8, -inf  ;;  %v2402_v4 = vadd.f32 %v2338_v48, %v8800_v30  ;;  %v2397_v3 = vadd.f32 %v2333_v49, %v8801_v50 }
 0x25b   : > { %v3178_v61 = vmax.f32 %v3176_v42, %v3177_v26  ;;  %v3201_v27 = vmax.f32 %v3199_v39, %v3200_v16  ;;  %v2408_v60 = vadd.f32 %v2344_v62, %v8802_v51  ;;  %4952 = vrcp.f32 %v4223_v63 }
 0x25c   : > { %v7279_v7 = vrot.slane %v7265_v31, %v8742_v25  ;;  %v2826_v53 = vsub.f32 %v2705_v57, %v2402_v4  ;;  %v2821_v40 = vsub.f32 %v7221_v56, %v2397_v3  ;;  %4954 = vrcp.f32 %v3848_v18  ;;  %v8803_v4 = vld [vmem:[#allocation52_spill] sm:$0xff]  ;;  %v8804_v18 = vld [vmem:[#allocation71_spill] sm:$0xff] }
 0x25d   : > { %v3179_v48 = vrot.slane %v3178_v61, 1  ;;  %v3202_v30 = vrot.slane %v3201_v27, 4  ;;  %v4039_v5 = vrot.slane %v4038_v20, 1  ;;  %v3181_v39 = vsel %vm718_vm0, %v7267_v21, -inf }
 0x25e   : > { %v7285_v49 = vsub.f32 %v7279_v7, %v2408_v60  ;;  %vm2885_vm15 = vcmp.gt.f32.partialorder %v2821_v40, 0.0  ;;  %v2949_v42 = vmul.f32 0.2, %v2821_v40  ;;  %v3854_v63 = vrot.slane %v7257_v28, 2 }
 0x25f   : > { %v4949_v26 = vpop.eup %4948  ;;  %v3180_v62 = vmax.f32 %v3178_v61, %v3179_v48  ;;  %v3203_v16 = vmax.f32 %v3201_v27, %v3202_v30  ;;  %v2403_v50 = vadd.f32 %v2339_v2, %v8803_v4  ;;  %v8805_v3 = vunpack.c.l.bf16 %v8804_v18 }
 0x260   : > { %v4951_v56 = vpop.eup %4950  ;;  %v4224_v60 = vsel %vm718_vm0, %v4949_v26, 0.0  ;;  %vm2890_vm1 = vcmp.gt.f32.partialorder %v2826_v53, 0.0  ;;  %v7294_v37 = vsel %vm2885_vm15, %v2821_v40, %v2949_v42  ;;  %v8806_v14 = vunpack.c.h.bf16 %v8804_v18 }
 0x261   : > { %v4122_v51 = vmul.f32 %v4949_v26, %v8805_v3  ;;  %v4225_v29 = vsel %vm718_vm0, %v4951_v56, 0.0  ;;  %v3362_v43 = vsub.f32 %v7202_v33, %v3180_v62  ;;  %v3363_v61 = vsub.f32 %v7231_v9, %v3180_v62  ;;  %v2200_v62 = vpop.permute.xlu0 %2199 }
 0x262   : > { %v4123_v55 = vmul.f32 %v4951_v56, %v8806_v14  ;;  %v4226_v27 = vadd.f32 %v4225_v29, %v4224_v60  ;;  %v3204_v48 = vrot.slane %v3203_v16, 2  ;;  %v2954_v30 = vmul.f32 0.2, %v2826_v53 }
 0x263   : > { %v4152_v2 = vsel %vm718_vm0, %v4122_v51, 0.0  ;;  %v3454_v26 = vmul.f32 1.442695, %v3362_v43  ;;  %v3456_v3 = vmul.f32 1.442695, %v3363_v61  ;;  %v3182_v40 = vsel %vm718_vm0, %v7294_v37, -inf  ;;  %v2220_v51 = vpop.permute.xlu1 %2219 }
 0x264   : > { %v4153_v4 = vsel %vm718_vm0, %v4123_v55, 0.0  ;;  %v4227_v14 = vrot.slane %v4226_v27, 4  ;;  %v3205_v56 = vmax.f32 %v3203_v16, %v3204_v48  ;;  %v3183_v18 = vmax.f32 %v3181_v39, %v3182_v40 }
 0x265   : > { %v7305_v42 = vadd.f32 %v4153_v4, %v4152_v2  ;;  %v4040_v33 = vadd.f32 %v4039_v5, %v4038_v20  ;;  %4956 = vpow2.f32 %v3454_v26  ;;  %v2827_v9 = vsub.f32 %v2705_v57, %v2403_v50  ;;  %v7309_v60 = vpop.eup %4952 }
 0x266   : > { %v2579_v29 = vcombine.high %v7141_v24, %v7141_v24  ;;  %8808 = vst [vmem:[#allocation100_spill] sm:$0xff] %v7309_v60  ;;  %v4228_v43 = vadd.f32 %v4227_v14, %v4226_v27  ;;  %4958 = vpow2.f32 %v3456_v3  ;;  %v3206_v55 = vrot.slane %v3205_v56, 1  ;;  %v7314_v2 = vpop.eup %4954  ;;  %v8809_v14 = vld [vmem:[#allocation51_spill] sm:$0xff] }
 0x267   : > { %8807 = vst [vmem:[#allocation89_spill] sm:$0xff] %v7305_v42  ;;  %v7312_v61 = vsel %vm2890_vm1, %v2826_v53, %v2954_v30  ;;  %v7317_v39 = vadd.f32 %v3854_v63, %v7257_v28  ;;  %v3184_v20 = vrot.slane %v3183_v18, 4  ;;  %vm2891_vm2 = vcmp.gt.f32.partialorder %v2827_v9, 0.0 }
 0x268   : > { %v2955_v57 = vmul.f32 0.2, %v2827_v9  ;;  %v3207_v5 = vmax.f32 %v3205_v56, %v3206_v55  ;;  %v2960_v24 = vmul.f32 0.2, %v7285_v49  ;;  %v2340_v16 = vmul.f32 %v2200_v62, %v6624_v15  ;;  %v8810_v62 = vld [vmem:[#allocation58_spill] sm:$0xff] }
 0x269   : > { %v2345_v50 = vmul.f32 %v2220_v51, %v6624_v15  ;;  %v3208_v27 = vsel %vm718_vm0, %v7312_v61, -inf  ;;  %v3185_v53 = vmax.f32 %v3183_v18, %v3184_v20  ;;  %v7327_v30 = vrot.slane %v2579_v29, %v8742_v25  ;;  %v2224_v20 = vpop.permute.xlu0 %2223 }
 0x26a   : > { %v7324_v48 = vsel %vm2891_vm2, %v2827_v9, %v2955_v57  ;;  %v4229_v28 = vrot.slane %v4228_v43, 2  ;;  %v3368_v63 = vsub.f32 %v7245_v45, %v3207_v5  ;;  %v3369_v4 = vsub.f32 %v7269_v8, %v3207_v5 }
 0x26b   : > { %v3209_v26 = vsel %vm718_vm0, %v7324_v48, -inf  ;;  %v3186_v3 = vrot.slane %v3185_v53, 2  ;;  %v2404_v56 = vadd.f32 %v2340_v16, %v8809_v14  ;;  %v2409_v51 = vadd.f32 %v2345_v50, %v8810_v62 }
 0x26c   : > { %v3210_v40 = vmax.f32 %v3208_v27, %v3209_v26  ;;  %4960 = vrcp.f32 %v4040_v33  ;;  %v3466_v18 = vmul.f32 1.442695, %v3368_v63  ;;  %v3468_v9 = vmul.f32 1.442695, %v3369_v4  ;;  %v8811_v4 = vld [vmem:[#allocation76_spill] sm:$0xff] }
 0x26d   : > { %vm2896_vm3 = vcmp.gt.f32.partialorder %v7285_v49, 0.0  ;;  %v3187_v29 = vmax.f32 %v3185_v53, %v3186_v3  ;;  %v2828_v45 = vsub.f32 %v7327_v30, %v2404_v56  ;;  %v2833_v8 = vsub.f32 %v7279_v7, %v2409_v51 }
 0x26e   : > { %v3211_v55 = vrot.slane %v3210_v40, 4  ;;  %v7340_v57 = vsel %vm718_vm0, %v7238_v23, 0.0  ;;  %v4230_v16 = vadd.f32 %v4229_v28, %v4228_v43  ;;  %4962 = vpow2.f32 %v3466_v18  ;;  %v8814_v23 = vld [vmem:[#allocation86_spill] sm:$0xff]  ;;  %v2204_v28 = vpop.permute.xlu1 %2203 }
 0x26f   : > { %v4957_v33 = vpop.eup %4956  ;;  %4964 = vpow2.f32 %v3468_v9  ;;  %v3188_v50 = vrot.slane %v3187_v29, 1  ;;  %v7344_v27 = vsel %vm2896_vm3, %v7285_v49, %v2960_v24  ;;  %v8812_v26 = vunpack.c.l.bf16 %v8811_v4 }
 0x270   : > { %v3212_v53 = vmax.f32 %v3210_v40, %v3211_v55  ;;  %v4959_v63 = vpop.eup %4958  ;;  %v4041_v3 = vsel %vm718_vm0, %v4957_v33, 0.0  ;;  %v2578_v14 = vcombine.high %v8814_v23, %v8814_v23  ;;  %v2346_v43 = vmul.f32 %v2224_v20, %v6624_v15 }
 0x271   : > { %v7348_v7 = vmul.f32 %v4957_v33, %v8812_v26  ;;  %v8815_v56 = vunpack.c.h.bf16 %v8811_v4  ;;  %v4042_v49 = vsel %vm718_vm0, %v4959_v63, 0.0  ;;  %v3189_v24 = vmax.f32 %v3187_v29, %v3188_v50 }
 0x272   : > { %v3213_v40 = vrot.slane %v3212_v53, 2  ;;  %v4231_v51 = vrot.slane %v4230_v16, 1  ;;  %v4043_v18 = vadd.f32 %v4042_v49, %v4041_v3  ;;  %vm2897_vm4 = vcmp.gt.f32.partialorder %v2833_v8, 0.0 }
 0x273   : > { %8813 = vst [vmem:[#allocation102_spill] sm:$0xff] %v7348_v7  ;;  %v7356_v62 = vmul.f32 %v4959_v63, %v8815_v56  ;;  %v2961_v9 = vmul.f32 0.2, %v2833_v8  ;;  %v3364_v55 = vsub.f32 %v7267_v21, %v3189_v24  ;;  %v3365_v33 = vsub.f32 %v7294_v37, %v3189_v24 }
 0x274   : > { %v3214_v26 = vmax.f32 %v3212_v53, %v3213_v40  ;;  %v2341_v20 = vmul.f32 %v2204_v28, %v6624_v15  ;;  %v3235_v4 = vsel %vm718_vm0, %v7344_v27, -inf  ;;  %vm2892_vm5 = vcmp.gt.f32.partialorder %v2828_v45, 0.0  ;;  %v8817_v28 = vld [vmem:[#allocation57_spill] sm:$0xff]  ;;  %v2248_v40 = vpop.permute.xlu0 %2247 }
 0x275   : > { %v2956_v56 = vmul.f32 0.2, %v2828_v45  ;;  %v7364_v5 = vsel %vm2897_vm4, %v2833_v8, %v2961_v9  ;;  %v3458_v29 = vmul.f32 1.442695, %v3364_v55  ;;  %v3460_v50 = vmul.f32 1.442695, %v3365_v33 }
 0x276   : > { %v3215_v63 = vrot.slane %v3214_v26, 1  ;;  %v3236_v3 = vsel %vm718_vm0, %v7364_v5, -inf  ;;  %v7368_v49 = vpop.eup %4960  ;;  %v7372_v53 = vrot.slane %v2578_v14, %v8742_v25  ;;  %v2410_v24 = vadd.f32 %v2346_v43, %v8817_v28  ;;  %v8818_v9 = vld [vmem:[#allocation54_spill] sm:$0xff] }
 0x277   : > { %8816 = vst [vmem:[#allocation35_spill] sm:$0xff] %v7368_v49  ;;  %v3237_v37 = vmax.f32 %v3235_v4, %v3236_v3  ;;  %v4232_v12 = vadd.f32 %v4231_v51, %v4230_v16  ;;  %4966 = vpow2.f32 %v3458_v29  ;;  %v2405_v55 = vadd.f32 %v2341_v20, %v8818_v9  ;;  %v8820_v20 = vld [vmem:[#allocation77_spill] sm:$0xff] }
 0x278   : > { %v3216_v8 = vmax.f32 %v3214_v26, %v3215_v63  ;;  %v7376_v33 = vpop.eup %4962  ;;  %v4044_v60 = vrot.slane %v4043_v18, 4  ;;  %4968 = vpow2.f32 %v3460_v50  ;;  %v7379_v19 = vsel %vm2892_vm5, %v2828_v45, %v2956_v56 }
 0x279   : > { %v3238_v21 = vrot.slane %v3237_v37, 4  ;;  %v4965_v4 = vpop.eup %4964  ;;  %v3858_v14 = vsel %vm718_vm0, %v7376_v33, 0.0  ;;  %v8819_v51 = vcombine.high %v6865_v11, %v6865_v11  ;;  %v8821_v29 = vunpack.c.h.bf16 %v8820_v20 }
 0x27a   : > { %v3370_v43 = vsub.f32 %v7312_v61, %v3216_v8  ;;  %v3371_v16 = vsub.f32 %v7324_v48, %v3216_v8  ;;  %v3859_v45 = vsel %vm718_vm0, %v4965_v4, 0.0  ;;  %v2834_v63 = vsub.f32 %v7372_v53, %v2410_v24  ;;  %v2228_v8 = vpop.permute.xlu1 %2227  ;;  %v8822_v24 = vld [vmem:[#allocation123_spill] sm:$0xff] }
 0x27b   : > { %v7389_v26 = vrot.slane %v8819_v51, %v6660_v35  ;;  %v7393_v50 = vmul.f32 %v4965_v4, %v8821_v29  ;;  %v3239_v56 = vmax.f32 %v3237_v37, %v3238_v21  ;;  %v3860_v3 = vadd.f32 %v3859_v45, %v3858_v14  ;;  %v2232_v29 = vpop.permute.xlu0 %2231 }
 0x27c   : > { %v3470_v28 = vmul.f32 1.442695, %v3370_v43  ;;  %v3472_v61 = vmul.f32 1.442695, %v3371_v16  ;;  %v2829_v48 = vsub.f32 %v7327_v30, %v2405_v55  ;;  %v4045_v9 = vadd.f32 %v4044_v60, %v4043_v18 }
 0x27d   : > { %v3217_v11 = vsel %vm718_vm0, %v7379_v19, -inf  ;;  %v3240_v51 = vrot.slane %v3239_v56, 2  ;;  %v2352_v1 = vmul.f32 %v2248_v40, %v6624_v15  ;;  %v7403_v21 = vrot.slane %v7389_v26, %v8742_v25 }
 0x27e   : > { %4970 = vpow2.f32 %v3470_v28  ;;  %vm2893_vm6 = vcmp.gt.f32.partialorder %v2829_v48, 0.0  ;;  %v2957_v4 = vmul.f32 0.2, %v2829_v48  ;;  %v2347_v60 = vmul.f32 %v2228_v8, %v6624_v15 }
 0x27f   : > { %4972 = vpow2.f32 %v3472_v61  ;;  %v3241_v37 = vmax.f32 %v3239_v56, %v3240_v51  ;;  %v2416_v30 = vadd.f32 %v2352_v1, %v8822_v24  ;;  %vm2898_vm7 = vcmp.gt.f32.partialorder %v2834_v63, 0.0  ;;  %v8823_v61 = vld [vmem:[#allocation60_spill] sm:$0xff]  ;;  %v8824_v51 = vld [vmem:[#allocation59_spill] sm:$0xff] }
 0x280   : > { %v7407_v18 = vsel %vm2893_vm6, %v2829_v48, %v2957_v4  ;;  %v2580_v40 = vcombine.high %v7265_v31, %v7265_v31  ;;  %v2348_v55 = vmul.f32 %v2232_v29, %v6624_v15  ;;  %v3861_v14 = vrot.slane %v3860_v3, 4 }
 0x281   : > { %v3242_v43 = vrot.slane %v3241_v37, 1  ;;  %v3218_v16 = vsel %vm718_vm0, %v7407_v18, -inf  ;;  %v2840_v45 = vsub.f32 %v7403_v21, %v2416_v30  ;;  %v4967_v56 = vpop.eup %4966  ;;  %v2962_v28 = vmul.f32 0.2, %v2834_v63 }
 0x282   : > { %v3219_v1 = vmax.f32 %v3217_v11, %v3218_v16  ;;  %v2411_v8 = vadd.f32 %v2347_v60, %v8823_v61  ;;  %v2412_v48 = vadd.f32 %v2348_v55, %v8824_v51  ;;  %v4969_v4 = vpop.eup %4968  ;;  %v4046_v24 = vrot.slane %v4045_v9, 2 }
 0x283   : > { %v8826_v31 = vunpack.c.l.bf16 %v8825_v17  ;;  %v4233_v29 = vsel %vm718_vm0, %v4967_v56, 0.0  ;;  %v3243_v49 = vmax.f32 %v3241_v37, %v3242_v43  ;;  %v8828_v52 = vunpack.c.h.bf16 %v8825_v17 }
 0x284   : > { %v4234_v30 = vsel %vm718_vm0, %v4969_v4, 0.0  ;;  %v3220_v44 = vrot.slane %v3219_v1, 4  ;;  %v7426_v11 = vrot.slane %v2580_v40, %v8742_v25  ;;  %v3862_v60 = vadd.f32 %v3861_v14, %v3860_v3  ;;  %v2252_v3 = vpop.permute.xlu1 %2251 }
 0x285   : > { %v7419_v42 = vmul.f32 %v4967_v56, %v8826_v31  ;;  %v4125_v54 = vmul.f32 %v4969_v4, %v8828_v52  ;;  %v4235_v55 = vadd.f32 %v4234_v30, %v4233_v29  ;;  %v3376_v16 = vsub.f32 %v7344_v27, %v3243_v49 }
 0x286   : > { %v3377_v61 = vsub.f32 %v7364_v5, %v3243_v49  ;;  %4974 = vrcp.f32 %v4232_v12  ;;  %v3221_v51 = vmax.f32 %v3219_v1, %v3220_v44  ;;  %v2835_v56 = vsub.f32 %v7372_v53, %v2411_v8  ;;  %v8831_v1 = vld [vmem:[#allocation7_spill] sm:$0xff] }
 0x287   : > { %8827 = vst [vmem:[#allocation96_spill] sm:$0xff] %v7419_v42  ;;  %v2836_v37 = vsub.f32 %v7426_v11, %v2412_v48  ;;  %v7434_v17 = vsel %vm718_vm0, %v7356_v62, 0.0  ;;  %v3482_v52 = vmul.f32 1.442695, %v3376_v16  ;;  %v7437_v40 = vsel %vm2898_vm7, %v2834_v63, %v2962_v28  ;;  %v8838_v42 = vld [vmem:[#allocation62_spill] sm:$0xff] }
 0x288   : > { %8829 = vst [vmem:[#allocation95_spill] sm:$0xff] %v7434_v17  ;;  %v3484_v43 = vmul.f32 1.442695, %v3377_v61  ;;  %v7439_v14 = vpop.eup %4970  ;;  %v7441_v27 = vadd.f32 %v4046_v24, %v4045_v9  ;;  %v3222_v12 = vrot.slane %v3221_v51, 2  ;;  %vm2899_vm8 = vcmp.gt.f32.partialorder %v2835_v56, 0.0  ;;  %v2256_v61 = vpop.permute.xlu0 %2255 }
 0x289   : > { %v2963_v44 = vmul.f32 0.2, %v2835_v56  ;;  %v4973_v5 = vpop.eup %4972  ;;  %v3863_v49 = vrot.slane %v3862_v60, 2  ;;  %v4050_v53 = vsel %vm718_vm0, %v7439_v14, 0.0  ;;  %4976 = vpow2.f32 %v3482_v52 }
 0x28a   : > { %8830 = vst [vmem:[#allocation98_spill] sm:$0xff] %v7441_v27  ;;  %v2968_v62 = vmul.f32 0.2, %v2840_v45  ;;  %v8832_v8 = vunpack.c.h.bf16 %v8831_v1  ;;  %v4051_v63 = vsel %vm718_vm0, %v4973_v5, 0.0  ;;  %4978 = vpow2.f32 %v3484_v43 }
 0x28b   : > { %v3223_v28 = vmax.f32 %v3221_v51, %v3222_v12  ;;  %v7450_v9 = vadd.f32 %v4051_v63, %v4050_v53  ;;  %v3244_v4 = vsel %vm718_vm0, %v7437_v40, -inf  ;;  %vm2904_vm9 = vcmp.gt.f32.partialorder %v2840_v45, 0.0 }
 0x28c   : > { %v7447_v48 = vmul.f32 %v4973_v5, %v8832_v8  ;;  %v7454_v24 = vsel %vm2899_vm8, %v2835_v56, %v2963_v44  ;;  %v2353_v16 = vmul.f32 %v2252_v3, %v6624_v15  ;;  %v7460_v52 = vadd.f32 %v3863_v49, %v3862_v60  ;;  %v2236_v5 = vpop.permute.xlu1 %2235  ;;  %v8835_v44 = vld [vmem:[#allocation64_spill] sm:$0xff] }
 0x28d   : > { %v3224_v29 = vrot.slane %v3223_v28, 1  ;;  %v3245_v30 = vsel %vm718_vm0, %v7454_v24, -inf  ;;  %v7463_v51 = vsel %vm718_vm0, %v4125_v54, 0.0  ;;  %v4236_v43 = vrot.slane %v4235_v55, 4 }
 0x28e   : > { %8833 = vst [vmem:[#allocation101_spill] sm:$0xff] %v7447_v48  ;;  %8834 = vst [vmem:[#allocation99_spill] sm:$0xff] %v7463_v51  ;;  %v3246_v12 = vmax.f32 %v3244_v4, %v3245_v30  ;;  %v7465_v56 = vsel %vm2904_vm9, %v2840_v45, %v2968_v62  ;;  %v2417_v8 = vadd.f32 %v2353_v16, %v8835_v44  ;;  %vm2900_vm10 = vcmp.gt.f32.partialorder %v2836_v37, 0.0  ;;  %v8837_v16 = vld [vmem:[#allocation33_spill] sm:$0xff] }
 0x28f   : > { %v3225_v53 = vmax.f32 %v3223_v28, %v3224_v29  ;;  %v2626_v63 = vcombine.high %v6935_v22, %v6935_v22  ;;  %v2964_v3 = vmul.f32 0.2, %v2836_v37  ;;  %v2354_v60 = vmul.f32 %v2256_v61, %v6624_v15 }
 0x290   : > { %v3247_v31 = vrot.slane %v3246_v12, 4  ;;  %v7471_v49 = vpop.eup %4974  ;;  %v2841_v28 = vsub.f32 %v7403_v21, %v2417_v8  ;;  %v2349_v45 = vmul.f32 %v2236_v5, %v6624_v15  ;;  %v7477_v62 = vadd.f32 %v4236_v43, %v4235_v55 }
 0x291   : > { %8836 = vst [vmem:[#allocation97_spill] sm:$0xff] %v7471_v49  ;;  %v3372_v54 = vsub.f32 %v7379_v19, %v3225_v53  ;;  %v3373_v4 = vsub.f32 %v7407_v18, %v3225_v53  ;;  %v3271_v29 = vsel %vm718_vm0, %v7465_v56, -inf  ;;  %v2418_v44 = vadd.f32 %v2354_v60, %v8837_v16  ;;  %v8839_v53 = vld [vmem:[#allocation8_spill] sm:$0xff] }
 0x292   : > { %v3248_v30 = vmax.f32 %v3246_v12, %v3247_v31  ;;  %v2737_v49 = vrot.slane %v2626_v63, %v8742_v25  ;;  %v2413_v19 = vadd.f32 %v2349_v45, %v8838_v42  ;;  %v7487_v21 = vsel %vm2900_vm10, %v2836_v37, %v2964_v3  ;;  %v2280_v37 = vpop.permute.xlu0 %2279  ;;  %v2260_v45 = vpop.permute.xlu1 %2259 }
 0x293   : > { %v3474_v51 = vmul.f32 1.442695, %v3372_v54  ;;  %v3476_v61 = vmul.f32 1.442695, %v3373_v4  ;;  %v7484_v27 = vpop.eup %4976  ;;  %vm2905_vm11 = vcmp.gt.f32.partialorder %v2841_v28, 0.0  ;;  %v8840_v8 = vunpack.c.h.bf16 %v8839_v53 }
 0x294   : > { %v3249_v18 = vrot.slane %v3248_v30, 2  ;;  %v2969_v55 = vmul.f32 0.2, %v2841_v28  ;;  %v4979_v43 = vpop.eup %4978  ;;  %v3867_v31 = vsel %vm718_vm0, %v7484_v27, 0.0  ;;  %v2842_v12 = vsub.f32 %v2737_v49, %v2418_v44 }
 0x295   : > { %4980 = vpow2.f32 %v3474_v51  ;;  %v2837_v5 = vsub.f32 %v7426_v11, %v2413_v19  ;;  %v7494_v63 = vmul.f32 %v4979_v43, %v8840_v8  ;;  %v3868_v42 = vsel %vm718_vm0, %v4979_v43, 0.0 }
 0x296   : > { %4982 = vpow2.f32 %v3476_v61  ;;  %v3250_v60 = vmax.f32 %v3248_v30, %v3249_v18  ;;  %v7498_v54 = vadd.f32 %v3868_v42, %v3867_v31  ;;  %v7500_v4 = vsel %vm2905_vm11, %v2841_v28, %v2969_v55  ;;  %v8842_v42 = vld [vmem:[#allocation133_spill] sm:$0xff] }
 0x297   : > { %v8841_v51 = vcombine.high %v6916_v41, %v6916_v41  ;;  %v3272_v44 = vsel %vm718_vm0, %v7500_v4, -inf  ;;  %vm2901_vm12 = vcmp.gt.f32.partialorder %v2837_v5, 0.0  ;;  %v2965_v30 = vmul.f32 0.2, %v2837_v5 }
 0x298   : > { %v3251_v16 = vrot.slane %v3250_v60, 1  ;;  %v3253_v61 = vsel %vm718_vm0, %v7487_v21, -inf  ;;  %v3273_v19 = vmax.f32 %v3271_v29, %v3272_v44  ;;  %v2970_v18 = vmul.f32 0.2, %v2842_v12 }
 0x299   : > { %v7506_v11 = vrot.slane %v8841_v51, %v6660_v35  ;;  %v2360_v28 = vmul.f32 %v2280_v37, %v6624_v15  ;;  %vm2906_vm13 = vcmp.gt.f32.partialorder %v2842_v12, 0.0  ;;  %v7513_v43 = vsel %vm2901_vm12, %v2837_v5, %v2965_v30 }
 0x29a   : > { %v3252_v55 = vmax.f32 %v3250_v60, %v3251_v16  ;;  %v2355_v35 = vmul.f32 %v2260_v45, %v6624_v15  ;;  %v3274_v41 = vrot.slane %v3273_v19, 4  ;;  %v3254_v31 = vsel %vm718_vm0, %v7513_v43, -inf  ;;  %v8843_v60 = vld [vmem:[#allocation121_spill] sm:$0xff] }
 0x29b   : > { %v2749_v8 = vrot.slane %v7506_v11, %v8742_v25  ;;  %v2424_v51 = vadd.f32 %v2360_v28, %v8842_v42  ;;  %v3255_v37 = vmax.f32 %v3253_v61, %v3254_v31  ;;  %v4053_v5 = vrot.slane %v7450_v9, 4 }
 0x29c   : > { %v3378_v29 = vsub.f32 %v7437_v40, %v3252_v55  ;;  %v3379_v44 = vsub.f32 %v7454_v24, %v3252_v55  ;;  %v2419_v16 = vadd.f32 %v2355_v35, %v8843_v60  ;;  %v3275_v30 = vmax.f32 %v3273_v19, %v3274_v41  ;;  %v2264_v19 = vpop.permute.xlu0 %2263  ;;  %v8845_v35 = vld [vmem:[#allocation12_spill] sm:$0xff] }
 0x29d   : > { %v7525_v45 = vsel %vm2906_vm13, %v2842_v12, %v2970_v18  ;;  %v2848_v3 = vsub.f32 %v2749_v8, %v2424_v51  ;;  %v3256_v7 = vrot.slane %v3255_v37, 4  ;;  %v2628_v24 = vcombine.high %v7389_v26, %v7389_v26  ;;  %v2284_v18 = vpop.permute.xlu1 %2283 }
 0x29e   : > { %v3486_v48 = vmul.f32 1.442695, %v3378_v29  ;;  %v3488_v17 = vmul.f32 1.442695, %v3379_v44  ;;  %v2843_v38 = vsub.f32 %v2737_v49, %v2419_v16  ;;  %v3276_v28 = vrot.slane %v3275_v30, 2 }
 0x29f   : > { %v7527_v46 = vpop.eup %4980  ;;  %vm2912_vm14 = vcmp.gt.f32.partialorder %v2848_v3, 0.0  ;;  %v2976_v40 = vmul.f32 0.2, %v2848_v3  ;;  %v3257_v12 = vmax.f32 %v3255_v37, %v3256_v7  ;;  %v8846_v41 = vunpack.c.h.bf16 %v8845_v35 }
 0x2a0   : > { %8844 = vst [vmem:[#allocation108_spill] sm:$0xff] %v7527_v46  ;;  %v4983_v61 = vpop.eup %4982  ;;  %v4242_v55 = vsel %vm718_vm0, %v7527_v46, 0.0  ;;  %4984 = vpow2.f32 %v3486_v48  ;;  %vm2907_vm15 = vcmp.gt.f32.partialorder %v2843_v38, 0.0  ;;  %v3277_v42 = vmax.f32 %v3275_v30, %v3276_v28  ;;  %v8848_v28 = vld [vmem:[#allocation66_spill] sm:$0xff] }
 0x2a1   : > { %v7535_v49 = vmul.f32 %v4983_v61, %v8846_v41  ;;  %v4243_v31 = vsel %vm718_vm0, %v4983_v61, 0.0  ;;  %4986 = vpow2.f32 %v3488_v17  ;;  %v7539_v51 = vadd.f32 %v4053_v5, %v7450_v9 }
 0x2a2   : > { %v4244_v26 = vadd.f32 %v4243_v31, %v4242_v55  ;;  %v3258_v29 = vrot.slane %v3257_v12, 2  ;;  %v2971_v44 = vmul.f32 0.2, %v2843_v38  ;;  %v3278_v60 = vrot.slane %v3277_v42, 1  ;;  %v8849_v55 = vld [vmem:[#allocation70_spill] sm:$0xff] }
 0x2a3   : > { %8847 = vst [vmem:[#allocation109_spill] sm:$0xff] %v7535_v49  ;;  %v3280_v7 = vsel %vm718_vm0, %v7525_v45, -inf  ;;  %v2356_v48 = vmul.f32 %v2264_v19, %v6624_v15  ;;  %v2361_v37 = vmul.f32 %v2284_v18, %v6624_v15  ;;  %v7546_v41 = vsel %vm2912_vm14, %v2848_v3, %v2976_v40 }
 0x2a4   : > { %v3259_v16 = vmax.f32 %v3257_v12, %v3258_v29  ;;  %v7549_v17 = vsel %vm2907_vm15, %v2843_v38, %v2971_v44  ;;  %v7552_v9 = vrot.slane %v2628_v24, %v8742_v25  ;;  %v3279_v5 = vmax.f32 %v3277_v42, %v3278_v60  ;;  %v2288_v44 = vpop.permute.xlu0 %2287 }
 0x2a5   : > { %v3281_v30 = vsel %vm718_vm0, %v7549_v17, -inf  ;;  %v2420_v61 = vadd.f32 %v2356_v48, %v8848_v28  ;;  %v2425_v19 = vadd.f32 %v2361_v37, %v8849_v55  ;;  %v8850_v12 = vrot.slane %v7477_v62, 2  ;;  %v2268_v28 = vpop.permute.xlu1 %2267 }
 0x2a6   : > { %v4055_v3 = vrot.slane %v7539_v51, 2  ;;  %v3260_v38 = vrot.slane %v3259_v16, 1  ;;  %v3282_v40 = vmax.f32 %v3280_v7, %v3281_v30  ;;  %v3384_v24 = vsub.f32 %v7465_v56, %v3279_v5 }
 0x2a7   : > { %v7561_v18 = vadd.f32 %v8850_v12, %v7477_v62  ;;  %v3385_v31 = vsub.f32 %v7500_v4, %v3279_v5  ;;  %v2844_v42 = vsub.f32 %v7552_v9, %v2420_v61  ;;  %v2849_v29 = vsub.f32 %v2749_v8, %v2425_v19 }
 0x2a8   : > { %v3870_v60 = vrot.slane %v7498_v54, 4  ;;  %v3261_v48 = vmax.f32 %v3259_v16, %v3260_v38  ;;  %v3307_v37 = vsel %vm718_vm0, %v7546_v41, -inf  ;;  %v3283_v62 = vrot.slane %v3282_v40, 4  ;;  %v8853_v38 = vld [vmem:[#allocation10_spill] sm:$0xff] }
 0x2a9   : > { %8851 = vst [vmem:[#allocation104_spill] sm:$0xff] %v7561_v18  ;;  %v4245_v55 = vrot.slane %v4244_v26, 4  ;;  %v3498_v12 = vmul.f32 1.442695, %v3384_v24  ;;  %v3500_v49 = vmul.f32 1.442695, %v3385_v31  ;;  %v2627_v56 = vcombine.high %v6953_v36, %v6953_v36 }
 0x2aa   : > { %v7572_v7 = vpop.eup %4984  ;;  %v3380_v4 = vsub.f32 %v7487_v21, %v3261_v48  ;;  %v3381_v8 = vsub.f32 %v7513_v43, %v3261_v48  ;;  %v3284_v5 = vmax.f32 %v3282_v40, %v3283_v62  ;;  %v2362_v16 = vmul.f32 %v2288_v44, %v6624_v15 }
 0x2ab   : > { %8852 = vst [vmem:[#allocation103_spill] sm:$0xff] %v7572_v7  ;;  %v4987_v30 = vpop.eup %4986  ;;  %v4059_v61 = vsel %vm718_vm0, %v7572_v7, 0.0  ;;  %4988 = vpow2.f32 %v3498_v12  ;;  %vm2913_vm1 = vcmp.gt.f32.partialorder %v2849_v29, 0.0  ;;  %v2977_v19 = vmul.f32 0.2, %v2849_v29  ;;  %v8856_v12 = vld [vmem:[#allocation13_spill] sm:$0xff] }
 0x2ac   : > { %v8854_v24 = vunpack.c.h.bf16 %v8853_v38  ;;  %v4060_v46 = vsel %vm718_vm0, %v4987_v30, 0.0  ;;  %4990 = vpow2.f32 %v3500_v49  ;;  %v3490_v21 = vmul.f32 1.442695, %v3380_v4  ;;  %v2296_v38 = vpop.permute.xlu0 %2295 }
 0x2ad   : > { %v7584_v35 = vadd.f32 %v4245_v55, %v4244_v26  ;;  %v7586_v43 = vadd.f32 %v4060_v46, %v4059_v61  ;;  %v3492_v40 = vmul.f32 1.442695, %v3381_v8  ;;  %v3285_v44 = vrot.slane %v3284_v5, 2 }
 0x2ae   : > { %v7581_v31 = vmul.f32 %v4987_v30, %v8854_v24  ;;  %4992 = vpow2.f32 %v3490_v21  ;;  %v7588_v48 = vsel %vm2913_vm1, %v2849_v29, %v2977_v19  ;;  %v2753_v62 = vrot.slane %v2627_v56, %v8742_v25  ;;  %v2292_v24 = vpop.permute.xlu1 %2291  ;;  %v8858_v19 = vld [vmem:[#allocation131_spill] sm:$0xff]  ;;  %v8859_v21 = vld [vmem:[#allocation42_spill] sm:$0xff] }
 0x2af   : > { %v2426_v7 = vadd.f32 %v2362_v16, %v8856_v12  ;;  %4994 = vpow2.f32 %v3492_v40  ;;  %v2972_v30 = vmul.f32 0.2, %v2844_v42  ;;  %v3308_v49 = vsel %vm718_vm0, %v7588_v48, -inf }
 0x2b0   : > { %8855 = vst [vmem:[#allocation105_spill] sm:$0xff] %v7581_v31  ;;  %v3286_v31 = vmax.f32 %v3284_v5, %v3285_v44  ;;  %v3309_v26 = vmax.f32 %v3307_v37, %v3308_v49  ;;  %v2357_v55 = vmul.f32 %v2268_v28, %v6624_v15  ;;  %v2629_v29 = vcombine.high %v7506_v11, %v7506_v11 }
 0x2b1   : > { %v2850_v46 = vsub.f32 %v2753_v62, %v2426_v7  ;;  %vm2908_vm2 = vcmp.gt.f32.partialorder %v2844_v42, 0.0  ;;  %v2364_v56 = vmul.f32 %v2296_v38, %v6624_v15  ;;  %v2363_v8 = vmul.f32 %v2292_v24, %v6624_v15 }
 0x2b2   : > { %v3287_v4 = vrot.slane %v3286_v31, 1  ;;  %v7601_v5 = vadd.f32 %v4055_v3, %v7539_v51  ;;  %v3310_v61 = vrot.slane %v3309_v26, 4  ;;  %v2421_v37 = vadd.f32 %v2357_v55, %v8858_v19 }
 0x2b3   : > { %v7605_v7 = vadd.f32 %v3870_v60, %v7498_v54  ;;  %v7608_v11 = vrot.slane %v2629_v29, %v8742_v25  ;;  %v2428_v40 = vadd.f32 %v2364_v56, %v8859_v21  ;;  %v4247_v38 = vrot.slane %v7584_v35, 2 }
 0x2b4   : > { %8857 = vst [vmem:[#allocation26_spill] sm:$0xff] %v7601_v5  ;;  %v3288_v28 = vmax.f32 %v3286_v31, %v3287_v4  ;;  %v7612_v44 = vsel %vm2908_vm2, %v2844_v42, %v2972_v30  ;;  %v3311_v12 = vmax.f32 %v3309_v26, %v3310_v61  ;;  %v2845_v51 = vsub.f32 %v7552_v9, %v2421_v37  ;;  %v8860_v31 = vld [vmem:[#allocation72_spill] sm:$0xff] }
 0x2b5   : > { %v7615_v3 = vpop.eup %4988  ;;  %v2852_v60 = vsub.f32 %v7608_v11, %v2428_v40  ;;  %v2427_v49 = vadd.f32 %v2363_v8, %v8860_v31  ;;  %vm2914_vm4 = vcmp.gt.f32.partialorder %v2850_v46, 0.0  ;;  %v2978_v61 = vmul.f32 0.2, %v2850_v46 }
 0x2b6   : > { %v3386_v24 = vsub.f32 %v7525_v45, %v3288_v28  ;;  %v3387_v54 = vsub.f32 %v7549_v17, %v3288_v28  ;;  %v7621_v55 = vpop.eup %4990  ;;  %v3876_v29 = vsel %vm718_vm0, %v7615_v3, 0.0  ;;  %v3312_v42 = vrot.slane %v3311_v12, 2  ;;  %v2112_v45 = vpop.permute.xlu0 %2111 }
 0x2b7   : > { %vm2909_vm3 = vcmp.gt.f32.partialorder %v2845_v51, 0.0  ;;  %v2973_v30 = vmul.f32 0.2, %v2845_v51  ;;  %v3877_v9 = vsel %vm718_vm0, %v7621_v55, 0.0  ;;  %v2851_v40 = vsub.f32 %v2753_v62, %v2427_v49 }
 0x2b8   : > { %v3502_v26 = vmul.f32 1.442695, %v3386_v24  ;;  %v3504_v4 = vmul.f32 1.442695, %v3387_v54  ;;  %v7627_v17 = vpop.eup %4992  ;;  %v7629_v56 = vadd.f32 %v3877_v9, %v3876_v29  ;;  %v3313_v8 = vmax.f32 %v3311_v12, %v3312_v42  ;;  %v8862_v24 = vld [vmem:[#allocation65_spill] sm:$0xff] }
 0x2b9   : > { %8861 = vst [vmem:[#allocation107_spill] sm:$0xff] %v7627_v17  ;;  %v7631_v19 = vsel %vm2909_vm3, %v2845_v51, %v2973_v30  ;;  %v4995_v37 = vpop.eup %4994  ;;  %v4251_v28 = vsel %vm718_vm0, %v7627_v17, 0.0  ;;  %v8863_v54 = vunpack.c.h.bf16 %v8862_v24  ;;  %v3289_v12 = vsel %vm718_vm0, %v7612_v44, -inf  ;;  %v2300_v51 = vpop.permute.xlu1 %2299 }
 0x2ba   : > { %4996 = vpow2.f32 %v3502_v26  ;;  %v3290_v21 = vsel %vm718_vm0, %v7631_v19, -inf  ;;  %v4252_v29 = vsel %vm718_vm0, %v4995_v37, 0.0  ;;  %v3314_v9 = vrot.slane %v3313_v8, 1 }
 0x2bb   : > { %v7639_v31 = vmul.f32 %v4995_v37, %v8863_v54  ;;  %4998 = vpow2.f32 %v3504_v4  ;;  %v7645_v30 = vadd.f32 %v4252_v29, %v4251_v28  ;;  %v3291_v26 = vmax.f32 %v3289_v12, %v3290_v21  ;;  %v8866_v29 = vld [vmem:[#allocation41_spill] sm:$0xff] }
 0x2bc   : > { %v7648_v16 = vadd.f32 %v4247_v38, %v7584_v35  ;;  %v7651_v62 = vsel %vm2914_vm4, %v2850_v46, %v2978_v61  ;;  %vm2915_vm5 = vcmp.gt.f32.partialorder %v2851_v40, 0.0  ;;  %v2979_v49 = vmul.f32 0.2, %v2851_v40 }
 0x2bd   : > { %8864 = vst [vmem:[#allocation106_spill] sm:$0xff] %v7639_v31  ;;  %v4062_v4 = vrot.slane %v7586_v43, 4  ;;  %v3315_v37 = vmax.f32 %v3313_v8, %v3314_v9  ;;  %v3292_v54 = vrot.slane %v3291_v26, 4  ;;  %v2980_v18 = vmul.f32 0.2, %v2852_v60  ;;  %v2144_v31 = vpop.permute.xlu0 %2143  ;;  %v8867_v9 = vld [vmem:[#allocation74_spill] sm:$0xff] }
 0x2be   : > { %8865 = vst [vmem:[#allocation31_spill] sm:$0xff] %v7648_v16  ;;  %vm2916_vm6 = vcmp.gt.f32.partialorder %v2852_v60, 0.0  ;;  %v7654_v42 = vsel %vm2915_vm5, %v2851_v40, %v2979_v49  ;;  %v2318_v28 = vmul.f32 %v2112_v45, %v6624_v15  ;;  %v2365_v21 = vmul.f32 %v2300_v51, %v6624_v15  ;;  %v2116_v45 = vpop.permute.xlu1 %2115 }
 0x2bf   : > { %v3392_v35 = vsub.f32 %v7546_v41, %v3315_v37  ;;  %v3393_v46 = vsub.f32 %v7588_v48, %v3315_v37  ;;  %v3316_v38 = vsel %vm718_vm0, %v7651_v62, -inf  ;;  %v3293_v61 = vmax.f32 %v3291_v26, %v3292_v54  ;;  %v8868_v54 = vld [vmem:[#allocation44_spill] sm:$0xff] }
 0x2c0   : > { %v3317_v8 = vsel %vm718_vm0, %v7654_v42, -inf  ;;  %v2382_v12 = vadd.f32 %v2318_v28, %v8866_v29  ;;  %v2429_v40 = vadd.f32 %v2365_v21, %v8867_v9  ;;  %v2326_v49 = vmul.f32 %v2144_v31, %v6624_v15 }
 0x2c1   : > { %v3514_v16 = vmul.f32 1.442695, %v3392_v35  ;;  %v3516_v51 = vmul.f32 1.442695, %v3393_v46  ;;  %v3294_v17 = vrot.slane %v3293_v61, 2  ;;  %v7668_v41 = vsel %vm2916_vm6, %v2852_v60, %v2980_v18  ;;  %v2176_v46 = vpop.permute.xlu0 %2175 }
 0x2c2   : > { %v3318_v48 = vmax.f32 %v3316_v38, %v3317_v8  ;;  %v2665_v26 = vrot.slane %v6740_v59, %v8742_v25  ;;  %v2853_v37 = vsub.f32 %v7608_v11, %v2429_v40  ;;  %v2390_v24 = vadd.f32 %v2326_v49, %v8868_v54 }
 0x2c3   : > { %5000 = vpow2.f32 %v3514_v16  ;;  %v3295_v21 = vmax.f32 %v3293_v61, %v3294_v17  ;;  %v7678_v31 = vrot.slane %v6758_v34, %v8742_v25  ;;  %v2319_v35 = vmul.f32 %v2116_v45, %v6624_v15 }
 0x2c4   : > { %v7674_v28 = vpop.eup %4996  ;;  %5002 = vpow2.f32 %v3516_v51  ;;  %v3319_v59 = vrot.slane %v3318_v48, 4  ;;  %v2806_v11 = vsub.f32 %v2665_v26, %v2382_v12  ;;  %v7686_v38 = vadd.f32 %v4062_v4, %v7586_v43  ;;  %v8871_v12 = vld [vmem:[#allocation40_spill] sm:$0xff] }
 0x2c5   : > { %v7681_v18 = vpop.eup %4998  ;;  %v4068_v60 = vsel %vm718_vm0, %v7674_v28, 0.0  ;;  %v3296_v17 = vrot.slane %v3295_v21, 1  ;;  %vm2917_vm7 = vcmp.gt.f32.partialorder %v2853_v37, 0.0  ;;  %v2981_v8 = vmul.f32 0.2, %v2853_v37 }
 0x2c6   : > { %8869 = vst [vmem:[#allocation114_spill] sm:$0xff] %v7681_v18  ;;  %8870 = vst [vmem:[#allocation111_spill] sm:$0xff] %v7686_v38  ;;  %v4069_v16 = vsel %vm718_vm0, %v7681_v18, 0.0  ;;  %v3320_v61 = vmax.f32 %v3318_v48, %v3319_v59  ;;  %v2814_v29 = vsub.f32 %v7678_v31, %v2390_v24  ;;  %v3325_v40 = vsel %vm718_vm0, %v7668_v41, -inf }
 0x2c7   : > { %v7690_v34 = vadd.f32 %v4069_v16, %v4068_v60  ;;  %v3297_v9 = vmax.f32 %v3295_v21, %v3296_v17  ;;  %v2383_v49 = vadd.f32 %v2319_v35, %v8871_v12  ;;  %v2334_v43 = vmul.f32 %v2176_v46, %v6624_v15  ;;  %v2148_v60 = vpop.permute.xlu1 %2147 }
 0x2c8   : > { %v3321_v4 = vrot.slane %v3320_v61, 2  ;;  %v2934_v45 = vmul.f32 0.2, %v2806_v11  ;;  %v7697_v51 = vsel %vm2917_vm7, %v2853_v37, %v2981_v8  ;;  %v7701_v54 = vrot.slane %v8797_v58, %v8742_v25  ;;  %v8872_v8 = vld [vmem:[#allocation50_spill] sm:$0xff] }
 0x2c9   : > { %v3388_v48 = vsub.f32 %v7612_v44, %v3297_v9  ;;  %v3389_v24 = vsub.f32 %v7631_v19, %v3297_v9  ;;  %vm2870_vm8 = vcmp.gt.f32.partialorder %v2806_v11, 0.0  ;;  %v3326_v21 = vsel %vm718_vm0, %v7697_v51, -inf }
 0x2ca   : > { %v3322_v35 = vmax.f32 %v3320_v61, %v3321_v4  ;;  %v3327_v59 = vmax.f32 %v3325_v40, %v3326_v21  ;;  %vm2878_vm9 = vcmp.gt.f32.partialorder %v2814_v29, 0.0  ;;  %v2942_v46 = vmul.f32 0.2, %v2814_v29 }
 0x2cb   : > { %v3506_v16 = vmul.f32 1.442695, %v3388_v48  ;;  %v3508_v37 = vmul.f32 1.442695, %v3389_v24  ;;  %v2807_v17 = vsub.f32 %v2665_v26, %v2383_v49  ;;  %v2398_v12 = vadd.f32 %v2334_v43, %v8872_v8 }
 0x2cc   : > { %v3323_v58 = vrot.slane %v3322_v35, 1  ;;  %v7708_v5 = vsel %vm2870_vm8, %v2806_v11, %v2934_v45  ;;  %v3328_v44 = vrot.slane %v3327_v59, 4  ;;  %v2327_v19 = vmul.f32 %v2148_v60, %v6624_v15  ;;  %v2208_v11 = vpop.permute.xlu0 %2207 }
 0x2cd   : > { %v7711_v9 = vpop.eup %5000  ;;  %5004 = vpow2.f32 %v3506_v16  ;;  %v7713_v18 = vsel %vm2878_vm9, %v2814_v29, %v2942_v46  ;;  %vm2871_vm10 = vcmp.gt.f32.partialorder %v2807_v17, 0.0  ;;  %v2935_v61 = vmul.f32 0.2, %v2807_v17  ;;  %v8873_v29 = vld [vmem:[#allocation43_spill] sm:$0xff] }
 0x2ce   : > { %v7715_v40 = vpop.eup %5002  ;;  %v3885_v26 = vsel %vm718_vm0, %v7711_v9, 0.0  ;;  %5006 = vpow2.f32 %v3508_v37  ;;  %v3324_v49 = vmax.f32 %v3322_v35, %v3323_v58  ;;  %v3329_v43 = vmax.f32 %v3327_v59, %v3328_v44 }
 0x2cf   : > { %v3886_v4 = vsel %vm718_vm0, %v7715_v40, 0.0  ;;  %v7721_v45 = vsel %vm2871_vm10, %v2807_v17, %v2935_v61  ;;  %v2822_v48 = vsub.f32 %v7701_v54, %v2398_v12  ;;  %v2391_v24 = vadd.f32 %v2327_v19, %v8873_v29 }
 0x2d0   : > { %v7725_v21 = vadd.f32 %v3886_v4, %v3885_v26  ;;  %v3394_v60 = vsub.f32 %v7651_v62, %v3324_v49  ;;  %v3395_v46 = vsub.f32 %v7654_v42, %v3324_v49  ;;  %v3330_v16 = vrot.slane %v3329_v43, 2  ;;  %v2180_v42 = vpop.permute.xlu1 %2179 }
 0x2d1   : > { %v3119_v35 = vsel %vm718_vm0, %v7721_v45, -inf  ;;  %vm2886_vm11 = vcmp.gt.f32.partialorder %v2822_v48, 0.0  ;;  %v2950_v59 = vmul.f32 0.2, %v2822_v48  ;;  %v2815_v37 = vsub.f32 %v7678_v31, %v2391_v24  ;;  %v2240_v31 = vpop.permute.xlu0 %2239 }
 0x2d2   : > { %v3518_v17 = vmul.f32 1.442695, %v3394_v60  ;;  %v3520_v8 = vmul.f32 1.442695, %v3395_v46  ;;  %v3118_v12 = vsel %vm718_vm0, %v7708_v5, -inf  ;;  %v3331_v58 = vmax.f32 %v3329_v43, %v3330_v16 }
 0x2d3   : > { %v3120_v19 = vmax.f32 %v3118_v12, %v3119_v35  ;;  %vm2879_vm12 = vcmp.gt.f32.partialorder %v2815_v37, 0.0  ;;  %v2943_v62 = vmul.f32 0.2, %v2815_v37  ;;  %v3154_v26 = vsel %vm718_vm0, %v7713_v18, -inf }
 0x2d4   : > { %5008 = vpow2.f32 %v3518_v17  ;;  %v3332_v61 = vrot.slane %v3331_v58, 1  ;;  %v7737_v49 = vsel %vm2886_vm11, %v2822_v48, %v2950_v59  ;;  %v2342_v43 = vmul.f32 %v2208_v11, %v6624_v15  ;;  %v8875_v17 = vld [vmem:[#allocation53_spill] sm:$0xff] }
 0x2d5   : > { %5010 = vpow2.f32 %v3520_v8  ;;  %v3121_v4 = vrot.slane %v3120_v19, 4  ;;  %v7739_v29 = vsel %vm2879_vm12, %v2815_v37, %v2943_v62  ;;  %v7746_v46 = vrot.slane %v8814_v23, %v8742_v25  ;;  %v8877_v62 = vld [vmem:[#allocation22_spill] sm:$0xff] }
 0x2d6   : > { %v3333_v24 = vmax.f32 %v3331_v58, %v3332_v61  ;;  %v3155_v60 = vsel %vm718_vm0, %v7739_v29, -inf  ;;  %v2335_v16 = vmul.f32 %v2180_v42, %v6624_v15  ;;  %v2406_v8 = vadd.f32 %v2342_v43, %v8875_v17 }
 0x2d7   : > { %v7749_v35 = vpop.eup %5004  ;;  %v3122_v48 = vmax.f32 %v3120_v19, %v3121_v4  ;;  %v3156_v59 = vmax.f32 %v3154_v26, %v3155_v60  ;;  %v2350_v37 = vmul.f32 %v2240_v31, %v6624_v15  ;;  %vm4304_vm5 = vcmask 1042434  }
 0x2d8   : > { %8874 = vst [vmem:[#allocation110_spill] sm:$0xff] %v7749_v35  ;;  %v7753_v12 = vpop.eup %5006  ;;  %v4260_v11 = vsel %vm718_vm0, %v7749_v35, 0.0  ;;  %v3396_v58 = vsub.f32 %v7668_v41, %v3333_v24  ;;  %v3397_v23 = vsub.f32 %v7697_v51, %v3333_v24  ;;  %v2399_v61 = vadd.f32 %v2335_v16, %v8877_v62  ;;  %v2212_v16 = vpop.permute.xlu1 %2211 }
 0x2d9   : > { %8876 = vst [vmem:[#allocation28_spill] sm:$0xff] %v7753_v12  ;;  %v4261_v42 = vsel %vm718_vm0, %v7753_v12, 0.0  ;;  %v3123_v19 = vrot.slane %v3122_v48, 2  ;;  %v3157_v26 = vrot.slane %v3156_v59, 4  ;;  %v2830_v4 = vsub.f32 %v7746_v46, %v2406_v8 }
 0x2da   : > { %v7763_v43 = vadd.f32 %v4261_v42, %v4260_v11  ;;  %v3522_v31 = vmul.f32 1.442695, %v3396_v58  ;;  %v3524_v60 = vmul.f32 1.442695, %v3397_v23  ;;  %v2823_v17 = vsub.f32 %v7701_v54, %v2399_v61 }
 0x2db   : > { %v3124_v44 = vmax.f32 %v3122_v48, %v3123_v19  ;;  %v3158_v35 = vmax.f32 %v3156_v59, %v3157_v26  ;;  %vm2894_vm13 = vcmp.gt.f32.partialorder %v2830_v4, 0.0  ;;  %v2958_v41 = vmul.f32 0.2, %v2830_v4  ;;  %v8879_v59 = vld [vmem:[#allocation61_spill] sm:$0xff] }
 0x2dc   : > { %v3879_v51 = vrot.slane %v7629_v56, 4  ;;  %5012 = vpow2.f32 %v3522_v31  ;;  %vm2887_vm14 = vcmp.gt.f32.partialorder %v2823_v17, 0.0  ;;  %v2951_v24 = vmul.f32 0.2, %v2823_v17 }
 0x2dd   : > { %5014 = vpow2.f32 %v3524_v60  ;;  %v3125_v62 = vrot.slane %v3124_v44, 1  ;;  %v3190_v8 = vsel %vm718_vm0, %v7737_v49, -inf  ;;  %v3159_v11 = vrot.slane %v3158_v35, 2 }
 0x2de   : > { %v7769_v58 = vpop.eup %5008  ;;  %v7771_v23 = vsel %vm2894_vm13, %v2830_v4, %v2958_v41  ;;  %v7773_v54 = vsel %vm2887_vm14, %v2823_v17, %v2951_v24  ;;  %v2729_v48 = vrot.slane %v6935_v22, %v8742_v25  ;;  %v2414_v61 = vadd.f32 %v2350_v37, %v8879_v59 }
 0x2df   : > { %8878 = vst [vmem:[#allocation30_spill] sm:$0xff] %v7769_v58  ;;  %v7778_v42 = vpop.eup %5010  ;;  %v4077_v19 = vsel %vm718_vm0, %v7769_v58, 0.0  ;;  %v3126_v26 = vmax.f32 %v3124_v44, %v3125_v62  ;;  %v3160_v31 = vmax.f32 %v3158_v35, %v3159_v11  ;;  %v3191_v60 = vsel %vm718_vm0, %v7773_v54, -inf  ;;  %v8880_v35 = vld [vmem:[#allocation56_spill] sm:$0xff]  ;;  %v2244_v11 = vpop.permute.xlu1 %2243 }
 0x2e0   : > { %v4078_v4 = vsel %vm718_vm0, %v7778_v42, 0.0  ;;  %v3192_v17 = vmax.f32 %v3190_v8, %v3191_v60  ;;  %v2838_v41 = vsub.f32 %v2729_v48, %v2414_v61  ;;  %v2343_v24 = vmul.f32 %v2212_v16, %v6624_v15 }
 0x2e1   : > { %v7787_v22 = vadd.f32 %v4078_v4, %v4077_v19  ;;  %v3350_v37 = vsub.f32 %v7708_v5, %v3126_v26  ;;  %v3351_v59 = vsub.f32 %v7721_v45, %v3126_v26  ;;  %v3161_v12 = vrot.slane %v3160_v31, 1  ;;  %v2272_v26 = vpop.permute.xlu0 %2271 }
 0x2e2   : > { %v3193_v38 = vrot.slane %v3192_v17, 4  ;;  %vm2902_vm15 = vcmp.gt.f32.partialorder %v2838_v41, 0.0  ;;  %v2966_v44 = vmul.f32 0.2, %v2838_v41  ;;  %v2407_v62 = vadd.f32 %v2343_v24, %v8880_v35 }
 0x2e3   : > { %v7793_v58 = vadd.f32 %v3879_v51, %v7629_v56  ;;  %v3430_v8 = vmul.f32 1.442695, %v3350_v37  ;;  %v3432_v61 = vmul.f32 1.442695, %v3351_v59  ;;  %v3162_v60 = vmax.f32 %v3160_v31, %v3161_v12  ;;  %v2276_v59 = vpop.permute.xlu1 %2275 }
 0x2e4   : > { %v3226_v16 = vsel %vm718_vm0, %v7771_v23, -inf  ;;  %v3194_v19 = vmax.f32 %v3192_v17, %v3193_v38  ;;  %v7797_v5 = vsel %vm2902_vm15, %v2838_v41, %v2966_v44  ;;  %v2831_v45 = vsub.f32 %v7746_v46, %v2407_v62  ;;  %v8881_v62 = vld [vmem:[#allocation14_spill] sm:$0xff] }
 0x2e5   : > { %5016 = vpow2.f32 %v3430_v8  ;;  %v3358_v4 = vsub.f32 %v7713_v18, %v3162_v60  ;;  %v3359_v24 = vsub.f32 %v7739_v29, %v3162_v60  ;;  %v2745_v56 = vrot.slane %v6953_v36, %v8742_v25 }
 0x2e6   : > { %v7804_v51 = vpop.eup %5012  ;;  %5018 = vpow2.f32 %v3432_v61  ;;  %v3195_v12 = vrot.slane %v3194_v19, 2  ;;  %vm2895_vm1 = vcmp.gt.f32.partialorder %v2831_v45, 0.0  ;;  %v2959_v31 = vmul.f32 0.2, %v2831_v45 }
 0x2e7   : > { %v7806_v38 = vpop.eup %5014  ;;  %v4269_v46 = vsel %vm718_vm0, %v7804_v51, 0.0  ;;  %v3446_v17 = vmul.f32 1.442695, %v3358_v4  ;;  %v3448_v41 = vmul.f32 1.442695, %v3359_v24  ;;  %v2358_v18 = vmul.f32 %v2272_v26, %v6624_v15  ;;  %v8882_v26 = vld [vmem:[#allocation119_spill] sm:$0xff] }
 0x2e8   : > { %v4270_v29 = vsel %vm718_vm0, %v7806_v38, 0.0  ;;  %v3196_v37 = vmax.f32 %v3194_v19, %v3195_v12  ;;  %v7813_v25 = vsel %vm2895_vm1, %v2831_v45, %v2959_v31  ;;  %v2351_v36 = vmul.f32 %v2244_v11, %v6624_v15 }
 0x2e9   : > { %v7816_v44 = vadd.f32 %v4270_v29, %v4269_v46  ;;  %5020 = vpow2.f32 %v3446_v17  ;;  %v3227_v35 = vsel %vm718_vm0, %v7813_v25, -inf  ;;  %v2422_v8 = vadd.f32 %v2358_v18, %v8881_v62 }
 0x2ea   : > { %5022 = vpow2.f32 %v3448_v41  ;;  %v3197_v61 = vrot.slane %v3196_v37, 1  ;;  %v3228_v60 = vmax.f32 %v3226_v16, %v3227_v35  ;;  %v2415_v4 = vadd.f32 %v2351_v36, %v8882_v26  ;;  %v8885_v36 = vld [vmem:[#allocation67_spill] sm:$0xff] }
 0x2eb   : > { %v4254_v19 = vrot.slane %v7645_v30, 4  ;;  %v2846_v45 = vsub.f32 %v2745_v56, %v2422_v8  ;;  %v2359_v24 = vmul.f32 %v2276_v59, %v6624_v15  ;;  %v8883_v11 = vunpack.c.l.bf16 %v8820_v20  ;;  %v8886_v15 = vld [vmem:[#allocation68_spill] sm:$0xff] }
 0x2ec   : > { %v3198_v31 = vmax.f32 %v3196_v37, %v3197_v61  ;;  %v3229_v46 = vrot.slane %v3228_v60, 4  ;;  %v2839_v17 = vsub.f32 %v2729_v48, %v2415_v4  ;;  %v8884_v18 = vunpack.c.l.bf16 %v8839_v53  ;;  %v8889_v4 = vld [vmem:[#allocation128_spill] sm:$0xff] }
 0x2ed   : > { %v7827_v12 = vmul.f32 %v7376_v33, %v8883_v11  ;;  %v3262_v16 = vsel %vm718_vm0, %v7797_v5, -inf  ;;  %v2974_v29 = vmul.f32 0.2, %v2846_v45  ;;  %v2423_v35 = vadd.f32 %v2359_v24, %v8885_v36 }
 0x2ee   : > { %v7832_v41 = vmul.f32 %v7484_v27, %v8884_v18  ;;  %v8887_v59 = vunpack.c.l.bf16 %v8886_v15  ;;  %v3366_v33 = vsub.f32 %v7737_v49, %v3198_v31  ;;  %v3367_v48 = vsub.f32 %v7773_v54, %v3198_v31 }
 0x2ef   : > { %v3230_v37 = vmax.f32 %v3228_v60, %v3229_v46  ;;  %vm2910_vm2 = vcmp.gt.f32.partialorder %v2846_v45, 0.0  ;;  %v5017_v53 = vpop.eup %5016  ;;  %vm2903_vm3 = vcmp.gt.f32.partialorder %v2839_v17, 0.0  ;;  %v2967_v27 = vmul.f32 0.2, %v2839_v17 }
 0x2f0   : > { %v7840_v20 = vmul.f32 %v7615_v3, %v8887_v59  ;;  %v2847_v62 = vsub.f32 %v2745_v56, %v2423_v35  ;;  %v8888_v8 = vunpack.c.h.bf16 %v8886_v15  ;;  %v5019_v26 = vpop.eup %5018  ;;  %v8890_v24 = vunpack.c.l.bf16 %v8889_v4 }
 0x2f1   : > { %v3648_v11 = vsel %vm718_vm0, %v5017_v53, 0.0  ;;  %v3462_v49 = vmul.f32 1.442695, %v3366_v33  ;;  %v3464_v18 = vmul.f32 1.442695, %v3367_v48  ;;  %v8891_v54 = vunpack.c.h.bf16 %v8889_v4 }
 0x2f2   : > { %v7847_v61 = vmul.f32 %v7621_v55, %v8888_v8  ;;  %v3546_v3 = vmul.f32 %v5017_v53, %v8890_v24  ;;  %v3649_v31 = vsel %vm718_vm0, %v5019_v26, 0.0  ;;  %v3231_v46 = vrot.slane %v3230_v37, 2 }
 0x2f3   : > { %v3547_v60 = vmul.f32 %v5019_v26, %v8891_v54  ;;  %v7855_v56 = vsel %vm2910_vm2, %v2846_v45, %v2974_v29  ;;  %v3650_v55 = vadd.f32 %v3649_v31, %v3648_v11  ;;  %5024 = vpow2.f32 %v3462_v49  ;;  %v5021_v15 = vpop.eup %5020  ;;  %v8892_v29 = vld [vmem:[#allocation17_spill] sm:$0xff] }
 0x2f4   : > { %v3576_v36 = vsel %vm718_vm0, %v3546_v3, 0.0  ;;  %v7859_v35 = vsel %vm2903_vm3, %v2839_v17, %v2967_v27  ;;  %5026 = vpow2.f32 %v3464_v18  ;;  %v3232_v33 = vmax.f32 %v3230_v37, %v3231_v46  ;;  %v5023_v53 = vpop.eup %5022 }
 0x2f5   : > { %v3577_v59 = vsel %vm718_vm0, %v3547_v60, 0.0  ;;  %v3263_v48 = vsel %vm718_vm0, %v7859_v35, -inf  ;;  %v3651_v45 = vrot.slane %v3650_v55, 4  ;;  %v8893_v26 = vunpack.c.l.bf16 %v8892_v29 }
 0x2f6   : > { %v7864_v8 = vadd.f32 %v3577_v59, %v3576_v36  ;;  %v3657_v24 = vsel %vm718_vm0, %v5021_v15, 0.0  ;;  %v8894_v17 = vunpack.c.h.bf16 %v8892_v29  ;;  %v3658_v3 = vsel %vm718_vm0, %v5023_v53, 0.0 }
 0x2f7   : > { %v3548_v4 = vmul.f32 %v5021_v15, %v8893_v26  ;;  %v3233_v11 = vrot.slane %v3232_v33, 1  ;;  %v3264_v49 = vmax.f32 %v3262_v16, %v3263_v48  ;;  %v3652_v37 = vadd.f32 %v3651_v45, %v3650_v55  ;;  %v8895_v48 = vld [vmem:[#allocation36_spill] sm:$0xff] }
 0x2f8   : > { %v3549_v27 = vmul.f32 %v5023_v53, %v8894_v17  ;;  %v3659_v54 = vadd.f32 %v3658_v3, %v3657_v24  ;;  %v3298_v60 = vsel %vm718_vm0, %v7855_v56, -inf  ;;  %vm2911_vm4 = vcmp.gt.f32.partialorder %v2847_v62, 0.0 }
 0x2f9   : > { %v3585_v18 = vsel %vm718_vm0, %v3548_v4, 0.0  ;;  %v3234_v46 = vmax.f32 %v3232_v33, %v3233_v11  ;;  %v3265_v36 = vrot.slane %v3264_v49, 4  ;;  %v3653_v15 = vrot.slane %v3652_v37, 2 }
 0x2fa   : > { %v3586_v31 = vsel %vm718_vm0, %v3549_v27, 0.0  ;;  %v3660_v29 = vrot.slane %v3659_v54, 4  ;;  %v2975_v26 = vmul.f32 0.2, %v2847_v62  ;;  %v8896_v45 = vunpack.c.l.bf16 %v8895_v48 }
 0x2fb   : > { %v7876_v59 = vadd.f32 %v3586_v31, %v3585_v18  ;;  %v3374_v53 = vsub.f32 %v7771_v23, %v3234_v46  ;;  %v3375_v16 = vsub.f32 %v7813_v25, %v3234_v46  ;;  %v3266_v55 = vmax.f32 %v3264_v49, %v3265_v36 }
 0x2fc   : > { %v7883_v4 = vmul.f32 %v7711_v9, %v8896_v45  ;;  %v3654_v24 = vadd.f32 %v3653_v15, %v3652_v37  ;;  %v3661_v17 = vadd.f32 %v3660_v29, %v3659_v54  ;;  %v7885_v33 = vsel %vm2911_vm4, %v2847_v62, %v2975_v26 }
 0x2fd   : > { %v8897_v27 = vunpack.c.h.bf16 %v8895_v48  ;;  %v3478_v11 = vmul.f32 1.442695, %v3374_v53  ;;  %v3480_v18 = vmul.f32 1.442695, %v3375_v16  ;;  %v3267_v23 = vrot.slane %v3266_v55, 2  ;;  %v5025_v49 = vpop.eup %5024 }
 0x2fe   : > { %v3299_v25 = vsel %vm718_vm0, %v7885_v33, -inf  ;;  %v7897_v9 = vadd.f32 %v4254_v19, %v7645_v30  ;;  %v4071_v62 = vrot.slane %v7690_v34, 4  ;;  %v4263_v37 = vrot.slane %v7763_v43, 4  ;;  %v5027_v31 = vpop.eup %5026 }
 0x2ff   : > { %v7890_v3 = vmul.f32 %v7715_v40, %v8897_v27  ;;  %v3300_v54 = vmax.f32 %v3298_v60, %v3299_v25  ;;  %v8898_v40 = vld [vmem:[#allocation21_spill] sm:$0xff]  ;;  %v3666_v15 = vsel %vm718_vm0, %v5025_v49, 0.0  ;;  %5028 = vpow2.f32 %v3478_v11 }
 0x300   : > { %v8899_v46 = vunpack.c.l.bf16 %v8898_v40  ;;  %v3268_v29 = vmax.f32 %v3266_v55, %v3267_v23  ;;  %v3655_v26 = vrot.slane %v3654_v24, 1  ;;  %v3662_v53 = vrot.slane %v3661_v17, 2 }
 0x301   : > { %v8900_v16 = vunpack.c.h.bf16 %v8898_v40  ;;  %v3667_v19 = vsel %vm718_vm0, %v5027_v31, 0.0  ;;  %5030 = vpow2.f32 %v3480_v18  ;;  %v3301_v45 = vrot.slane %v3300_v54, 4 }
 0x302   : > { %v7903_v36 = vmul.f32 %v5025_v49, %v8899_v46  ;;  %v3668_v48 = vadd.f32 %v3667_v19, %v3666_v15  ;;  %v3269_v60 = vrot.slane %v3268_v29, 1  ;;  %v7913_v25 = vadd.f32 %v4071_v62, %v7690_v34 }
 0x303   : > { %v7908_v30 = vmul.f32 %v5027_v31, %v8900_v16  ;;  %v3888_v11 = vrot.slane %v7725_v21, 4  ;;  %v3755_v55 = vrot.slane %v7002_v47, 2  ;;  %v7918_v23 = vadd.f32 %v4263_v37, %v7763_v43 }
 0x304   : > { %v3270_v40 = vmax.f32 %v3268_v29, %v3269_v60  ;;  %v3302_v31 = vmax.f32 %v3300_v54, %v3301_v45  ;;  %v3656_v46 = vadd.f32 %v3655_v26, %v3654_v24  ;;  %v7922_v15 = vadd.f32 %v3662_v53, %v3661_v17 }
 0x305   : > { %v3777_v34 = vsel %vm718_vm0, %v7228_v13, 0.0  ;;  %v3669_v37 = vrot.slane %v3668_v48, 4  ;;  %v3756_v27 = vadd.f32 %v3755_v55, %v7002_v47  ;;  %v3786_v24 = vsel %vm718_vm0, %v7827_v12, 0.0 }
 0x306   : > { %v3382_v16 = vsub.f32 %v7797_v5, %v3270_v40  ;;  %v3383_v19 = vsub.f32 %v7859_v35, %v3270_v40  ;;  %v3303_v43 = vrot.slane %v3302_v31, 2  ;;  %v3779_v54 = vadd.f32 %v7340_v57, %v3777_v34 }
 0x307   : > { %v8901_v13 = vrot.slane %v7189_v0, 4  ;;  %5032 = vrcp.f32 %v3656_v46  ;;  %v3764_v35 = vrot.slane %v7117_v6, 2  ;;  %v3787_v47 = vsel %vm718_vm0, %v7393_v50, 0.0  ;;  %v8902_v50 = vld [vmem:[#allocation63_spill] sm:$0xff] }
 0x308   : > { %v3494_v17 = vmul.f32 1.442695, %v3382_v16  ;;  %v3496_v29 = vmul.f32 1.442695, %v3383_v19  ;;  %v3304_v26 = vmax.f32 %v3302_v31, %v3303_v43  ;;  %v3780_v12 = vrot.slane %v3779_v54, 4 }
 0x309   : > { %v3772_v53 = vadd.f32 %v8901_v13, %v7189_v0  ;;  %v7940_v60 = vpop.eup %5028  ;;  %v3788_v45 = vadd.f32 %v3787_v47, %v3786_v24  ;;  %v3670_v55 = vadd.f32 %v3669_v37, %v3668_v48  ;;  %v3757_v0 = vrot.slane %v3756_v27, 1 }
 0x30a   : > { %5034 = vpow2.f32 %v3494_v17  ;;  %v3305_v57 = vrot.slane %v3304_v26, 1  ;;  %v3675_v40 = vsel %vm718_vm0, %v7940_v60, 0.0  ;;  %v3795_v19 = vsel %vm718_vm0, %v7832_v41, 0.0 }
 0x30b   : > { %5036 = vpow2.f32 %v3496_v29  ;;  %v5031_v31 = vpop.eup %5030  ;;  %v3773_v34 = vrot.slane %v3772_v53, 2  ;;  %v3789_v16 = vrot.slane %v3788_v45, 4  ;;  %v8903_v43 = vunpack.c.h.bf16 %v8902_v50 }
 0x30c   : > { %v3306_v46 = vmax.f32 %v3304_v26, %v3305_v57  ;;  %v3676_v17 = vsel %vm718_vm0, %v5031_v31, 0.0  ;;  %v3765_v48 = vadd.f32 %v3764_v35, %v7117_v6  ;;  %v3796_v37 = vsel %vm718_vm0, %v7494_v63, 0.0 }
 0x30d   : > { %v7948_v13 = vmul.f32 %v5031_v31, %v8903_v43  ;;  %v7954_v24 = vadd.f32 %v3676_v17, %v3675_v40  ;;  %v3781_v47 = vadd.f32 %v3780_v12, %v3779_v54  ;;  %v3790_v57 = vadd.f32 %v3789_v16, %v3788_v45 }
 0x30e   : > { %v3390_v29 = vsub.f32 %v7855_v56, %v3306_v46  ;;  %v3391_v26 = vsub.f32 %v7885_v33, %v3306_v46  ;;  %v3797_v41 = vadd.f32 %v3796_v37, %v3795_v19  ;;  %v3804_v43 = vsel %vm718_vm0, %v7840_v20, 0.0 }
 0x30f   : > { %v3805_v31 = vsel %vm718_vm0, %v7847_v61, 0.0  ;;  %v3671_v5 = vrot.slane %v3670_v55, 2  ;;  %v3774_v62 = vadd.f32 %v3773_v34, %v3772_v53  ;;  %v7964_v63 = vsel %vm718_vm0, %v7908_v30, 0.0 }
 0x310   : > { %v3510_v6 = vmul.f32 1.442695, %v3390_v29  ;;  %v3512_v35 = vmul.f32 1.442695, %v3391_v26  ;;  %v3798_v56 = vrot.slane %v3797_v41, 4  ;;  %v3806_v40 = vadd.f32 %v3805_v31, %v3804_v43 }
 0x311   : > { %v3813_v33 = vsel %vm718_vm0, %v7883_v4, 0.0  ;;  %v3758_v54 = vadd.f32 %v3757_v0, %v3756_v27  ;;  %v3782_v12 = vrot.slane %v3781_v47, 2  ;;  %v3814_v20 = vsel %vm718_vm0, %v7890_v3, 0.0  ;;  %v7970_v61 = vpop.eup %5032 }
 0x312   : > { %5038 = vpow2.f32 %v3510_v6  ;;  %8904 = vst [vmem:[#allocation113_spill] sm:$0xff] %v7970_v61  ;;  %v3791_v45 = vrot.slane %v3790_v57, 2  ;;  %v3799_v53 = vadd.f32 %v3798_v56, %v3797_v41  ;;  %v3807_v46 = vrot.slane %v3806_v40, 4 }
 0x313   : > { %5040 = vpow2.f32 %v3512_v35  ;;  %v7974_v30 = vadd.f32 %v3671_v5, %v3670_v55  ;;  %v3766_v16 = vrot.slane %v3765_v48, 1  ;;  %v3775_v19 = vrot.slane %v3774_v62, 1 }
 0x314   : > { %v7972_v34 = vpop.eup %5034  ;;  %v3815_v17 = vadd.f32 %v3814_v20, %v3813_v33  ;;  %v3800_v0 = vrot.slane %v3799_v53, 2  ;;  %v3808_v3 = vadd.f32 %v3807_v46, %v3806_v40  ;;  %v8905_v37 = vrot.slane %v7317_v39, 1 }
 0x315   : > { %v7976_v4 = vpop.eup %5036  ;;  %v3684_v27 = vsel %vm718_vm0, %v7972_v34, 0.0  ;;  %v3865_v5 = vrot.slane %v7460_v52, 1  ;;  %v8906_v55 = vrot.slane %v7605_v7, 2  ;;  %v3783_v6 = vadd.f32 %v3782_v12, %v3781_v47 }
 0x316   : > { %v3857_v29 = vadd.f32 %v8905_v37, %v7317_v39  ;;  %v3685_v26 = vsel %vm718_vm0, %v7976_v4, 0.0  ;;  %v3816_v41 = vrot.slane %v3815_v17, 4  ;;  %v3792_v35 = vadd.f32 %v3791_v45, %v3790_v57 }
 0x317   : > { %v3873_v43 = vadd.f32 %v8906_v55, %v7605_v7  ;;  %v7989_v31 = vadd.f32 %v3685_v26, %v3684_v27  ;;  %v3809_v56 = vrot.slane %v3808_v3, 2  ;;  %v3801_v40 = vadd.f32 %v3800_v0, %v3799_v53 }
 0x318   : > { %v3866_v33 = vadd.f32 %v3865_v5, %v7460_v52  ;;  %v3881_v39 = vrot.slane %v7793_v58, 2  ;;  %v3767_v46 = vadd.f32 %v3766_v16, %v3765_v48  ;;  %v3776_v37 = vadd.f32 %v3775_v19, %v3774_v62 }
 0x319   : > { %v3874_v20 = vrot.slane %v3873_v43, 1  ;;  %v3817_v18 = vadd.f32 %v3816_v41, %v3815_v17  ;;  %v3889_v49 = vadd.f32 %v3888_v11, %v7725_v21  ;;  %v3810_v61 = vadd.f32 %v3809_v56, %v3808_v3 }
 0x31a   : > { %v3882_v27 = vadd.f32 %v3881_v39, %v7793_v58  ;;  %5042 = vrcp.f32 %v3857_v29  ;;  %v3678_v47 = vrot.slane %v7954_v24, 4  ;;  %v3784_v57 = vrot.slane %v3783_v6, 1 }
 0x31b   : > { %v3875_v7 = vadd.f32 %v3874_v20, %v3873_v43  ;;  %v3793_v12 = vrot.slane %v3792_v35, 1  ;;  %v3890_v52 = vrot.slane %v3889_v49, 2  ;;  %v3802_v53 = vrot.slane %v3801_v40, 1 }
 0x31c   : > { %v7998_v45 = vpop.eup %5038  ;;  %v3883_v48 = vrot.slane %v3882_v27, 1  ;;  %5044 = vrcp.f32 %v3866_v33  ;;  %v3902_v62 = vmul.f32 %v7020_v10, %v3758_v54  ;;  %v3818_v11 = vrot.slane %v3817_v18, 2 }
 0x31d   : > { %v8001_v16 = vpop.eup %5040  ;;  %v3693_v21 = vsel %vm718_vm0, %v7998_v45, 0.0  ;;  %v3891_v58 = vadd.f32 %v3890_v52, %v3889_v49  ;;  %5046 = vrcp.f32 %v3875_v7  ;;  %v3811_v17 = vrot.slane %v3810_v61, 1  ;;  %v8914_v7 = vld [vmem:[#allocation114_spill] sm:$0xff] }
 0x31e   : > { %v3694_v19 = vsel %vm718_vm0, %v8001_v16, 0.0  ;;  %v3884_v0 = vadd.f32 %v3883_v48, %v3882_v27  ;;  %v3903_v3 = vmul.f32 %v7162_v32, %v3767_v46  ;;  %v8009_v29 = vadd.f32 %v3678_v47, %v7954_v24  ;;  %v8911_v46 = vld [vmem:[#allocation9_spill] sm:$0xff]  ;;  %v8915_v47 = vld [vmem:[#allocation20_spill] sm:$0xff] }
 0x31f   : > { %v8011_v26 = vadd.f32 %v3694_v19, %v3693_v21  ;;  %v3892_v10 = vrot.slane %v3891_v58, 1  ;;  %v3904_v54 = vmul.f32 %v7314_v2, %v3776_v37  ;;  %v3785_v41 = vadd.f32 %v3784_v57, %v3783_v6  ;;  %v8908_v2 = vld [vmem:[#allocation10_spill] sm:$0xff] }
 0x320   : > { %v3794_v5 = vadd.f32 %v3793_v12, %v3792_v35  ;;  %5048 = vrcp.f32 %v3884_v0  ;;  %v3803_v49 = vadd.f32 %v3802_v53, %v3801_v40  ;;  %v3819_v55 = vadd.f32 %v3818_v11, %v3817_v18  ;;  %v8910_v35 = vld [vmem:[#allocation103_spill] sm:$0xff]  ;;  %v8917_v57 = vld [vmem:[#allocation30_spill] sm:$0xff]  ;;  %v8920_v11 = vld [vmem:[#allocation93_spill] sm:$0xff] }
 0x321   : > { %v3893_v43 = vadd.f32 %v3892_v10, %v3891_v58  ;;  %vm4302_vm6 = vcmask 1041409   ;;  %v3812_v56 = vadd.f32 %v3811_v17, %v3810_v61  ;;  %vm4306_vm7 = vcmask 1043459   ;;  %v8919_v53 = vld [vmem:[#allocation82_spill] sm:$0xff] }
 0x322   : > { %v4325_v32 = vsel %vm4302_vm6, %v3903_v3, %v3902_v62  ;;  %v8907_v24 = vunpack.c.l.bf16 %v8831_v1  ;;  %v8909_v6 = vunpack.c.l.bf16 %v8908_v2  ;;  %v8912_v40 = vunpack.c.l.bf16 %v8911_v46  ;;  %v8922_v19 = vld [vmem:[#allocation102_spill] sm:$0xff]  ;;  %v8923_v3 = vld [vmem:[#allocation95_spill] sm:$0xff] }
 0x323   : > { %5050 = vrcp.f32 %v3893_v43  ;;  %v4326_v20 = vsel %vm4304_vm5, %v3904_v54, %v4325_v32  ;;  %v8913_v61 = vunpack.c.h.bf16 %v8911_v46  ;;  %v8916_v1 = vunpack.c.l.bf16 %v8915_v47  ;;  %v8924_v43 = vld [vmem:[#allocation101_spill] sm:$0xff]  ;;  %v8925_v2 = vld [vmem:[#allocation91_spill] sm:$0xff] }
 0x324   : > { %v3934_v33 = vmul.f32 %v7439_v14, %v8907_v24  ;;  %v3936_v39 = vmul.f32 %v8910_v35, %v8909_v6  ;;  %v3938_v18 = vmul.f32 %v7674_v28, %v8912_v40  ;;  %v5043_v37 = vpop.eup %5042  ;;  %v8918_v12 = vunpack.c.h.bf16 %v8915_v47 }
 0x325   : > { %v3939_v27 = vmul.f32 %v8914_v7, %v8913_v61  ;;  %v3940_v14 = vmul.f32 %v8917_v57, %v8916_v1  ;;  %v3947_v48 = vrot.slane %v8919_v53, 2  ;;  %v3820_v62 = vrot.slane %v3819_v55, 1 }
 0x326   : > { %v3941_v52 = vmul.f32 %v7778_v42, %v8918_v12  ;;  %v3905_v21 = vmul.f32 %v5043_v37, %v3785_v41  ;;  %v8921_v28 = vrot.slane %v8920_v11, 4  ;;  %v3969_v17 = vsel %vm718_vm0, %v8922_v19, 0.0  ;;  %v5045_v0 = vpop.eup %5044 }
 0x327   : > { %vm4308_vm8 = vcmask 1044484   ;;  %v3971_v10 = vadd.f32 %v8923_v3, %v3969_v17  ;;  %v3978_v54 = vsel %vm718_vm0, %v3934_v33, 0.0  ;;  %v3979_v42 = vsel %vm718_vm0, %v8924_v43, 0.0  ;;  %v5047_v32 = vpop.eup %5046 }
 0x328   : > { %v3964_v58 = vadd.f32 %v8921_v28, %v8920_v11  ;;  %v3906_v24 = vmul.f32 %v5045_v0, %v3794_v5  ;;  %vm4310_vm9 = vcmask 1045509   ;;  %v4327_v41 = vsel %vm4306_vm7, %v3905_v21, %v4326_v20  ;;  %v8926_v21 = vld [vmem:[#allocation105_spill] sm:$0xff] }
 0x329   : > { %v3956_v6 = vrot.slane %v8925_v2, 2  ;;  %v3907_v35 = vmul.f32 %v5047_v32, %v3803_v49  ;;  %v3948_v46 = vadd.f32 %v3947_v48, %v8919_v53  ;;  %v3972_v40 = vrot.slane %v3971_v10, 4 }
 0x32a   : > { %v3980_v37 = vadd.f32 %v3979_v42, %v3978_v54  ;;  %v3821_v61 = vadd.f32 %v3820_v62, %v3819_v55  ;;  %v4328_v7 = vsel %vm4308_vm8, %v3906_v24, %v4327_v41  ;;  %v3965_v47 = vrot.slane %v3964_v58, 2  ;;  %v5049_v1 = vpop.eup %5048  ;;  %v8927_v24 = vld [vmem:[#allocation26_spill] sm:$0xff] }
 0x32b   : > { %v3987_v33 = vsel %vm718_vm0, %v3936_v39, 0.0  ;;  %vm4312_vm10 = vcmask 1046534   ;;  %v4329_v5 = vsel %vm4310_vm9, %v3907_v35, %v4328_v7  ;;  %v3973_v57 = vadd.f32 %v3972_v40, %v3971_v10  ;;  %v8928_v35 = vld [vmem:[#allocation98_spill] sm:$0xff] }
 0x32c   : > { %v3981_v12 = vrot.slane %v3980_v37, 4  ;;  %v3908_v20 = vmul.f32 %v5049_v1, %v3812_v56  ;;  %vm4314_vm11 = vcmask 1047559   ;;  %v3957_v49 = vadd.f32 %v3956_v6, %v8925_v2 }
 0x32d   : > { %v3988_v53 = vsel %vm718_vm0, %v8926_v21, 0.0  ;;  %v3949_v48 = vrot.slane %v3948_v46, 1  ;;  %v3996_v11 = vsel %vm718_vm0, %v3938_v18, 0.0  ;;  %v5051_v28 = vpop.eup %5050  ;;  %v3966_v19 = vadd.f32 %v3965_v47, %v3964_v58 }
 0x32e   : > { %v3982_v55 = vadd.f32 %v3981_v12, %v3980_v37  ;;  %v3989_v62 = vadd.f32 %v3988_v53, %v3987_v33  ;;  %v4330_v39 = vsel %vm4312_vm10, %v3908_v20, %v4329_v5  ;;  %v3974_v17 = vrot.slane %v3973_v57, 2 }
 0x32f   : > { %v3997_v0 = vsel %vm718_vm0, %v3939_v27, 0.0  ;;  %v3909_v3 = vmul.f32 %v5051_v28, %v3821_v61  ;;  %v4005_v54 = vsel %vm718_vm0, %v3940_v14, 0.0  ;;  %v3958_v43 = vrot.slane %v3957_v49, 1  ;;  %v8930_v14 = vld [vmem:[#allocation111_spill] sm:$0xff] }
 0x330   : > { %v3983_v56 = vrot.slane %v3982_v55, 2  ;;  %v3990_v10 = vrot.slane %v3989_v62, 4  ;;  %v3998_v42 = vadd.f32 %v3997_v0, %v3996_v11  ;;  %v4006_v32 = vsel %vm718_vm0, %v3941_v52, 0.0 }
 0x331   : > { %v4057_v41 = vrot.slane %v8927_v24, 1  ;;  %v4331_v18 = vsel %vm4314_vm11, %v3909_v3, %v4330_v39  ;;  %v3950_v2 = vadd.f32 %v3949_v48, %v3948_v46  ;;  %v8929_v58 = vrot.slane %v8928_v35, 1  ;;  %v8933_v3 = vld [vmem:[#allocation94_spill] sm:$0xff] }
 0x332   : > { %v3991_v6 = vadd.f32 %v3990_v10, %v3989_v62  ;;  %4332 = vrot.lane.b32.xlu0 %v4331_v18, %s5238_s13  ;;  %v3967_v27 = vrot.slane %v3966_v19, 1  ;;  %v3999_v37 = vrot.slane %v3998_v42, 4  ;;  %v4007_v61 = vadd.f32 %v4006_v32, %v4005_v54  ;;  %s5142_s13 = sshll.u32 %s5241_s29, 4  ;;  %s5143_s13 = int_to_ptr.vmem [resolvable:$false] %s5142_s13 }
 0x333   : > { %v4049_v40 = vadd.f32 %v8929_v58, %v8928_v35  ;;  %v8931_v7 = vrot.slane %v8930_v14, 2  ;;  %v3975_v52 = vadd.f32 %v3974_v17, %v3973_v57  ;;  %v3984_v33 = vadd.f32 %v3983_v56, %v3982_v55  ;;  %v8936_v58 = vld [vmem:[#allocation12_spill] sm:$0xff]  ;;  %p5145_p5 = scmp.lt.s32.totalorder %s8213_s16, %s5143_s13 }
 0x334   : > { %v4058_v1 = vadd.f32 %v4057_v41, %v8927_v24  ;;  %v4073_v46 = vrot.slane %v7913_v25, 2  ;;  %v4000_v5 = vadd.f32 %v3999_v37, %v3998_v42  ;;  %v4008_v12 = vrot.slane %v4007_v61, 4  ;;  %v8935_v24 = vld [vmem:[#allocation35_spill] sm:$0xff]  ;;  %v8939_v37 = vld [vmem:[#allocation65_spill] sm:$0xff] }
 0x335   : > { %v4065_v47 = vadd.f32 %v8931_v7, %v8930_v14  ;;  %v8932_v21 = vrot.slane %v7787_v22, 4  ;;  %v3959_v48 = vadd.f32 %v3958_v43, %v3957_v49  ;;  %v3992_v62 = vrot.slane %v3991_v6, 2  ;;  %v8934_v49 = vld [vmem:[#allocation90_spill] sm:$0xff]  ;;  %v8941_v14 = vld [vmem:[#allocation107_spill] sm:$0xff] }
 0x336   : > { %v4074_v11 = vadd.f32 %v4073_v46, %v7913_v25  ;;  %5052 = vrcp.f32 %v4049_v40  ;;  %v4001_v28 = vrot.slane %v4000_v5, 2  ;;  %v4009_v39 = vadd.f32 %v4008_v12, %v4007_v61 }
 0x337   : > { %v4066_v20 = vrot.slane %v4065_v47, 1  ;;  %v4081_v53 = vadd.f32 %v8932_v21, %v7787_v22  ;;  %v3968_v17 = vadd.f32 %v3967_v27, %v3966_v19  ;;  %5054 = vrcp.f32 %v4058_v1  ;;  %v8938_v19 = vld [vmem:[#allocation108_spill] sm:$0xff]  ;;  %v8944_v1 = vld [vmem:[#allocation110_spill] sm:$0xff] }
 0x338   : > { %v4075_v0 = vrot.slane %v4074_v11, 1  ;;  %v4094_v56 = vmul.f32 %v8933_v3, %v3950_v2  ;;  %v3976_v10 = vrot.slane %v3975_v52, 1  ;;  %v3985_v54 = vrot.slane %v3984_v33, 1 }
 0x339   : > { %v4067_v57 = vadd.f32 %v4066_v20, %v4065_v47  ;;  %v4082_v55 = vrot.slane %v4081_v53, 2  ;;  %v3993_v32 = vadd.f32 %v3992_v62, %v3991_v6  ;;  %v4095_v43 = vmul.f32 %v8934_v49, %v3959_v48  ;;  %v8942_v6 = vld [vmem:[#allocation69_spill] sm:$0xff]  ;;  %v8946_v62 = vld [vmem:[#allocation28_spill] sm:$0xff] }
 0x33a   : > { %v4076_v22 = vadd.f32 %v4075_v0, %v4074_v11  ;;  %v4096_v25 = vmul.f32 %v8935_v24, %v3968_v17  ;;  %v4002_v41 = vadd.f32 %v4001_v28, %v4000_v5  ;;  %v4010_v18 = vrot.slane %v4009_v39, 2  ;;  %v8947_v28 = vld [vmem:[#allocation23_spill] sm:$0xff]  ;;  %v8953_v49 = vld [vmem:[#allocation96_spill] sm:$0xff] }
 0x33b   : > { %v4083_v42 = vadd.f32 %v4082_v55, %v4081_v53  ;;  %5056 = vrcp.f32 %v4067_v57  ;;  %v8937_v40 = vunpack.c.l.bf16 %v8936_v58  ;;  %v4343_v2 = vsel %vm4302_vm6, %v4095_v43, %v4094_v56 }
 0x33c   : > { %5058 = vrcp.f32 %v4076_v22  ;;  %v8940_v61 = vunpack.c.l.bf16 %v8939_v37  ;;  %v8943_v47 = vunpack.c.l.bf16 %v8942_v6  ;;  %v3977_v12 = vadd.f32 %v3976_v10, %v3975_v52  ;;  %v8950_v52 = vld [vmem:[#allocation89_spill] sm:$0xff] }
 0x33d   : > { %v4084_v35 = vrot.slane %v4083_v42, 1  ;;  %v4126_v27 = vmul.f32 %v8938_v19, %v8937_v40  ;;  %v3986_v20 = vadd.f32 %v3985_v54, %v3984_v33  ;;  %v4344_v21 = vsel %vm4304_vm5, %v4096_v25, %v4343_v2 }
 0x33e   : > { %v4128_v7 = vmul.f32 %v8941_v14, %v8940_v61  ;;  %v4130_v46 = vmul.f32 %v8944_v1, %v8943_v47  ;;  %v3994_v53 = vrot.slane %v3993_v32, 1  ;;  %v8945_v48 = vunpack.c.h.bf16 %v8942_v6  ;;  %v8957_v14 = vld [vmem:[#allocation106_spill] sm:$0xff] }
 0x33f   : > { %v4085_v5 = vadd.f32 %v4084_v35, %v4083_v42  ;;  %v8948_v57 = vunpack.c.l.bf16 %v8947_v28  ;;  %v8949_v17 = vunpack.c.h.bf16 %v8947_v28  ;;  %v4003_v3 = vrot.slane %v4002_v41, 1  ;;  %v8952_v42 = vld [vmem:[#allocation92_spill] sm:$0xff] }
 0x340   : > { %v4131_v11 = vmul.f32 %v8946_v62, %v8945_v48  ;;  %v4011_v56 = vadd.f32 %v4010_v18, %v4009_v39  ;;  %v8951_v33 = vrot.slane %v8950_v52, 4  ;;  %v5053_v54 = vpop.eup %5052  ;;  %v4139_v22 = vrot.slane %v8952_v42, 2  ;;  %v8956_v18 = vld [vmem:[#allocation99_spill] sm:$0xff] }
 0x341   : > { %v4132_v55 = vmul.f32 %v7804_v51, %v8948_v57  ;;  %v4133_v0 = vmul.f32 %v7806_v38, %v8949_v17  ;;  %5060 = vrcp.f32 %v4085_v5  ;;  %v4161_v43 = vsel %vm718_vm0, %v8953_v49, 0.0  ;;  %v8954_v51 = vld [vmem:[#allocation109_spill] sm:$0xff]  ;;  %v5055_v19 = vpop.eup %5054 }
 0x342   : > { %v4156_v10 = vadd.f32 %v8951_v33, %v8950_v52  ;;  %v4170_v24 = vsel %vm718_vm0, %v4126_v27, 0.0  ;;  %v4171_v25 = vsel %vm718_vm0, %v8954_v51, 0.0  ;;  %v4097_v35 = vmul.f32 %v5053_v54, %v3977_v12  ;;  %v8955_v38 = vld [vmem:[#allocation29_spill] sm:$0xff] }
 0x343   : > { %v4148_v58 = vrot.slane %v8955_v38, 2  ;;  %v4163_v40 = vadd.f32 %v8956_v18, %v4161_v43  ;;  %v3995_v2 = vadd.f32 %v3994_v53, %v3993_v32  ;;  %v4172_v37 = vadd.f32 %v4171_v25, %v4170_v24 }
 0x344   : > { %v4157_v39 = vrot.slane %v4156_v10, 2  ;;  %v4179_v61 = vsel %vm718_vm0, %v4128_v7, 0.0  ;;  %v4180_v6 = vsel %vm718_vm0, %v8957_v14, 0.0  ;;  %v4004_v1 = vadd.f32 %v4003_v3, %v4002_v41 }
 0x345   : > { %v5057_v47 = vpop.eup %5056  ;;  %v4012_v27 = vrot.slane %v4011_v56, 1  ;;  %v4098_v5 = vmul.f32 %v5055_v19, %v3986_v20  ;;  %v4345_v48 = vsel %vm4306_vm7, %v4097_v35, %v4344_v21  ;;  %v4140_v62 = vadd.f32 %v4139_v22, %v8952_v42 }
 0x346   : > { %v4099_v12 = vmul.f32 %v5057_v47, %v3995_v2  ;;  %v4164_v28 = vrot.slane %v4163_v40, 4  ;;  %v4173_v57 = vrot.slane %v4172_v37, 4  ;;  %v4149_v32 = vadd.f32 %v4148_v58, %v8955_v38  ;;  %v5059_v52 = vpop.eup %5058  ;;  %v8960_v47 = vld [vmem:[#allocation104_spill] sm:$0xff] }
 0x347   : > { %v4346_v17 = vsel %vm4308_vm8, %v4098_v5, %v4345_v48  ;;  %v4158_v53 = vadd.f32 %v4157_v39, %v4156_v10  ;;  %v4181_v7 = vadd.f32 %v4180_v6, %v4179_v61  ;;  %v4188_v20 = vsel %vm718_vm0, %v4130_v46, 0.0 }
 0x348   : > { %v4347_v33 = vsel %vm4310_vm9, %v4099_v12, %v4346_v17  ;;  %v4165_v54 = vadd.f32 %v4164_v28, %v4163_v40  ;;  %v4174_v41 = vadd.f32 %v4173_v57, %v4172_v37  ;;  %v3680_v21 = vrot.slane %v8009_v29, 2  ;;  %v8958_v37 = vld [vmem:[#allocation31_spill] sm:$0xff] }
 0x349   : > { %v4100_v3 = vmul.f32 %v5059_v52, %v4004_v1  ;;  %v4182_v49 = vrot.slane %v4181_v7, 4  ;;  %v4189_v42 = vsel %vm718_vm0, %v4131_v11, 0.0  ;;  %v4013_v22 = vadd.f32 %v4012_v27, %v4011_v56 }
 0x34a   : > { %v4166_v43 = vrot.slane %v4165_v54, 2  ;;  %v4190_v24 = vadd.f32 %v4189_v42, %v4188_v20  ;;  %v4197_v51 = vsel %vm718_vm0, %v4132_v55, 0.0  ;;  %v4141_v35 = vrot.slane %v4140_v62, 1 }
 0x34b   : > { %v5061_v10 = vpop.eup %5060  ;;  %v4348_v25 = vsel %vm4312_vm10, %v4100_v3, %v4347_v33  ;;  %v4175_v38 = vrot.slane %v4174_v41, 2  ;;  %v4198_v58 = vsel %vm718_vm0, %v4133_v0, 0.0  ;;  %v4150_v46 = vrot.slane %v4149_v32, 1 }
 0x34c   : > { %v4101_v39 = vmul.f32 %v5061_v10, %v4013_v22  ;;  %v4159_v18 = vrot.slane %v4158_v53, 1  ;;  %v4183_v40 = vadd.f32 %v4182_v49, %v4181_v7  ;;  %v4191_v19 = vrot.slane %v4190_v24, 4 }
 0x34d   : > { %v4199_v2 = vadd.f32 %v4198_v58, %v4197_v51  ;;  %v4249_v11 = vrot.slane %v8958_v37, 1  ;;  %v8959_v56 = vrot.slane %v7897_v9, 2  ;;  %v3687_v55 = vrot.slane %v7989_v31, 4 }
 0x34e   : > { %v4349_v14 = vsel %vm4314_vm11, %v4101_v39, %v4348_v25  ;;  %v4167_v6 = vadd.f32 %v4166_v43, %v4165_v54  ;;  %v8961_v0 = vrot.slane %v8960_v47, 1  ;;  %v4176_v27 = vadd.f32 %v4175_v38, %v4174_v41  ;;  %v8963_v41 = vld [vmem:[#allocation25_spill] sm:$0xff] }
 0x34f   : > { %v4257_v61 = vadd.f32 %v8959_v56, %v7897_v9  ;;  %4350 = vrot.lane.b32.xlu1 %v4349_v14, %s5239_s19  ;;  %v4200_v5 = vrot.slane %v4199_v2, 4  ;;  %v4250_v48 = vadd.f32 %v4249_v11, %v8958_v37  ;;  %v4142_v28 = vadd.f32 %v4141_v35, %v4140_v62  ;;  %v8965_v35 = vld [vmem:[#allocation97_spill] sm:$0xff]  ;;  %s5144_s19 = scalar_lea.vmem %s5143_s13, 256 }
 0x350   : > { %v4241_v1 = vadd.f32 %v8961_v0, %v8960_v47  ;;  %v4151_v57 = vadd.f32 %v4150_v46, %v4149_v32  ;;  %v4184_v17 = vrot.slane %v4183_v40, 2  ;;  %v4265_v9 = vrot.slane %v7918_v23, 2  ;;  %p5146_p6 = scmp.lt.s32.totalorder %s5144_s19, %s5138_s25 }
 0x351   : > { %v4258_v12 = vrot.slane %v4257_v61, 1  ;;  %v4160_v7 = vadd.f32 %v4159_v18, %v4158_v53  ;;  %v4192_v52 = vadd.f32 %v4191_v19, %v4190_v24  ;;  %v8962_v54 = vrot.slane %v7816_v44, 4  ;;  %v8964_v53 = vld [vmem:[#allocation100_spill] sm:$0xff]  ;;  %v8967_v18 = vld [vmem:[#allocation11_spill] sm:$0xff] }
 0x352   : > { %v4201_v3 = vadd.f32 %v4200_v5, %v4199_v2  ;;  %v4266_v49 = vadd.f32 %v4265_v9, %v7918_v23  ;;  %5062 = vrcp.f32 %v4241_v1  ;;  %v4286_v42 = vmul.f32 %v8963_v41, %v4142_v28  ;;  %p5147_p7 = por %p5146_p6, %p5145_p5 }
 0x353   : > { %v4259_v33 = vadd.f32 %v4258_v12, %v4257_v61  ;;  %v4273_v20 = vadd.f32 %v8962_v54, %v7816_v44  ;;  %v4168_v22 = vrot.slane %v4167_v6, 1  ;;  %v4177_v43 = vrot.slane %v4176_v27, 1 }
 0x354   : > { %5064 = vrcp.f32 %v4250_v48  ;;  %v4185_v32 = vadd.f32 %v4184_v17, %v4183_v40  ;;  %v4267_v51 = vrot.slane %v4266_v49, 1  ;;  %v4287_v24 = vmul.f32 %v8964_v53, %v4151_v57  ;;  %p5148_p9 = pnand %p5147_p7, %p5141_p4 }
 0x355   : > { %v4274_v62 = vrot.slane %v4273_v20, 2  ;;  %5066 = vrcp.f32 %v4259_v33  ;;  %v4193_v10 = vrot.slane %v4192_v52, 2  ;;  %v4288_v38 = vmul.f32 %v8965_v35, %v4160_v7 }
 0x356   : > { %v8966_v44 = vunpack.c.l.bf16 %v8902_v50  ;;  %v4202_v58 = vrot.slane %v4201_v3, 2  ;;  %v4268_v39 = vadd.f32 %v4267_v51, %v4266_v49  ;;  %v4361_v46 = vsel %vm4302_vm6, %v4287_v24, %v4286_v42 }
 0x357   : > { %v4275_v25 = vadd.f32 %v4274_v62, %v4273_v20  ;;  %v8968_v19 = vunpack.c.l.bf16 %v8967_v18  ;;  %v8146_v2 = vadd.f32 %v3687_v55, %v7989_v31  ;;  %v4362_v11 = vsel %vm4304_vm5, %v4288_v38, %v4361_v46 }
 0x358   : > { %v3552_v23 = vmul.f32 %v7940_v60, %v8966_v44  ;;  %v8969_v56 = vunpack.c.h.bf16 %v8967_v18  ;;  %5068 = vrcp.f32 %v4268_v39  ;;  %v8970_v60 = vld [vmem:[#allocation16_spill] sm:$0xff]  ;;  %v4186_v31 = vrot.slane %v4185_v32, 1 }
 0x359   : > { %v3554_v40 = vmul.f32 %v7972_v34, %v8968_v19  ;;  %v4276_v37 = vrot.slane %v4275_v25, 1  ;;  %v8971_v61 = vunpack.c.l.bf16 %v8970_v60  ;;  %v8972_v47 = vunpack.c.h.bf16 %v8970_v60  ;;  %v8973_v34 = vld [vmem:[#allocation27_spill] sm:$0xff] }
 0x35a   : > { %v3555_v50 = vmul.f32 %v7976_v4, %v8969_v56  ;;  %v3563_v1 = vrot.slane %v8973_v34, 2  ;;  %v4194_v55 = vadd.f32 %v4193_v10, %v4192_v52  ;;  %v8974_v48 = vrot.slane %v7864_v8, 4 }
 0x35b   : > { %v3556_v14 = vmul.f32 %v7998_v45, %v8971_v61  ;;  %v3557_v0 = vmul.f32 %v8001_v16, %v8972_v47  ;;  %v4277_v5 = vadd.f32 %v4276_v37, %v4275_v25  ;;  %v4169_v28 = vadd.f32 %v4168_v22, %v4167_v6  ;;  %v8975_v45 = vld [vmem:[#allocation88_spill] sm:$0xff] }
 0x35c   : > { %v3580_v12 = vadd.f32 %v8974_v48, %v7864_v8  ;;  %v4178_v4 = vadd.f32 %v4177_v43, %v4176_v27  ;;  %v4203_v57 = vadd.f32 %v4202_v58, %v4201_v3  ;;  %v3594_v17 = vsel %vm718_vm0, %v7903_v36, 0.0  ;;  %v5063_v33 = vpop.eup %5062 }
 0x35d   : > { %5070 = vrcp.f32 %v4277_v5  ;;  %v3572_v9 = vrot.slane %v8975_v45, 2  ;;  %v3596_v16 = vadd.f32 %v7964_v63, %v3594_v17  ;;  %v3603_v7 = vsel %vm718_vm0, %v3552_v23, 0.0 }
 0x35e   : > { %v3564_v52 = vadd.f32 %v3563_v1, %v8973_v34  ;;  %v3581_v54 = vrot.slane %v3580_v12, 2  ;;  %v3588_v20 = vrot.slane %v7876_v59, 4  ;;  %v3604_v8 = vsel %vm718_vm0, %v7948_v13, 0.0  ;;  %v5065_v6 = vpop.eup %5064 }
 0x35f   : > { %v3696_v27 = vrot.slane %v8011_v26, 4  ;;  %v4187_v36 = vadd.f32 %v4186_v31, %v4185_v32  ;;  %v4195_v3 = vrot.slane %v4194_v55, 1  ;;  %v4289_v49 = vmul.f32 %v5063_v33, %v4169_v28  ;;  %v5067_v41 = vpop.eup %5066 }
 0x360   : > { %v4204_v42 = vrot.slane %v4203_v57, 1  ;;  %v4290_v63 = vmul.f32 %v5065_v6, %v4178_v4  ;;  %v3597_v22 = vrot.slane %v3596_v16, 4  ;;  %v3605_v43 = vadd.f32 %v3604_v8, %v3603_v7 }
 0x361   : > { %v4291_v62 = vmul.f32 %v5067_v41, %v4187_v36  ;;  %v4363_v51 = vsel %vm4306_vm7, %v4289_v49, %v4362_v11  ;;  %v3573_v53 = vadd.f32 %v3572_v9, %v8975_v45  ;;  %v3612_v24 = vsel %vm718_vm0, %v3554_v40, 0.0  ;;  %v8978_v36 = vld [vmem:[#allocation83_spill] sm:$0xff]  ;;  %v8979_v49 = vld [vmem:[#allocation113_spill] sm:$0xff] }
 0x362   : > { %v4364_v13 = vsel %vm4308_vm8, %v4290_v63, %v4363_v51  ;;  %v3565_v10 = vrot.slane %v3564_v52, 1  ;;  %v3582_v25 = vadd.f32 %v3581_v54, %v3580_v12  ;;  %v3589_v32 = vadd.f32 %v3588_v20, %v7876_v59  ;;  %v5069_v58 = vpop.eup %5068  ;;  %v8977_v54 = vld [vmem:[#allocation81_spill] sm:$0xff] }
 0x363   : > { %v4196_v35 = vadd.f32 %v4195_v3, %v4194_v55  ;;  %v4365_v38 = vsel %vm4310_vm9, %v4291_v62, %v4364_v13  ;;  %v3606_v44 = vrot.slane %v3605_v43, 4  ;;  %v3613_v23 = vsel %vm718_vm0, %v3555_v50, 0.0 }
 0x364   : > { %v4205_v39 = vadd.f32 %v4204_v42, %v4203_v57  ;;  %v3598_v46 = vadd.f32 %v3597_v22, %v3596_v16  ;;  %v3614_v18 = vadd.f32 %v3613_v23, %v3612_v24  ;;  %v3621_v19 = vsel %vm718_vm0, %v3556_v14, 0.0 }
 0x365   : > { %v4292_v37 = vmul.f32 %v5069_v58, %v4196_v35  ;;  %v3574_v40 = vrot.slane %v3573_v53, 1  ;;  %v3622_v11 = vsel %vm718_vm0, %v3557_v0, 0.0  ;;  %v3673_v56 = vrot.slane %v7974_v30, 1 }
 0x366   : > { %v3566_v60 = vadd.f32 %v3565_v10, %v3564_v52  ;;  %v3583_v59 = vrot.slane %v3582_v25, 1  ;;  %v3590_v61 = vrot.slane %v3589_v32, 2  ;;  %v3615_v47 = vrot.slane %v3614_v18, 4 }
 0x367   : > { %v5071_v34 = vpop.eup %5070  ;;  %v4366_v1 = vsel %vm4312_vm10, %v4292_v37, %v4365_v38  ;;  %v3607_v50 = vadd.f32 %v3606_v44, %v3605_v43  ;;  %v3623_v31 = vadd.f32 %v3622_v11, %v3621_v19  ;;  %v3681_v55 = vadd.f32 %v3680_v21, %v8009_v29 }
 0x368   : > { %v4293_v14 = vmul.f32 %v5071_v34, %v4205_v39  ;;  %v3599_v5 = vrot.slane %v3598_v46, 2  ;;  %v8976_v0 = vrot.slane %v7922_v15, 1  ;;  %v3674_v12 = vadd.f32 %v3673_v56, %v7974_v30 }
 0x369   : > { %v3624_v28 = vrot.slane %v3623_v31, 4  ;;  %v3682_v4 = vrot.slane %v3681_v55, 1  ;;  %v3689_v57 = vrot.slane %v8146_v2, 2  ;;  %v3697_v17 = vadd.f32 %v3696_v27, %v8011_v26 }
 0x36a   : > { %v3665_v48 = vadd.f32 %v8976_v0, %v7922_v15  ;;  %v4367_v45 = vsel %vm4314_vm11, %v4293_v14, %v4366_v1  ;;  %v3575_v9 = vadd.f32 %v3574_v40, %v3573_v53  ;;  %v3591_v16 = vadd.f32 %v3590_v61, %v3589_v32 }
 0x36b   : > { %v3616_v7 = vadd.f32 %v3615_v47, %v3614_v18  ;;  %4368 = vrot.lane.b32.xlu0 %v4367_v45, %s5240_s20  ;;  %v3608_v29 = vrot.slane %v3607_v50, 2  ;;  %v3683_v21 = vadd.f32 %v3682_v4, %v3681_v55  ;;  %v3690_v33 = vadd.f32 %v3689_v57, %v8146_v2 }
 0x36c   : > { %v3698_v15 = vrot.slane %v3697_v17, 2  ;;  %v3584_v52 = vadd.f32 %v3583_v59, %v3582_v25  ;;  %v3625_v30 = vadd.f32 %v3624_v28, %v3623_v31  ;;  %5072 = vrcp.f32 %v3665_v48 }
 0x36d   : > { %v3710_v20 = vmul.f32 %v8977_v54, %v3566_v60  ;;  %v3600_v8 = vadd.f32 %v3599_v5, %v3598_v46  ;;  %v3691_v6 = vrot.slane %v3690_v33, 1  ;;  %5074 = vrcp.f32 %v3674_v12 }
 0x36e   : > { %v3699_v26 = vadd.f32 %v3698_v15, %v3697_v17  ;;  %v3617_v27 = vrot.slane %v3616_v7, 2  ;;  %5076 = vrcp.f32 %v3683_v21  ;;  %v3711_v3 = vmul.f32 %v8978_v36, %v3575_v9 }
 0x36f   : > { %v3712_v41 = vmul.f32 %v8979_v49, %v3584_v52  ;;  %v3609_v42 = vadd.f32 %v3608_v29, %v3607_v50  ;;  %v3692_v63 = vadd.f32 %v3691_v6, %v3690_v33  ;;  %v3626_v2 = vrot.slane %v3625_v30, 2 }
 0x370   : > { %v3700_v22 = vrot.slane %v3699_v26, 1  ;;  %v4303_v43 = vsel %vm4302_vm6, %v3711_v3, %v3710_v20  ;;  %v3592_v62 = vrot.slane %v3591_v16, 1  ;;  %v3601_v24 = vrot.slane %v3600_v8, 1 }
 0x371   : > { %5078 = vrcp.f32 %v3692_v63  ;;  %v4305_v53 = vsel %vm4304_vm5, %v3712_v41, %v4303_v43  ;;  %v3618_v13 = vadd.f32 %v3617_v27, %v3616_v7  ;;  %v3610_v10 = vrot.slane %v3609_v42, 1 }
 0x372   : > { %v3701_v51 = vadd.f32 %v3700_v22, %v3699_v26  ;;  %v3627_v25 = vadd.f32 %v3626_v2, %v3625_v30  ;;  %v3593_v32 = vadd.f32 %v3592_v62, %v3591_v16  ;;  %v3602_v38 = vadd.f32 %v3601_v24, %v3600_v8 }
 0x373   : > { %v3619_v44 = vrot.slane %v3618_v13, 1  ;;  %v3611_v58 = vadd.f32 %v3610_v10, %v3609_v42  ;;  %vm4372_vm12 = vcmask 523264   ;;  %vm4374_vm13 = vcmask 785408  }
 0x374   : > { %5080 = vrcp.f32 %v3701_v51  ;;  %v3628_v18 = vrot.slane %v3627_v25, 1 }
 0x375   : > { %v3620_v11 = vadd.f32 %v3619_v44, %v3618_v13 }
 0x376   : > { %v5073_v35 = vpop.eup %5072  ;;  %v3629_v61 = vadd.f32 %v3628_v18, %v3627_v25 }
 0x377   : > { %v5075_v23 = vpop.eup %5074  ;;  %v3713_v39 = vmul.f32 %v5073_v35, %v3593_v32 }
 0x378   : > { %v5077_v46 = vpop.eup %5076  ;;  %v3714_v19 = vmul.f32 %v5075_v23, %v3602_v38 }
 0x379   : > { %v3715_v37 = vmul.f32 %v5077_v46, %v3611_v58  ;;  %v4307_v40 = vsel %vm4306_vm7, %v3713_v39, %v4305_v53 }
 0x37a   : > { %v4309_v56 = vsel %vm4308_vm8, %v3714_v19, %v4307_v40 }
 0x37b   : > { %v5079_v60 = vpop.eup %5078  ;;  %v4311_v59 = vsel %vm4310_vm9, %v3715_v37, %v4309_v56 }
 0x37c   : > { %v3716_v47 = vmul.f32 %v5079_v60, %v3620_v11 }
 0x37e   : > { %v5081_v34 = vpop.eup %5080  ;;  %v4313_v50 = vsel %vm4312_vm10, %v3716_v47, %v4311_v59 }
 0x37f   : > { %v3717_v1 = vmul.f32 %v5081_v34, %v3629_v61 }
 0x381   : > { %v4315_v31 = vsel %vm4314_vm11, %v3717_v1, %v4313_v50 }
 0x3a4   : > { %v4333_v55 = vpop.permute.xlu0 %4332 }
 0x3a5   : > { %v4371_v5 = vsel %vm718_vm0, %v4315_v31, %v4333_v55 }
 0x3c1   : > { %v4351_v14 = vpop.permute.xlu1 %4350 }
 0x3c2   : > { %v4373_v0 = vsel %vm4372_vm12, %v4371_v5, %v4351_v14 }
 0x3dd   : > { %v4369_v48 = vpop.permute.xlu0 %4368 }
 0x3de   : > { %v4375_v12 = vsel %vm4374_vm13, %v4373_v0, %v4369_v48 }
 0x3df   : > { %4376 = vst [vmem:[%s351_s14] sm:$0xff] %v4375_v12 }
 0x3e0   : > { %5151 = shalt.err (!%p5148_p9)
}
 0x3e1   : > { %s5152_s20 = scalar_lea.hbm %s8211_s7, 128  ;;  %s5156_s12 = scalar_lea.hbm %s8270_s6, 512 }
 0x3e2   : > { %p5153_p10 = scmp.ne.s32.totalorder %s8211_s7, %s5152_s20  ;;  %p5157_p13 = scmp.lt.u32.totalorder %s8211_s7, %s8270_s6 }
 0x3e3   : > { %p5158_p0 = scmp.lt.u32.totalorder %s5156_s12, %s5152_s20  ;;  %p5160_p2 = scmp.lt.u32.totalorder %s5152_s20, %s8211_s7 }
 0x3e4   : > { %p5154_p11 = pnand %p5153_p10, %p5328_p3 }
 0x3e5   : > { %p5159_p1 = por %p5158_p0, %p5157_p13 }
 0x3e6   : > { %p5155_p12 = pneg %p5154_p11 }
 0x3e7   : > { %p5161_p4 = por %p5160_p2, %p5159_p1 }
 0x3e9   : > { %p5162_p5 = pnand %p5161_p4, %p5155_p12 }
 0x3eb   : > { %5165 = shalt.err (!%p5162_p5)
}
 0x3ec   : > { %4738 = dma.vmem_to_hbm [thread:$0]  (%p5328_p3), %s8213_s16, 128, %s8211_s7, %s4378_s24  }
 0x3ed PF: > { %p4744_p6 = scmp.ge.s32.totalorder %s5232_s28, 2  ;;  %s4405_s14 = sand.u32 1, %s5204_s21  }
 0x3ee   : > { %s4406_s17 = scalar_lea.sflag [#allocation3], %s4405_s14 }
 0x3ef   : > { %p4741_p7 = pnand %p4744_p6, %p5337_p8 }
 0x3f1   : > { %5199 = dma.done.wait (!%p4741_p7), %s4406_s17, 128  }
 0x3f2   : > { %5201 = vsyncadd (!%p4741_p7), %s4406_s17, 4294967168  ;;  %s19_s28 = sadd.s32 1, %s5232_s28   ;;  %s8980_s10 = sld [smem:[#allocation5_spill]] }
 0x3f3   : > { %p16_p9 = scmp.ge.s32.totalorder %s19_s28, 6   ;;  %s8981_s16 = sld [smem:[#allocation6_spill]] }
 0x3f4   : > { %s8982_s21 = smov %s5208_s22  ;;  %s8983_s22 = smov %s5212_s23 }
 0x3f5   : > { %s8984_s23 = smov %s5346_s15  ;;  %s8985_s24 = smov %s5224_s26 }
 0x3f6   : > { %s8986_s25 = smov %s5228_s27  ;;  %18 = sbr.rel (!%p16_p9) target bundleno = 7 (0x7), region = 88 }
 0x3f8   : > { %s8987_s26 = smov %s8980_s10 }
 0x3f9   : > { %s8988_s27 = smov %s8981_s16 }
 0x3fd   :  { %4411 = vsyncpa [#allocation3], 1 }
 0x3fe   :  { %4413 = vsyncpa [#allocation3 + $0x1], 1 }

</bundles_post_ra>
